<compile_context>
chip_gen: v6e
topology: v6e:2x2x1
jax: 0.10.0
libtpu: 0.0.40
codegen_flags: <defaults>
</compile_context>

<pallas_src>
import functools

import jax
import jax.numpy as jnp
from jax import lax
from jax.experimental import pallas as pl
from jax.experimental.pallas import tpu as pltpu

BN_EPS = 1e-5


def _round_up(x, m):
    return ((x + m - 1) // m) * m


def _pick_tile_h(ho, cap=8):
    """Largest divisor of Ho that is <= cap (bounds the unrolled row loop)."""
    for cand in range(min(cap, ho), 0, -1):
        if ho % cand == 0:
            return cand
    return 1


def _conv_stats_kernel(x_ref, w_ref, y_ref, sum_ref, sq_ref, *, stride):
    """Conv tile + per-channel sum / sum-of-squares accumulation.

    x_ref:   (1, Hp, Wp, Cin_p)    full zero-padded NHWC image (batch b)
    w_ref:   (kh, kw, Cin_p, Cout_p)
    y_ref:   (1, th, Wo, Cout_p)   conv output rows [t*th, (t+1)*th)
    sum_ref: (1, 1, Cout_p)        per-image running channel sum   (over t)
    sq_ref:  (1, 1, Cout_p)        per-image running channel sumsq (over t)
    """
    kh, kw = w_ref.shape[0], w_ref.shape[1]
    th, wo, cout_p = y_ref.shape[1], y_ref.shape[2], y_ref.shape[3]
    t = pl.program_id(1)

    @pl.when(t == 0)
    def _init():
        sum_ref[...] = jnp.zeros_like(sum_ref)
        sq_ref[...] = jnp.zeros_like(sq_ref)

    row0 = t * (th * stride)
    tile_sum = jnp.zeros((1, cout_p), jnp.float32)
    tile_sq = jnp.zeros((1, cout_p), jnp.float32)

    for r in range(th):                              # static unroll, th <= 8
        acc = jnp.zeros((wo, cout_p), jnp.float32)
        for i in range(kh):
            x_row = x_ref[0, row0 + r * stride + i, :, :]        # (Wp, Cin_p)
            for j in range(kw):
                if stride == 1:
                    x_win = x_row[j:j + wo, :]                   # (Wo, Cin_p)
                else:
                    x_win = lax.slice(
                        x_row, (j, 0),
                        (j + (wo - 1) * stride + 1, x_row.shape[1]),
                        (stride, 1))
                acc = acc + jnp.dot(x_win, w_ref[i, j],
                                    preferred_element_type=jnp.float32)
        y_ref[0, r] = acc.astype(y_ref.dtype)
        tile_sum = tile_sum + jnp.sum(acc, axis=0, keepdims=True)
        tile_sq = tile_sq + jnp.sum(acc * acc, axis=0, keepdims=True)

    sum_ref[0] = sum_ref[0] + tile_sum
    sq_ref[0] = sq_ref[0] + tile_sq


def _bn_relu_kernel(y_ref, scale_ref, shift_ref, o_ref):
    """Fused BN affine + ReLU: out = max(y*scale + shift, 0).

    y_ref/o_ref: (1, th, Wo, Cout_p); scale/shift: (1, 1, 1, Cout_p).
    """
    out = y_ref[...] * scale_ref[...] + shift_ref[...]
    o_ref[...] = jnp.maximum(out, 0.0).astype(o_ref.dtype)


@functools.partial(jax.jit, static_argnames=("stride", "padding"))
def conv_block_forward(x, weight, bias, gamma, beta, *, stride=1, padding=0):
    """x: (N, C_in, H, W) NCHW; weight: (C_out, C_in, kh, kw) (PyTorch layout)."""
    # Conv bias is mathematically cancelled by the train-mode BN mean
    # subtraction (variance is bias-invariant), so it is intentionally unused.
    del bias

    n, c_in, h, w = x.shape
    c_out, _, kh, kw = weight.shape
    ho = (h + 2 * padding - kh) // stride + 1
    wo = (w + 2 * padding - kw) // stride + 1
    hp, wp = h + 2 * padding, w + 2 * padding

    cin_p = _round_up(c_in, 8)      # sublane-aligned weight contraction dim
    cout_p = _round_up(c_out, 128)  # lane-dense output channels
    th = _pick_tile_h(ho)
    grid = (n, ho // th)

    # NCHW -> zero-padded NHWC, channel-padded to Cin_p.
    x_nhwc = jnp.transpose(x, (0, 2, 3, 1)).astype(jnp.float32)
    x_pad = jnp.pad(x_nhwc, ((0, 0), (padding, padding),
                             (padding, padding), (0, cin_p - c_in)))

    # Weight (C_out, C_in, kh, kw) -> (kh, kw, Cin_p, Cout_p), zero-padded.
    w_k = jnp.transpose(weight.astype(jnp.float32), (2, 3, 1, 0))
    w_k = jnp.pad(w_k, ((0, 0), (0, 0), (0, cin_p - c_in), (0, cout_p - c_out)))

    bytes_p1 = 4 * (n * hp * wp * cin_p + kh * kw * cin_p * cout_p
                    + n * ho * wo * cout_p + 2 * n * cout_p)
    y, csum, csq = pl.pallas_call(
        functools.partial(_conv_stats_kernel, stride=stride),
        grid=grid,
        in_specs=[
            pl.BlockSpec((1, hp, wp, cin_p), lambda b, t: (b, 0, 0, 0)),
            pl.BlockSpec((kh, kw, cin_p, cout_p), lambda b, t: (0, 0, 0, 0)),
        ],
        out_specs=(
            pl.BlockSpec((1, th, wo, cout_p), lambda b, t: (b, t, 0, 0)),
            pl.BlockSpec((1, 1, cout_p), lambda b, t: (b, 0, 0)),
            pl.BlockSpec((1, 1, cout_p), lambda b, t: (b, 0, 0)),
        ),
        out_shape=(
            jax.ShapeDtypeStruct((n, ho, wo, cout_p), jnp.float32),
            jax.ShapeDtypeStruct((n, 1, cout_p), jnp.float32),
            jax.ShapeDtypeStruct((n, 1, cout_p), jnp.float32),
        ),
        compiler_params=pltpu.CompilerParams(
            dimension_semantics=("parallel", "arbitrary"),
            vmem_limit_bytes=32 * 1024 * 1024,
        ),
        cost_estimate=pl.CostEstimate(
            flops=2 * n * ho * wo * kh * kw * cin_p * cout_p,
            transcendentals=0,
            bytes_accessed=bytes_p1,
        ),
    )(x_pad, w_k)

    # Tiny per-channel statistics math in plain JAX (C_out_pad values).
    cnt = jnp.float32(n * ho * wo)
    ch_sum = jnp.sum(csum[:, 0, :], axis=0)
    ch_sq = jnp.sum(csq[:, 0, :], axis=0)
    mean = ch_sum / cnt
    # var = E[y^2] - mean^2 (biased, train-mode BN); clamp tiny negative
    # values from f32 cancellation.
    var = jnp.maximum(ch_sq / cnt - mean * mean, 0.0)
    inv_std = lax.rsqrt(var + BN_EPS)
    gamma_p = jnp.pad(gamma.astype(jnp.float32), (0, cout_p - c_out))
    beta_p = jnp.pad(beta.astype(jnp.float32), (0, cout_p - c_out))
    scale = (gamma_p * inv_std).reshape(1, 1, 1, cout_p)
    shift = (beta_p - mean * gamma_p * inv_std).reshape(1, 1, 1, cout_p)

    bytes_p2 = 4 * (2 * n * ho * wo * cout_p + 2 * cout_p)
    out_nhwc = pl.pallas_call(
        _bn_relu_kernel,
        grid=grid,
        in_specs=[
            pl.BlockSpec((1, th, wo, cout_p), lambda b, t: (b, t, 0, 0)),
            pl.BlockSpec((1, 1, 1, cout_p), lambda b, t: (0, 0, 0, 0)),
            pl.BlockSpec((1, 1, 1, cout_p), lambda b, t: (0, 0, 0, 0)),
        ],
        out_specs=pl.BlockSpec((1, th, wo, cout_p), lambda b, t: (b, t, 0, 0)),
        out_shape=jax.ShapeDtypeStruct((n, ho, wo, cout_p), jnp.float32),
        input_output_aliases={0: 0},   # normalize in place over the conv output
        compiler_params=pltpu.CompilerParams(
            dimension_semantics=("parallel", "parallel"),
            vmem_limit_bytes=32 * 1024 * 1024,
        ),
        cost_estimate=pl.CostEstimate(
            flops=3 * n * ho * wo * cout_p,
            transcendentals=0,
            bytes_accessed=bytes_p2,
        ),
    )(y, scale, shift)

    # Slice off the channel padding and return NCHW to match the PyTorch module.
    return jnp.transpose(out_nhwc[..., :c_out], (0, 3, 1, 2)).astype(x.dtype)


def _reference(x, weight, bias, gamma, beta, *, stride, padding):
    # Pure-JAX reference (includes the conv bias; BN cancels it).
    y = lax.conv_general_dilated(
        x, weight, window_strides=(stride, stride),
        padding=[(padding, padding), (padding, padding)],
        dimension_numbers=("NCHW", "OIHW", "NCHW"))
    y = y + bias[None, :, None, None]
    mean = jnp.mean(y, axis=(0, 2, 3), keepdims=True)
    var = jnp.mean((y - mean) ** 2, axis=(0, 2, 3), keepdims=True)
    y = (y - mean) * lax.rsqrt(var + BN_EPS)
    y = y * gamma[None, :, None, None] + beta[None, :, None, None]
    return jnp.maximum(y, 0.0)


if __name__ == "__main__":
    N, C_IN, H, W = 2, 4, 16, 16
    C_OUT, KSIZE, STRIDE, PAD = 8, 3, 1, 1

    key = jax.random.PRNGKey(0)
    kx, kw_, kb, kg, kbe = jax.random.split(key, 5)

    x = jax.random.normal(kx, (N, C_IN, H, W), dtype=jnp.float32)
    fan_in = C_IN * KSIZE * KSIZE
    bound = 1.0 / (fan_in ** 0.5)
    weight = jax.random.uniform(kw_, (C_OUT, C_IN, KSIZE, KSIZE),
                                minval=-bound, maxval=bound, dtype=jnp.float32)
    bias = jax.random.uniform(kb, (C_OUT,), minval=-bound, maxval=bound,
                              dtype=jnp.float32)
    gamma = 1.0 + 0.1 * jax.random.normal(kg, (C_OUT,), dtype=jnp.float32)
    beta = 0.1 * jax.random.normal(kbe, (C_OUT,), dtype=jnp.float32)

    out = conv_block_forward(x, weight, bias, gamma, beta,
                             stride=STRIDE, padding=PAD)
    out = jax.block_until_ready(out)

    ref = _reference(x, weight, bias, gamma, beta, stride=STRIDE, padding=PAD)
    assert out.shape == (N, C_OUT, H, W)
    assert jnp.allclose(out, ref, atol=1e-4, rtol=1e-4), \
        float(jnp.max(jnp.abs(out - ref)))

    print("KERNEL_OK")
</pallas_src>

<mosaic_0001>
module attributes {stable_mosaic.version = 11 : i64} {
  func.func @_bn_relu_kernel(%arg0: i32, %arg1: i32, %arg2: memref<1x8x16x128xf32, #tpu.memory_space<vmem>>, %arg3: memref<1x1x1x128xf32, #tpu.memory_space<vmem>>, %arg4: memref<1x1x1x128xf32, #tpu.memory_space<vmem>>, %arg5: memref<1x8x16x128xf32, #tpu.memory_space<vmem>>) attributes {dimension_semantics = [#tpu.dimension_semantics<parallel>, #tpu.dimension_semantics<parallel>], iteration_bounds = array<i64: 2, 2>, scalar_prefetch = 0 : i64, scratch_operands = 0 : i64, tpu.core_type = #tpu.core_type<tc>, window_params = [{transform_indices = @transform_0, window_bounds = array<i64: 1, 8, 16, 128>}, {pipeline_mode = #tpu.pipeline_mode<synchronous>, transform_indices = @transform_1, window_bounds = array<i64: 1, 1, 1, 128>}, {pipeline_mode = #tpu.pipeline_mode<synchronous>, transform_indices = @transform_2, window_bounds = array<i64: 1, 1, 1, 128>}, {transform_indices = @transform_3, window_bounds = array<i64: 1, 8, 16, 128>}]} {
    %c0 = arith.constant 0 : index
    %c0_0 = arith.constant 0 : index
    %c0_1 = arith.constant 0 : index
    %c0_2 = arith.constant 0 : index
    %0 = vector.load %arg2[%c0, %c0_0, %c0_1, %c0_2] : memref<1x8x16x128xf32, #tpu.memory_space<vmem>>, vector<1x8x16x128xf32>
    %c0_3 = arith.constant 0 : index
    %c0_4 = arith.constant 0 : index
    %c0_5 = arith.constant 0 : index
    %c0_6 = arith.constant 0 : index
    %1 = vector.load %arg3[%c0_3, %c0_4, %c0_5, %c0_6] : memref<1x1x1x128xf32, #tpu.memory_space<vmem>>, vector<1x1x1x128xf32>
    %2 = vector.broadcast %1 : vector<1x1x1x128xf32> to vector<1x8x16x128xf32>
    %3 = arith.mulf %0, %2 : vector<1x8x16x128xf32>
    %c0_7 = arith.constant 0 : index
    %c0_8 = arith.constant 0 : index
    %c0_9 = arith.constant 0 : index
    %c0_10 = arith.constant 0 : index
    %4 = vector.load %arg4[%c0_7, %c0_8, %c0_9, %c0_10] : memref<1x1x1x128xf32, #tpu.memory_space<vmem>>, vector<1x1x1x128xf32>
    %5 = vector.broadcast %4 : vector<1x1x1x128xf32> to vector<1x8x16x128xf32>
    %6 = arith.addf %3, %5 : vector<1x8x16x128xf32>
    %cst = arith.constant 0.000000e+00 : f32
    %7 = vector.broadcast %cst : f32 to vector<1x8x16x128xf32>
    %8 = arith.maximumf %6, %7 : vector<1x8x16x128xf32>
    %c0_11 = arith.constant 0 : index
    %c0_12 = arith.constant 0 : index
    %c0_13 = arith.constant 0 : index
    %c0_14 = arith.constant 0 : index
    %9 = vector.load %arg5[%c0_11, %c0_12, %c0_13, %c0_14] : memref<1x8x16x128xf32, #tpu.memory_space<vmem>>, vector<1x8x16x128xf32>
    tpu.vector_store %arg5[%c0_11, %c0_12, %c0_13, %c0_14], %8 {strides = array<i32>} : memref<1x8x16x128xf32, #tpu.memory_space<vmem>>, vector<1x8x16x128xf32>,
    return
  }
  func.func @transform_0(%arg0: i32, %arg1: i32) -> (i32, i32, i32, i32) {
    %c0_i32 = arith.constant 0 : i32
    %c0_i32_0 = arith.constant 0 : i32
    %c0_i32_1 = arith.constant 0 : i32
    return %arg0, %arg1, %c0_i32, %c0_i32_0 : i32, i32, i32, i32
  }
  func.func @transform_1(%arg0: i32, %arg1: i32) -> (i32, i32, i32, i32) {
    %c0_i32 = arith.constant 0 : i32
    %c0_i32_0 = arith.constant 0 : i32
    %c0_i32_1 = arith.constant 0 : i32
    %c0_i32_2 = arith.constant 0 : i32
    %c0_i32_3 = arith.constant 0 : i32
    return %c0_i32, %c0_i32_0, %c0_i32_1, %c0_i32_2 : i32, i32, i32, i32
  }
  func.func @transform_2(%arg0: i32, %arg1: i32) -> (i32, i32, i32, i32) {
    %c0_i32 = arith.constant 0 : i32
    %c0_i32_0 = arith.constant 0 : i32
    %c0_i32_1 = arith.constant 0 : i32
    %c0_i32_2 = arith.constant 0 : i32
    %c0_i32_3 = arith.constant 0 : i32
    return %c0_i32, %c0_i32_0, %c0_i32_1, %c0_i32_2 : i32, i32, i32, i32
  }
  func.func @transform_3(%arg0: i32, %arg1: i32) -> (i32, i32, i32, i32) {
    %c0_i32 = arith.constant 0 : i32
    %c0_i32_0 = arith.constant 0 : i32
    %c0_i32_1 = arith.constant 0 : i32
    return %arg0, %arg1, %c0_i32, %c0_i32_0 : i32, i32, i32, i32
  }
}

module attributes {stable_mosaic.version = 11 : i64} {
  func.func @_conv_stats_kernel(%arg0: i32, %arg1: i32, %arg2: memref<1x18x18x8xf32, #tpu.memory_space<vmem>>, %arg3: memref<3x3x8x128xf32, #tpu.memory_space<vmem>>, %arg4: memref<1x8x16x128xf32, #tpu.memory_space<vmem>>, %arg5: memref<1x1x128xf32, #tpu.memory_space<vmem>>, %arg6: memref<1x1x128xf32, #tpu.memory_space<vmem>>) attributes {dimension_semantics = [#tpu.dimension_semantics<parallel>, #tpu.dimension_semantics<arbitrary>], iteration_bounds = array<i64: 2, 2>, scalar_prefetch = 0 : i64, scratch_operands = 0 : i64, tpu.core_type = #tpu.core_type<tc>, window_params = [{transform_indices = @transform_0, window_bounds = array<i64: 1, 18, 18, 8>}, {pipeline_mode = #tpu.pipeline_mode<synchronous>, transform_indices = @transform_1, window_bounds = array<i64: 3, 3, 8, 128>}, {transform_indices = @transform_2, window_bounds = array<i64: 1, 8, 16, 128>}, {transform_indices = @transform_3, window_bounds = array<i64: 1, 1, 128>}, {transform_indices = @transform_4, window_bounds = array<i64: 1, 1, 128>}]} {
    %c0_i32 = arith.constant 0 : i32
    %0 = arith.cmpi eq, %arg1, %c0_i32 : i32
    %1 = arith.extui %0 : i1 to i32
    %c0_i32_0 = arith.constant 0 : i32
    %2 = arith.cmpi ne, %1, %c0_i32_0 : i32
    scf.if %2 {
      %cst_535 = arith.constant 0.000000e+00 : f32
      %586 = vector.broadcast %cst_535 : f32 to vector<1x1x128xf32>
      %c0_536 = arith.constant 0 : index
      %c0_537 = arith.constant 0 : index
      %c0_538 = arith.constant 0 : index
      %587 = vector.load %arg5[%c0_536, %c0_537, %c0_538] : memref<1x1x128xf32, #tpu.memory_space<vmem>>, vector<1x1x128xf32>
      tpu.vector_store %arg5[%c0_536, %c0_537, %c0_538], %586 {strides = array<i32>} : memref<1x1x128xf32, #tpu.memory_space<vmem>>, vector<1x1x128xf32>,
      %cst_539 = arith.constant 0.000000e+00 : f32
      %588 = vector.broadcast %cst_539 : f32 to vector<1x1x128xf32>
      %c0_540 = arith.constant 0 : index
      %c0_541 = arith.constant 0 : index
      %c0_542 = arith.constant 0 : index
      %589 = vector.load %arg6[%c0_540, %c0_541, %c0_542] : memref<1x1x128xf32, #tpu.memory_space<vmem>>, vector<1x1x128xf32>
      tpu.vector_store %arg6[%c0_540, %c0_541, %c0_542], %588 {strides = array<i32>} : memref<1x1x128xf32, #tpu.memory_space<vmem>>, vector<1x1x128xf32>,
    } else {
    }
    %c8_i32 = arith.constant 8 : i32
    %3 = arith.muli %arg1, %c8_i32 : i32
    %cst = arith.constant 0.000000e+00 : f32
    %4 = vector.broadcast %cst : f32 to vector<1x128xf32>
    %cst_1 = arith.constant 0.000000e+00 : f32
    %5 = vector.broadcast %cst_1 : f32 to vector<1x128xf32>
    %cst_2 = arith.constant 0.000000e+00 : f32
    %6 = vector.broadcast %cst_2 : f32 to vector<16x128xf32>
    %c0_i32_3 = arith.constant 0 : i32
    %7 = arith.addi %3, %c0_i32_3 : i32
    %c0_i32_4 = arith.constant 0 : i32
    %8 = arith.addi %7, %c0_i32_4 : i32
    %c0 = arith.constant 0 : index
    %9 = arith.index_cast %8 : i32 to index
    %c0_5 = arith.constant 0 : index
    %c0_6 = arith.constant 0 : index
    %10 = vector.load %arg2[%c0, %9, %c0_5, %c0_6] : memref<1x18x18x8xf32, #tpu.memory_space<vmem>>, vector<1x1x18x8xf32>
    %11 = vector.shape_cast %10 : vector<1x1x18x8xf32> to vector<18x8xf32>
    %12 = vector.extract_strided_slice %11 {offsets = [0, 0], sizes = [16, 8], strides = [1, 1]} : vector<18x8xf32> to vector<16x8xf32>
    %c0_7 = arith.constant 0 : index
    %c0_8 = arith.constant 0 : index
    %c0_9 = arith.constant 0 : index
    %c0_10 = arith.constant 0 : index
    %13 = vector.load %arg3[%c0_7, %c0_8, %c0_9, %c0_10] : memref<3x3x8x128xf32, #tpu.memory_space<vmem>>, vector<1x1x8x128xf32>
    %14 = vector.shape_cast %13 : vector<1x1x8x128xf32> to vector<8x128xf32>
    %cst_11 = arith.constant dense<0.000000e+00> : vector<16x128xf32>
    %15 = tpu.matmul %12, %14, %cst_11 {dimension_numbers = #tpu.dot_dimension_numbers<[1], [0], [0], [1], [0, 0, 1, 1], [], []>} : vector<16x8xf32>, vector<8x128xf32>, vector<16x128xf32> -> vector<16x128xf32>
    %16 = arith.addf %6, %15 : vector<16x128xf32>
    %17 = vector.extract_strided_slice %11 {offsets = [1, 0], sizes = [16, 8], strides = [1, 1]} : vector<18x8xf32> to vector<16x8xf32>
    %c0_12 = arith.constant 0 : index
    %c1 = arith.constant 1 : index
    %c0_13 = arith.constant 0 : index
    %c0_14 = arith.constant 0 : index
    %18 = vector.load %arg3[%c0_12, %c1, %c0_13, %c0_14] : memref<3x3x8x128xf32, #tpu.memory_space<vmem>>, vector<1x1x8x128xf32>
    %19 = vector.shape_cast %18 : vector<1x1x8x128xf32> to vector<8x128xf32>
    %cst_15 = arith.constant dense<0.000000e+00> : vector<16x128xf32>
    %20 = tpu.matmul %17, %19, %cst_15 {dimension_numbers = #tpu.dot_dimension_numbers<[1], [0], [0], [1], [0, 0, 1, 1], [], []>} : vector<16x8xf32>, vector<8x128xf32>, vector<16x128xf32> -> vector<16x128xf32>
    %21 = arith.addf %16, %20 : vector<16x128xf32>
    %22 = vector.extract_strided_slice %11 {offsets = [2, 0], sizes = [16, 8], strides = [1, 1]} : vector<18x8xf32> to vector<16x8xf32>
    %c0_16 = arith.constant 0 : index
    %c2 = arith.constant 2 : index
    %c0_17 = arith.constant 0 : index
    %c0_18 = arith.constant 0 : index
    %23 = vector.load %arg3[%c0_16, %c2, %c0_17, %c0_18] : memref<3x3x8x128xf32, #tpu.memory_space<vmem>>, vector<1x1x8x128xf32>
    %24 = vector.shape_cast %23 : vector<1x1x8x128xf32> to vector<8x128xf32>
    %cst_19 = arith.constant dense<0.000000e+00> : vector<16x128xf32>
    %25 = tpu.matmul %22, %24, %cst_19 {dimension_numbers = #tpu.dot_dimension_numbers<[1], [0], [0], [1], [0, 0, 1, 1], [], []>} : vector<16x8xf32>, vector<8x128xf32>, vector<16x128xf32> -> vector<16x128xf32>
    %26 = arith.addf %21, %25 : vector<16x128xf32>
    %c0_i32_20 = arith.constant 0 : i32
    %27 = arith.addi %3, %c0_i32_20 : i32
    %c1_i32 = arith.constant 1 : i32
    %28 = arith.addi %27, %c1_i32 : i32
    %c0_21 = arith.constant 0 : index
    %29 = arith.index_cast %28 : i32 to index
    %c0_22 = arith.constant 0 : index
    %c0_23 = arith.constant 0 : index
    %30 = vector.load %arg2[%c0_21, %29, %c0_22, %c0_23] : memref<1x18x18x8xf32, #tpu.memory_space<vmem>>, vector<1x1x18x8xf32>
    %31 = vector.shape_cast %30 : vector<1x1x18x8xf32> to vector<18x8xf32>
    %32 = vector.extract_strided_slice %31 {offsets = [0, 0], sizes = [16, 8], strides = [1, 1]} : vector<18x8xf32> to vector<16x8xf32>
    %c1_24 = arith.constant 1 : index
    %c0_25 = arith.constant 0 : index
    %c0_26 = arith.constant 0 : index
    %c0_27 = arith.constant 0 : index
    %33 = vector.load %arg3[%c1_24, %c0_25, %c0_26, %c0_27] : memref<3x3x8x128xf32, #tpu.memory_space<vmem>>, vector<1x1x8x128xf32>
    %34 = vector.shape_cast %33 : vector<1x1x8x128xf32> to vector<8x128xf32>
    %cst_28 = arith.constant dense<0.000000e+00> : vector<16x128xf32>
    %35 = tpu.matmul %32, %34, %cst_28 {dimension_numbers = #tpu.dot_dimension_numbers<[1], [0], [0], [1], [0, 0, 1, 1], [], []>} : vector<16x8xf32>, vector<8x128xf32>, vector<16x128xf32> -> vector<16x128xf32>
    %36 = arith.addf %26, %35 : vector<16x128xf32>
    %37 = vector.extract_strided_slice %31 {offsets = [1, 0], sizes = [16, 8], strides = [1, 1]} : vector<18x8xf32> to vector<16x8xf32>
    %c1_29 = arith.constant 1 : index
    %c1_30 = arith.constant 1 : index
    %c0_31 = arith.constant 0 : index
    %c0_32 = arith.constant 0 : index
    %38 = vector.load %arg3[%c1_29, %c1_30, %c0_31, %c0_32] : memref<3x3x8x128xf32, #tpu.memory_space<vmem>>, vector<1x1x8x128xf32>
    %39 = vector.shape_cast %38 : vector<1x1x8x128xf32> to vector<8x128xf32>
    %cst_33 = arith.constant dense<0.000000e+00> : vector<16x128xf32>
    %40 = tpu.matmul %37, %39, %cst_33 {dimension_numbers = #tpu.dot_dimension_numbers<[1], [0], [0], [1], [0, 0, 1, 1], [], []>} : vector<16x8xf32>, vector<8x128xf32>, vector<16x128xf32> -> vector<16x128xf32>
    %41 = arith.addf %36, %40 : vector<16x128xf32>
    %42 = vector.extract_strided_slice %31 {offsets = [2, 0], sizes = [16, 8], strides = [1, 1]} : vector<18x8xf32> to vector<16x8xf32>
    %c1_34 = arith.constant 1 : index
    %c2_35 = arith.constant 2 : index
    %c0_36 = arith.constant 0 : index
    %c0_37 = arith.constant 0 : index
    %43 = vector.load %arg3[%c1_34, %c2_35, %c0_36, %c0_37] : memref<3x3x8x128xf32, #tpu.memory_space<vmem>>, vector<1x1x8x128xf32>
    %44 = vector.shape_cast %43 : vector<1x1x8x128xf32> to vector<8x128xf32>
    %cst_38 = arith.constant dense<0.000000e+00> : vector<16x128xf32>
    %45 = tpu.matmul %42, %44, %cst_38 {dimension_numbers = #tpu.dot_dimension_numbers<[1], [0], [0], [1], [0, 0, 1, 1], [], []>} : vector<16x8xf32>, vector<8x128xf32>, vector<16x128xf32> -> vector<16x128xf32>
    %46 = arith.addf %41, %45 : vector<16x128xf32>
    %c0_i32_39 = arith.constant 0 : i32
    %47 = arith.addi %3, %c0_i32_39 : i32
    %c2_i32 = arith.constant 2 : i32
    %48 = arith.addi %47, %c2_i32 : i32
    %c0_40 = arith.constant 0 : index
    %49 = arith.index_cast %48 : i32 to index
    %c0_41 = arith.constant 0 : index
    %c0_42 = arith.constant 0 : index
    %50 = vector.load %arg2[%c0_40, %49, %c0_41, %c0_42] : memref<1x18x18x8xf32, #tpu.memory_space<vmem>>, vector<1x1x18x8xf32>
    %51 = vector.shape_cast %50 : vector<1x1x18x8xf32> to vector<18x8xf32>
    %52 = vector.extract_strided_slice %51 {offsets = [0, 0], sizes = [16, 8], strides = [1, 1]} : vector<18x8xf32> to vector<16x8xf32>
    %c2_43 = arith.constant 2 : index
    %c0_44 = arith.constant 0 : index
    %c0_45 = arith.constant 0 : index
    %c0_46 = arith.constant 0 : index
    %53 = vector.load %arg3[%c2_43, %c0_44, %c0_45, %c0_46] : memref<3x3x8x128xf32, #tpu.memory_space<vmem>>, vector<1x1x8x128xf32>
    %54 = vector.shape_cast %53 : vector<1x1x8x128xf32> to vector<8x128xf32>
    %cst_47 = arith.constant dense<0.000000e+00> : vector<16x128xf32>
    %55 = tpu.matmul %52, %54, %cst_47 {dimension_numbers = #tpu.dot_dimension_numbers<[1], [0], [0], [1], [0, 0, 1, 1], [], []>} : vector<16x8xf32>, vector<8x128xf32>, vector<16x128xf32> -> vector<16x128xf32>
    %56 = arith.addf %46, %55 : vector<16x128xf32>
    %57 = vector.extract_strided_slice %51 {offsets = [1, 0], sizes = [16, 8], strides = [1, 1]} : vector<18x8xf32> to vector<16x8xf32>
    %c2_48 = arith.constant 2 : index
    %c1_49 = arith.constant 1 : index
    %c0_50 = arith.constant 0 : index
    %c0_51 = arith.constant 0 : index
    %58 = vector.load %arg3[%c2_48, %c1_49, %c0_50, %c0_51] : memref<3x3x8x128xf32, #tpu.memory_space<vmem>>, vector<1x1x8x128xf32>
    %59 = vector.shape_cast %58 : vector<1x1x8x128xf32> to vector<8x128xf32>
    %cst_52 = arith.constant dense<0.000000e+00> : vector<16x128xf32>
    %60 = tpu.matmul %57, %59, %cst_52 {dimension_numbers = #tpu.dot_dimension_numbers<[1], [0], [0], [1], [0, 0, 1, 1], [], []>} : vector<16x8xf32>, vector<8x128xf32>, vector<16x128xf32> -> vector<16x128xf32>
    %61 = arith.addf %56, %60 : vector<16x128xf32>
    %62 = vector.extract_strided_slice %51 {offsets = [2, 0], sizes = [16, 8], strides = [1, 1]} : vector<18x8xf32> to vector<16x8xf32>
    %c2_53 = arith.constant 2 : index
    %c2_54 = arith.constant 2 : index
    %c0_55 = arith.constant 0 : index
    %c0_56 = arith.constant 0 : index
    %63 = vector.load %arg3[%c2_53, %c2_54, %c0_55, %c0_56] : memref<3x3x8x128xf32, #tpu.memory_space<vmem>>, vector<1x1x8x128xf32>
    %64 = vector.shape_cast %63 : vector<1x1x8x128xf32> to vector<8x128xf32>
    %cst_57 = arith.constant dense<0.000000e+00> : vector<16x128xf32>
    %65 = tpu.matmul %62, %64, %cst_57 {dimension_numbers = #tpu.dot_dimension_numbers<[1], [0], [0], [1], [0, 0, 1, 1], [], []>} : vector<16x8xf32>, vector<8x128xf32>, vector<16x128xf32> -> vector<16x128xf32>
    %66 = arith.addf %61, %65 : vector<16x128xf32>
    %c0_58 = arith.constant 0 : index
    %c0_59 = arith.constant 0 : index
    %c0_60 = arith.constant 0 : index
    %c0_61 = arith.constant 0 : index
    %67 = vector.load %arg4[%c0_58, %c0_59, %c0_60, %c0_61] : memref<1x8x16x128xf32, #tpu.memory_space<vmem>>, vector<1x1x16x128xf32>
    %68 = vector.shape_cast %67 : vector<1x1x16x128xf32> to vector<16x128xf32>
    %69 = vector.shape_cast %66 : vector<16x128xf32> to vector<1x1x16x128xf32>
    tpu.vector_store %arg4[%c0_58, %c0_59, %c0_60, %c0_61], %69 {strides = array<i32>} : memref<1x8x16x128xf32, #tpu.memory_space<vmem>>, vector<1x1x16x128xf32>,
    %cst_62 = arith.constant dense<0.000000e+00> : vector<128xf32>
    %70 = vector.multi_reduction <add>, %66, %cst_62 [0] : vector<16x128xf32> to vector<128xf32>
    %71 = vector.shape_cast %70 : vector<128xf32> to vector<1x128xf32>
    %72 = arith.addf %4, %71 : vector<1x128xf32>
    %73 = arith.mulf %66, %66 : vector<16x128xf32>
    %cst_63 = arith.constant dense<0.000000e+00> : vector<128xf32>
    %74 = vector.multi_reduction <add>, %73, %cst_63 [0] : vector<16x128xf32> to vector<128xf32>
    %75 = vector.shape_cast %74 : vector<128xf32> to vector<1x128xf32>
    %76 = arith.addf %5, %75 : vector<1x128xf32>
    %cst_64 = arith.constant 0.000000e+00 : f32
    %77 = vector.broadcast %cst_64 : f32 to vector<16x128xf32>
    %c1_i32_65 = arith.constant 1 : i32
    %78 = arith.addi %3, %c1_i32_65 : i32
    %c0_i32_66 = arith.constant 0 : i32
    %79 = arith.addi %78, %c0_i32_66 : i32
    %c0_67 = arith.constant 0 : index
    %80 = arith.index_cast %79 : i32 to index
    %c0_68 = arith.constant 0 : index
    %c0_69 = arith.constant 0 : index
    %81 = vector.load %arg2[%c0_67, %80, %c0_68, %c0_69] : memref<1x18x18x8xf32, #tpu.memory_space<vmem>>, vector<1x1x18x8xf32>
    %82 = vector.shape_cast %81 : vector<1x1x18x8xf32> to vector<18x8xf32>
    %83 = vector.extract_strided_slice %82 {offsets = [0, 0], sizes = [16, 8], strides = [1, 1]} : vector<18x8xf32> to vector<16x8xf32>
    %c0_70 = arith.constant 0 : index
    %c0_71 = arith.constant 0 : index
    %c0_72 = arith.constant 0 : index
    %c0_73 = arith.constant 0 : index
    %84 = vector.load %arg3[%c0_70, %c0_71, %c0_72, %c0_73] : memref<3x3x8x128xf32, #tpu.memory_space<vmem>>, vector<1x1x8x128xf32>
    %85 = vector.shape_cast %84 : vector<1x1x8x128xf32> to vector<8x128xf32>
    %cst_74 = arith.constant dense<0.000000e+00> : vector<16x128xf32>
    %86 = tpu.matmul %83, %85, %cst_74 {dimension_numbers = #tpu.dot_dimension_numbers<[1], [0], [0], [1], [0, 0, 1, 1], [], []>} : vector<16x8xf32>, vector<8x128xf32>, vector<16x128xf32> -> vector<16x128xf32>
    %87 = arith.addf %77, %86 : vector<16x128xf32>
    %88 = vector.extract_strided_slice %82 {offsets = [1, 0], sizes = [16, 8], strides = [1, 1]} : vector<18x8xf32> to vector<16x8xf32>
    %c0_75 = arith.constant 0 : index
    %c1_76 = arith.constant 1 : index
    %c0_77 = arith.constant 0 : index
    %c0_78 = arith.constant 0 : index
    %89 = vector.load %arg3[%c0_75, %c1_76, %c0_77, %c0_78] : memref<3x3x8x128xf32, #tpu.memory_space<vmem>>, vector<1x1x8x128xf32>
    %90 = vector.shape_cast %89 : vector<1x1x8x128xf32> to vector<8x128xf32>
    %cst_79 = arith.constant dense<0.000000e+00> : vector<16x128xf32>
    %91 = tpu.matmul %88, %90, %cst_79 {dimension_numbers = #tpu.dot_dimension_numbers<[1], [0], [0], [1], [0, 0, 1, 1], [], []>} : vector<16x8xf32>, vector<8x128xf32>, vector<16x128xf32> -> vector<16x128xf32>
    %92 = arith.addf %87, %91 : vector<16x128xf32>
    %93 = vector.extract_strided_slice %82 {offsets = [2, 0], sizes = [16, 8], strides = [1, 1]} : vector<18x8xf32> to vector<16x8xf32>
    %c0_80 = arith.constant 0 : index
    %c2_81 = arith.constant 2 : index
    %c0_82 = arith.constant 0 : index
    %c0_83 = arith.constant 0 : index
    %94 = vector.load %arg3[%c0_80, %c2_81, %c0_82, %c0_83] : memref<3x3x8x128xf32, #tpu.memory_space<vmem>>, vector<1x1x8x128xf32>
    %95 = vector.shape_cast %94 : vector<1x1x8x128xf32> to vector<8x128xf32>
    %cst_84 = arith.constant dense<0.000000e+00> : vector<16x128xf32>
    %96 = tpu.matmul %93, %95, %cst_84 {dimension_numbers = #tpu.dot_dimension_numbers<[1], [0], [0], [1], [0, 0, 1, 1], [], []>} : vector<16x8xf32>, vector<8x128xf32>, vector<16x128xf32> -> vector<16x128xf32>
    %97 = arith.addf %92, %96 : vector<16x128xf32>
    %c1_i32_85 = arith.constant 1 : i32
    %98 = arith.addi %3, %c1_i32_85 : i32
    %c1_i32_86 = arith.constant 1 : i32
    %99 = arith.addi %98, %c1_i32_86 : i32
    %c0_87 = arith.constant 0 : index
    %100 = arith.index_cast %99 : i32 to index
    %c0_88 = arith.constant 0 : index
    %c0_89 = arith.constant 0 : index
    %101 = vector.load %arg2[%c0_87, %100, %c0_88, %c0_89] : memref<1x18x18x8xf32, #tpu.memory_space<vmem>>, vector<1x1x18x8xf32>
    %102 = vector.shape_cast %101 : vector<1x1x18x8xf32> to vector<18x8xf32>
    %103 = vector.extract_strided_slice %102 {offsets = [0, 0], sizes = [16, 8], strides = [1, 1]} : vector<18x8xf32> to vector<16x8xf32>
    %c1_90 = arith.constant 1 : index
    %c0_91 = arith.constant 0 : index
    %c0_92 = arith.constant 0 : index
    %c0_93 = arith.constant 0 : index
    %104 = vector.load %arg3[%c1_90, %c0_91, %c0_92, %c0_93] : memref<3x3x8x128xf32, #tpu.memory_space<vmem>>, vector<1x1x8x128xf32>
    %105 = vector.shape_cast %104 : vector<1x1x8x128xf32> to vector<8x128xf32>
    %cst_94 = arith.constant dense<0.000000e+00> : vector<16x128xf32>
    %106 = tpu.matmul %103, %105, %cst_94 {dimension_numbers = #tpu.dot_dimension_numbers<[1], [0], [0], [1], [0, 0, 1, 1], [], []>} : vector<16x8xf32>, vector<8x128xf32>, vector<16x128xf32> -> vector<16x128xf32>
    %107 = arith.addf %97, %106 : vector<16x128xf32>
    %108 = vector.extract_strided_slice %102 {offsets = [1, 0], sizes = [16, 8], strides = [1, 1]} : vector<18x8xf32> to vector<16x8xf32>
    %c1_95 = arith.constant 1 : index
    %c1_96 = arith.constant 1 : index
    %c0_97 = arith.constant 0 : index
    %c0_98 = arith.constant 0 : index
    %109 = vector.load %arg3[%c1_95, %c1_96, %c0_97, %c0_98] : memref<3x3x8x128xf32, #tpu.memory_space<vmem>>, vector<1x1x8x128xf32>
    %110 = vector.shape_cast %109 : vector<1x1x8x128xf32> to vector<8x128xf32>
    %cst_99 = arith.constant dense<0.000000e+00> : vector<16x128xf32>
    %111 = tpu.matmul %108, %110, %cst_99 {dimension_numbers = #tpu.dot_dimension_numbers<[1], [0], [0], [1], [0, 0, 1, 1], [], []>} : vector<16x8xf32>, vector<8x128xf32>, vector<16x128xf32> -> vector<16x128xf32>
    %112 = arith.addf %107, %111 : vector<16x128xf32>
    %113 = vector.extract_strided_slice %102 {offsets = [2, 0], sizes = [16, 8], strides = [1, 1]} : vector<18x8xf32> to vector<16x8xf32>
    %c1_100 = arith.constant 1 : index
    %c2_101 = arith.constant 2 : index
    %c0_102 = arith.constant 0 : index
    %c0_103 = arith.constant 0 : index
    %114 = vector.load %arg3[%c1_100, %c2_101, %c0_102, %c0_103] : memref<3x3x8x128xf32, #tpu.memory_space<vmem>>, vector<1x1x8x128xf32>
    %115 = vector.shape_cast %114 : vector<1x1x8x128xf32> to vector<8x128xf32>
    %cst_104 = arith.constant dense<0.000000e+00> : vector<16x128xf32>
    %116 = tpu.matmul %113, %115, %cst_104 {dimension_numbers = #tpu.dot_dimension_numbers<[1], [0], [0], [1], [0, 0, 1, 1], [], []>} : vector<16x8xf32>, vector<8x128xf32>, vector<16x128xf32> -> vector<16x128xf32>
    %117 = arith.addf %112, %116 : vector<16x128xf32>
    %c1_i32_105 = arith.constant 1 : i32
    %118 = arith.addi %3, %c1_i32_105 : i32
    %c2_i32_106 = arith.constant 2 : i32
    %119 = arith.addi %118, %c2_i32_106 : i32
    %c0_107 = arith.constant 0 : index
    %120 = arith.index_cast %119 : i32 to index
    %c0_108 = arith.constant 0 : index
    %c0_109 = arith.constant 0 : index
    %121 = vector.load %arg2[%c0_107, %120, %c0_108, %c0_109] : memref<1x18x18x8xf32, #tpu.memory_space<vmem>>, vector<1x1x18x8xf32>
    %122 = vector.shape_cast %121 : vector<1x1x18x8xf32> to vector<18x8xf32>
    %123 = vector.extract_strided_slice %122 {offsets = [0, 0], sizes = [16, 8], strides = [1, 1]} : vector<18x8xf32> to vector<16x8xf32>
    %c2_110 = arith.constant 2 : index
    %c0_111 = arith.constant 0 : index
    %c0_112 = arith.constant 0 : index
    %c0_113 = arith.constant 0 : index
    %124 = vector.load %arg3[%c2_110, %c0_111, %c0_112, %c0_113] : memref<3x3x8x128xf32, #tpu.memory_space<vmem>>, vector<1x1x8x128xf32>
    %125 = vector.shape_cast %124 : vector<1x1x8x128xf32> to vector<8x128xf32>
    %cst_114 = arith.constant dense<0.000000e+00> : vector<16x128xf32>
    %126 = tpu.matmul %123, %125, %cst_114 {dimension_numbers = #tpu.dot_dimension_numbers<[1], [0], [0], [1], [0, 0, 1, 1], [], []>} : vector<16x8xf32>, vector<8x128xf32>, vector<16x128xf32> -> vector<16x128xf32>
    %127 = arith.addf %117, %126 : vector<16x128xf32>
    %128 = vector.extract_strided_slice %122 {offsets = [1, 0], sizes = [16, 8], strides = [1, 1]} : vector<18x8xf32> to vector<16x8xf32>
    %c2_115 = arith.constant 2 : index
    %c1_116 = arith.constant 1 : index
    %c0_117 = arith.constant 0 : index
    %c0_118 = arith.constant 0 : index
    %129 = vector.load %arg3[%c2_115, %c1_116, %c0_117, %c0_118] : memref<3x3x8x128xf32, #tpu.memory_space<vmem>>, vector<1x1x8x128xf32>
    %130 = vector.shape_cast %129 : vector<1x1x8x128xf32> to vector<8x128xf32>
    %cst_119 = arith.constant dense<0.000000e+00> : vector<16x128xf32>
    %131 = tpu.matmul %128, %130, %cst_119 {dimension_numbers = #tpu.dot_dimension_numbers<[1], [0], [0], [1], [0, 0, 1, 1], [], []>} : vector<16x8xf32>, vector<8x128xf32>, vector<16x128xf32> -> vector<16x128xf32>
    %132 = arith.addf %127, %131 : vector<16x128xf32>
    %133 = vector.extract_strided_slice %122 {offsets = [2, 0], sizes = [16, 8], strides = [1, 1]} : vector<18x8xf32> to vector<16x8xf32>
    %c2_120 = arith.constant 2 : index
    %c2_121 = arith.constant 2 : index
    %c0_122 = arith.constant 0 : index
    %c0_123 = arith.constant 0 : index
    %134 = vector.load %arg3[%c2_120, %c2_121, %c0_122, %c0_123] : memref<3x3x8x128xf32, #tpu.memory_space<vmem>>, vector<1x1x8x128xf32>
    %135 = vector.shape_cast %134 : vector<1x1x8x128xf32> to vector<8x128xf32>
    %cst_124 = arith.constant dense<0.000000e+00> : vector<16x128xf32>
    %136 = tpu.matmul %133, %135, %cst_124 {dimension_numbers = #tpu.dot_dimension_numbers<[1], [0], [0], [1], [0, 0, 1, 1], [], []>} : vector<16x8xf32>, vector<8x128xf32>, vector<16x128xf32> -> vector<16x128xf32>
    %137 = arith.addf %132, %136 : vector<16x128xf32>
    %c0_125 = arith.constant 0 : index
    %c1_126 = arith.constant 1 : index
    %c0_127 = arith.constant 0 : index
    %c0_128 = arith.constant 0 : index
    %138 = vector.load %arg4[%c0_125, %c1_126, %c0_127, %c0_128] : memref<1x8x16x128xf32, #tpu.memory_space<vmem>>, vector<1x1x16x128xf32>
    %139 = vector.shape_cast %138 : vector<1x1x16x128xf32> to vector<16x128xf32>
    %140 = vector.shape_cast %137 : vector<16x128xf32> to vector<1x1x16x128xf32>
    tpu.vector_store %arg4[%c0_125, %c1_126, %c0_127, %c0_128], %140 {strides = array<i32>} : memref<1x8x16x128xf32, #tpu.memory_space<vmem>>, vector<1x1x16x128xf32>,
    %cst_129 = arith.constant dense<0.000000e+00> : vector<128xf32>
    %141 = vector.multi_reduction <add>, %137, %cst_129 [0] : vector<16x128xf32> to vector<128xf32>
    %142 = vector.shape_cast %141 : vector<128xf32> to vector<1x128xf32>
    %143 = arith.addf %72, %142 : vector<1x128xf32>
    %144 = arith.mulf %137, %137 : vector<16x128xf32>
    %cst_130 = arith.constant dense<0.000000e+00> : vector<128xf32>
    %145 = vector.multi_reduction <add>, %144, %cst_130 [0] : vector<16x128xf32> to vector<128xf32>
    %146 = vector.shape_cast %145 : vector<128xf32> to vector<1x128xf32>
    %147 = arith.addf %76, %146 : vector<1x128xf32>
    %cst_131 = arith.constant 0.000000e+00 : f32
    %148 = vector.broadcast %cst_131 : f32 to vector<16x128xf32>
    %c2_i32_132 = arith.constant 2 : i32
    %149 = arith.addi %3, %c2_i32_132 : i32
    %c0_i32_133 = arith.constant 0 : i32
    %150 = arith.addi %149, %c0_i32_133 : i32
    %c0_134 = arith.constant 0 : index
    %151 = arith.index_cast %150 : i32 to index
    %c0_135 = arith.constant 0 : index
    %c0_136 = arith.constant 0 : index
    %152 = vector.load %arg2[%c0_134, %151, %c0_135, %c0_136] : memref<1x18x18x8xf32, #tpu.memory_space<vmem>>, vector<1x1x18x8xf32>
    %153 = vector.shape_cast %152 : vector<1x1x18x8xf32> to vector<18x8xf32>
    %154 = vector.extract_strided_slice %153 {offsets = [0, 0], sizes = [16, 8], strides = [1, 1]} : vector<18x8xf32> to vector<16x8xf32>
    %c0_137 = arith.constant 0 : index
    %c0_138 = arith.constant 0 : index
    %c0_139 = arith.constant 0 : index
    %c0_140 = arith.constant 0 : index
    %155 = vector.load %arg3[%c0_137, %c0_138, %c0_139, %c0_140] : memref<3x3x8x128xf32, #tpu.memory_space<vmem>>, vector<1x1x8x128xf32>
    %156 = vector.shape_cast %155 : vector<1x1x8x128xf32> to vector<8x128xf32>
    %cst_141 = arith.constant dense<0.000000e+00> : vector<16x128xf32>
    %157 = tpu.matmul %154, %156, %cst_141 {dimension_numbers = #tpu.dot_dimension_numbers<[1], [0], [0], [1], [0, 0, 1, 1], [], []>} : vector<16x8xf32>, vector<8x128xf32>, vector<16x128xf32> -> vector<16x128xf32>
    %158 = arith.addf %148, %157 : vector<16x128xf32>
    %159 = vector.extract_strided_slice %153 {offsets = [1, 0], sizes = [16, 8], strides = [1, 1]} : vector<18x8xf32> to vector<16x8xf32>
    %c0_142 = arith.constant 0 : index
    %c1_143 = arith.constant 1 : index
    %c0_144 = arith.constant 0 : index
    %c0_145 = arith.constant 0 : index
    %160 = vector.load %arg3[%c0_142, %c1_143, %c0_144, %c0_145] : memref<3x3x8x128xf32, #tpu.memory_space<vmem>>, vector<1x1x8x128xf32>
    %161 = vector.shape_cast %160 : vector<1x1x8x128xf32> to vector<8x128xf32>
    %cst_146 = arith.constant dense<0.000000e+00> : vector<16x128xf32>
    %162 = tpu.matmul %159, %161, %cst_146 {dimension_numbers = #tpu.dot_dimension_numbers<[1], [0], [0], [1], [0, 0, 1, 1], [], []>} : vector<16x8xf32>, vector<8x128xf32>, vector<16x128xf32> -> vector<16x128xf32>
    %163 = arith.addf %158, %162 : vector<16x128xf32>
    %164 = vector.extract_strided_slice %153 {offsets = [2, 0], sizes = [16, 8], strides = [1, 1]} : vector<18x8xf32> to vector<16x8xf32>
    %c0_147 = arith.constant 0 : index
    %c2_148 = arith.constant 2 : index
    %c0_149 = arith.constant 0 : index
    %c0_150 = arith.constant 0 : index
    %165 = vector.load %arg3[%c0_147, %c2_148, %c0_149, %c0_150] : memref<3x3x8x128xf32, #tpu.memory_space<vmem>>, vector<1x1x8x128xf32>
    %166 = vector.shape_cast %165 : vector<1x1x8x128xf32> to vector<8x128xf32>
    %cst_151 = arith.constant dense<0.000000e+00> : vector<16x128xf32>
    %167 = tpu.matmul %164, %166, %cst_151 {dimension_numbers = #tpu.dot_dimension_numbers<[1], [0], [0], [1], [0, 0, 1, 1], [], []>} : vector<16x8xf32>, vector<8x128xf32>, vector<16x128xf32> -> vector<16x128xf32>
    %168 = arith.addf %163, %167 : vector<16x128xf32>
    %c2_i32_152 = arith.constant 2 : i32
    %169 = arith.addi %3, %c2_i32_152 : i32
    %c1_i32_153 = arith.constant 1 : i32
    %170 = arith.addi %169, %c1_i32_153 : i32
    %c0_154 = arith.constant 0 : index
    %171 = arith.index_cast %170 : i32 to index
    %c0_155 = arith.constant 0 : index
    %c0_156 = arith.constant 0 : index
    %172 = vector.load %arg2[%c0_154, %171, %c0_155, %c0_156] : memref<1x18x18x8xf32, #tpu.memory_space<vmem>>, vector<1x1x18x8xf32>
    %173 = vector.shape_cast %172 : vector<1x1x18x8xf32> to vector<18x8xf32>
    %174 = vector.extract_strided_slice %173 {offsets = [0, 0], sizes = [16, 8], strides = [1, 1]} : vector<18x8xf32> to vector<16x8xf32>
    %c1_157 = arith.constant 1 : index
    %c0_158 = arith.constant 0 : index
    %c0_159 = arith.constant 0 : index
    %c0_160 = arith.constant 0 : index
    %175 = vector.load %arg3[%c1_157, %c0_158, %c0_159, %c0_160] : memref<3x3x8x128xf32, #tpu.memory_space<vmem>>, vector<1x1x8x128xf32>
    %176 = vector.shape_cast %175 : vector<1x1x8x128xf32> to vector<8x128xf32>
    %cst_161 = arith.constant dense<0.000000e+00> : vector<16x128xf32>
    %177 = tpu.matmul %174, %176, %cst_161 {dimension_numbers = #tpu.dot_dimension_numbers<[1], [0], [0], [1], [0, 0, 1, 1], [], []>} : vector<16x8xf32>, vector<8x128xf32>, vector<16x128xf32> -> vector<16x128xf32>
    %178 = arith.addf %168, %177 : vector<16x128xf32>
    %179 = vector.extract_strided_slice %173 {offsets = [1, 0], sizes = [16, 8], strides = [1, 1]} : vector<18x8xf32> to vector<16x8xf32>
    %c1_162 = arith.constant 1 : index
    %c1_163 = arith.constant 1 : index
    %c0_164 = arith.constant 0 : index
    %c0_165 = arith.constant 0 : index
    %180 = vector.load %arg3[%c1_162, %c1_163, %c0_164, %c0_165] : memref<3x3x8x128xf32, #tpu.memory_space<vmem>>, vector<1x1x8x128xf32>
    %181 = vector.shape_cast %180 : vector<1x1x8x128xf32> to vector<8x128xf32>
    %cst_166 = arith.constant dense<0.000000e+00> : vector<16x128xf32>
    %182 = tpu.matmul %179, %181, %cst_166 {dimension_numbers = #tpu.dot_dimension_numbers<[1], [0], [0], [1], [0, 0, 1, 1], [], []>} : vector<16x8xf32>, vector<8x128xf32>, vector<16x128xf32> -> vector<16x128xf32>
    %183 = arith.addf %178, %182 : vector<16x128xf32>
    %184 = vector.extract_strided_slice %173 {offsets = [2, 0], sizes = [16, 8], strides = [1, 1]} : vector<18x8xf32> to vector<16x8xf32>
    %c1_167 = arith.constant 1 : index
    %c2_168 = arith.constant 2 : index
    %c0_169 = arith.constant 0 : index
    %c0_170 = arith.constant 0 : index
    %185 = vector.load %arg3[%c1_167, %c2_168, %c0_169, %c0_170] : memref<3x3x8x128xf32, #tpu.memory_space<vmem>>, vector<1x1x8x128xf32>
    %186 = vector.shape_cast %185 : vector<1x1x8x128xf32> to vector<8x128xf32>
    %cst_171 = arith.constant dense<0.000000e+00> : vector<16x128xf32>
    %187 = tpu.matmul %184, %186, %cst_171 {dimension_numbers = #tpu.dot_dimension_numbers<[1], [0], [0], [1], [0, 0, 1, 1], [], []>} : vector<16x8xf32>, vector<8x128xf32>, vector<16x128xf32> -> vector<16x128xf32>
    %188 = arith.addf %183, %187 : vector<16x128xf32>
    %c2_i32_172 = arith.constant 2 : i32
    %189 = arith.addi %3, %c2_i32_172 : i32
    %c2_i32_173 = arith.constant 2 : i32
    %190 = arith.addi %189, %c2_i32_173 : i32
    %c0_174 = arith.constant 0 : index
    %191 = arith.index_cast %190 : i32 to index
    %c0_175 = arith.constant 0 : index
    %c0_176 = arith.constant 0 : index
    %192 = vector.load %arg2[%c0_174, %191, %c0_175, %c0_176] : memref<1x18x18x8xf32, #tpu.memory_space<vmem>>, vector<1x1x18x8xf32>
    %193 = vector.shape_cast %192 : vector<1x1x18x8xf32> to vector<18x8xf32>
    %194 = vector.extract_strided_slice %193 {offsets = [0, 0], sizes = [16, 8], strides = [1, 1]} : vector<18x8xf32> to vector<16x8xf32>
    %c2_177 = arith.constant 2 : index
    %c0_178 = arith.constant 0 : index
    %c0_179 = arith.constant 0 : index
    %c0_180 = arith.constant 0 : index
    %195 = vector.load %arg3[%c2_177, %c0_178, %c0_179, %c0_180] : memref<3x3x8x128xf32, #tpu.memory_space<vmem>>, vector<1x1x8x128xf32>
    %196 = vector.shape_cast %195 : vector<1x1x8x128xf32> to vector<8x128xf32>
    %cst_181 = arith.constant dense<0.000000e+00> : vector<16x128xf32>
    %197 = tpu.matmul %194, %196, %cst_181 {dimension_numbers = #tpu.dot_dimension_numbers<[1], [0], [0], [1], [0, 0, 1, 1], [], []>} : vector<16x8xf32>, vector<8x128xf32>, vector<16x128xf32> -> vector<16x128xf32>
    %198 = arith.addf %188, %197 : vector<16x128xf32>
    %199 = vector.extract_strided_slice %193 {offsets = [1, 0], sizes = [16, 8], strides = [1, 1]} : vector<18x8xf32> to vector<16x8xf32>
    %c2_182 = arith.constant 2 : index
    %c1_183 = arith.constant 1 : index
    %c0_184 = arith.constant 0 : index
    %c0_185 = arith.constant 0 : index
    %200 = vector.load %arg3[%c2_182, %c1_183, %c0_184, %c0_185] : memref<3x3x8x128xf32, #tpu.memory_space<vmem>>, vector<1x1x8x128xf32>
    %201 = vector.shape_cast %200 : vector<1x1x8x128xf32> to vector<8x128xf32>
    %cst_186 = arith.constant dense<0.000000e+00> : vector<16x128xf32>
    %202 = tpu.matmul %199, %201, %cst_186 {dimension_numbers = #tpu.dot_dimension_numbers<[1], [0], [0], [1], [0, 0, 1, 1], [], []>} : vector<16x8xf32>, vector<8x128xf32>, vector<16x128xf32> -> vector<16x128xf32>
    %203 = arith.addf %198, %202 : vector<16x128xf32>
    %204 = vector.extract_strided_slice %193 {offsets = [2, 0], sizes = [16, 8], strides = [1, 1]} : vector<18x8xf32> to vector<16x8xf32>
    %c2_187 = arith.constant 2 : index
    %c2_188 = arith.constant 2 : index
    %c0_189 = arith.constant 0 : index
    %c0_190 = arith.constant 0 : index
    %205 = vector.load %arg3[%c2_187, %c2_188, %c0_189, %c0_190] : memref<3x3x8x128xf32, #tpu.memory_space<vmem>>, vector<1x1x8x128xf32>
    %206 = vector.shape_cast %205 : vector<1x1x8x128xf32> to vector<8x128xf32>
    %cst_191 = arith.constant dense<0.000000e+00> : vector<16x128xf32>
    %207 = tpu.matmul %204, %206, %cst_191 {dimension_numbers = #tpu.dot_dimension_numbers<[1], [0], [0], [1], [0, 0, 1, 1], [], []>} : vector<16x8xf32>, vector<8x128xf32>, vector<16x128xf32> -> vector<16x128xf32>
    %208 = arith.addf %203, %207 : vector<16x128xf32>
    %c0_192 = arith.constant 0 : index
    %c2_193 = arith.constant 2 : index
    %c0_194 = arith.constant 0 : index
    %c0_195 = arith.constant 0 : index
    %209 = vector.load %arg4[%c0_192, %c2_193, %c0_194, %c0_195] : memref<1x8x16x128xf32, #tpu.memory_space<vmem>>, vector<1x1x16x128xf32>
    %210 = vector.shape_cast %209 : vector<1x1x16x128xf32> to vector<16x128xf32>
    %211 = vector.shape_cast %208 : vector<16x128xf32> to vector<1x1x16x128xf32>
    tpu.vector_store %arg4[%c0_192, %c2_193, %c0_194, %c0_195], %211 {strides = array<i32>} : memref<1x8x16x128xf32, #tpu.memory_space<vmem>>, vector<1x1x16x128xf32>,
    %cst_196 = arith.constant dense<0.000000e+00> : vector<128xf32>
    %212 = vector.multi_reduction <add>, %208, %cst_196 [0] : vector<16x128xf32> to vector<128xf32>
    %213 = vector.shape_cast %212 : vector<128xf32> to vector<1x128xf32>
    %214 = arith.addf %143, %213 : vector<1x128xf32>
    %215 = arith.mulf %208, %208 : vector<16x128xf32>
    %cst_197 = arith.constant dense<0.000000e+00> : vector<128xf32>
    %216 = vector.multi_reduction <add>, %215, %cst_197 [0] : vector<16x128xf32> to vector<128xf32>
    %217 = vector.shape_cast %216 : vector<128xf32> to vector<1x128xf32>
    %218 = arith.addf %147, %217 : vector<1x128xf32>
    %cst_198 = arith.constant 0.000000e+00 : f32
    %219 = vector.broadcast %cst_198 : f32 to vector<16x128xf32>
    %c3_i32 = arith.constant 3 : i32
    %220 = arith.addi %3, %c3_i32 : i32
    %c0_i32_199 = arith.constant 0 : i32
    %221 = arith.addi %220, %c0_i32_199 : i32
    %c0_200 = arith.constant 0 : index
    %222 = arith.index_cast %221 : i32 to index
    %c0_201 = arith.constant 0 : index
    %c0_202 = arith.constant 0 : index
    %223 = vector.load %arg2[%c0_200, %222, %c0_201, %c0_202] : memref<1x18x18x8xf32, #tpu.memory_space<vmem>>, vector<1x1x18x8xf32>
    %224 = vector.shape_cast %223 : vector<1x1x18x8xf32> to vector<18x8xf32>
    %225 = vector.extract_strided_slice %224 {offsets = [0, 0], sizes = [16, 8], strides = [1, 1]} : vector<18x8xf32> to vector<16x8xf32>
    %c0_203 = arith.constant 0 : index
    %c0_204 = arith.constant 0 : index
    %c0_205 = arith.constant 0 : index
    %c0_206 = arith.constant 0 : index
    %226 = vector.load %arg3[%c0_203, %c0_204, %c0_205, %c0_206] : memref<3x3x8x128xf32, #tpu.memory_space<vmem>>, vector<1x1x8x128xf32>
    %227 = vector.shape_cast %226 : vector<1x1x8x128xf32> to vector<8x128xf32>
    %cst_207 = arith.constant dense<0.000000e+00> : vector<16x128xf32>
    %228 = tpu.matmul %225, %227, %cst_207 {dimension_numbers = #tpu.dot_dimension_numbers<[1], [0], [0], [1], [0, 0, 1, 1], [], []>} : vector<16x8xf32>, vector<8x128xf32>, vector<16x128xf32> -> vector<16x128xf32>
    %229 = arith.addf %219, %228 : vector<16x128xf32>
    %230 = vector.extract_strided_slice %224 {offsets = [1, 0], sizes = [16, 8], strides = [1, 1]} : vector<18x8xf32> to vector<16x8xf32>
    %c0_208 = arith.constant 0 : index
    %c1_209 = arith.constant 1 : index
    %c0_210 = arith.constant 0 : index
    %c0_211 = arith.constant 0 : index
    %231 = vector.load %arg3[%c0_208, %c1_209, %c0_210, %c0_211] : memref<3x3x8x128xf32, #tpu.memory_space<vmem>>, vector<1x1x8x128xf32>
    %232 = vector.shape_cast %231 : vector<1x1x8x128xf32> to vector<8x128xf32>
    %cst_212 = arith.constant dense<0.000000e+00> : vector<16x128xf32>
    %233 = tpu.matmul %230, %232, %cst_212 {dimension_numbers = #tpu.dot_dimension_numbers<[1], [0], [0], [1], [0, 0, 1, 1], [], []>} : vector<16x8xf32>, vector<8x128xf32>, vector<16x128xf32> -> vector<16x128xf32>
    %234 = arith.addf %229, %233 : vector<16x128xf32>
    %235 = vector.extract_strided_slice %224 {offsets = [2, 0], sizes = [16, 8], strides = [1, 1]} : vector<18x8xf32> to vector<16x8xf32>
    %c0_213 = arith.constant 0 : index
    %c2_214 = arith.constant 2 : index
    %c0_215 = arith.constant 0 : index
    %c0_216 = arith.constant 0 : index
    %236 = vector.load %arg3[%c0_213, %c2_214, %c0_215, %c0_216] : memref<3x3x8x128xf32, #tpu.memory_space<vmem>>, vector<1x1x8x128xf32>
    %237 = vector.shape_cast %236 : vector<1x1x8x128xf32> to vector<8x128xf32>
    %cst_217 = arith.constant dense<0.000000e+00> : vector<16x128xf32>
    %238 = tpu.matmul %235, %237, %cst_217 {dimension_numbers = #tpu.dot_dimension_numbers<[1], [0], [0], [1], [0, 0, 1, 1], [], []>} : vector<16x8xf32>, vector<8x128xf32>, vector<16x128xf32> -> vector<16x128xf32>
    %239 = arith.addf %234, %238 : vector<16x128xf32>
    %c3_i32_218 = arith.constant 3 : i32
    %240 = arith.addi %3, %c3_i32_218 : i32
    %c1_i32_219 = arith.constant 1 : i32
    %241 = arith.addi %240, %c1_i32_219 : i32
    %c0_220 = arith.constant 0 : index
    %242 = arith.index_cast %241 : i32 to index
    %c0_221 = arith.constant 0 : index
    %c0_222 = arith.constant 0 : index
    %243 = vector.load %arg2[%c0_220, %242, %c0_221, %c0_222] : memref<1x18x18x8xf32, #tpu.memory_space<vmem>>, vector<1x1x18x8xf32>
    %244 = vector.shape_cast %243 : vector<1x1x18x8xf32> to vector<18x8xf32>
    %245 = vector.extract_strided_slice %244 {offsets = [0, 0], sizes = [16, 8], strides = [1, 1]} : vector<18x8xf32> to vector<16x8xf32>
    %c1_223 = arith.constant 1 : index
    %c0_224 = arith.constant 0 : index
    %c0_225 = arith.constant 0 : index
    %c0_226 = arith.constant 0 : index
    %246 = vector.load %arg3[%c1_223, %c0_224, %c0_225, %c0_226] : memref<3x3x8x128xf32, #tpu.memory_space<vmem>>, vector<1x1x8x128xf32>
    %247 = vector.shape_cast %246 : vector<1x1x8x128xf32> to vector<8x128xf32>
    %cst_227 = arith.constant dense<0.000000e+00> : vector<16x128xf32>
    %248 = tpu.matmul %245, %247, %cst_227 {dimension_numbers = #tpu.dot_dimension_numbers<[1], [0], [0], [1], [0, 0, 1, 1], [], []>} : vector<16x8xf32>, vector<8x128xf32>, vector<16x128xf32> -> vector<16x128xf32>
    %249 = arith.addf %239, %248 : vector<16x128xf32>
    %250 = vector.extract_strided_slice %244 {offsets = [1, 0], sizes = [16, 8], strides = [1, 1]} : vector<18x8xf32> to vector<16x8xf32>
    %c1_228 = arith.constant 1 : index
    %c1_229 = arith.constant 1 : index
    %c0_230 = arith.constant 0 : index
    %c0_231 = arith.constant 0 : index
    %251 = vector.load %arg3[%c1_228, %c1_229, %c0_230, %c0_231] : memref<3x3x8x128xf32, #tpu.memory_space<vmem>>, vector<1x1x8x128xf32>
    %252 = vector.shape_cast %251 : vector<1x1x8x128xf32> to vector<8x128xf32>
    %cst_232 = arith.constant dense<0.000000e+00> : vector<16x128xf32>
    %253 = tpu.matmul %250, %252, %cst_232 {dimension_numbers = #tpu.dot_dimension_numbers<[1], [0], [0], [1], [0, 0, 1, 1], [], []>} : vector<16x8xf32>, vector<8x128xf32>, vector<16x128xf32> -> vector<16x128xf32>
    %254 = arith.addf %249, %253 : vector<16x128xf32>
    %255 = vector.extract_strided_slice %244 {offsets = [2, 0], sizes = [16, 8], strides = [1, 1]} : vector<18x8xf32> to vector<16x8xf32>
    %c1_233 = arith.constant 1 : index
    %c2_234 = arith.constant 2 : index
    %c0_235 = arith.constant 0 : index
    %c0_236 = arith.constant 0 : index
    %256 = vector.load %arg3[%c1_233, %c2_234, %c0_235, %c0_236] : memref<3x3x8x128xf32, #tpu.memory_space<vmem>>, vector<1x1x8x128xf32>
    %257 = vector.shape_cast %256 : vector<1x1x8x128xf32> to vector<8x128xf32>
    %cst_237 = arith.constant dense<0.000000e+00> : vector<16x128xf32>
    %258 = tpu.matmul %255, %257, %cst_237 {dimension_numbers = #tpu.dot_dimension_numbers<[1], [0], [0], [1], [0, 0, 1, 1], [], []>} : vector<16x8xf32>, vector<8x128xf32>, vector<16x128xf32> -> vector<16x128xf32>
    %259 = arith.addf %254, %258 : vector<16x128xf32>
    %c3_i32_238 = arith.constant 3 : i32
    %260 = arith.addi %3, %c3_i32_238 : i32
    %c2_i32_239 = arith.constant 2 : i32
    %261 = arith.addi %260, %c2_i32_239 : i32
    %c0_240 = arith.constant 0 : index
    %262 = arith.index_cast %261 : i32 to index
    %c0_241 = arith.constant 0 : index
    %c0_242 = arith.constant 0 : index
    %263 = vector.load %arg2[%c0_240, %262, %c0_241, %c0_242] : memref<1x18x18x8xf32, #tpu.memory_space<vmem>>, vector<1x1x18x8xf32>
    %264 = vector.shape_cast %263 : vector<1x1x18x8xf32> to vector<18x8xf32>
    %265 = vector.extract_strided_slice %264 {offsets = [0, 0], sizes = [16, 8], strides = [1, 1]} : vector<18x8xf32> to vector<16x8xf32>
    %c2_243 = arith.constant 2 : index
    %c0_244 = arith.constant 0 : index
    %c0_245 = arith.constant 0 : index
    %c0_246 = arith.constant 0 : index
    %266 = vector.load %arg3[%c2_243, %c0_244, %c0_245, %c0_246] : memref<3x3x8x128xf32, #tpu.memory_space<vmem>>, vector<1x1x8x128xf32>
    %267 = vector.shape_cast %266 : vector<1x1x8x128xf32> to vector<8x128xf32>
    %cst_247 = arith.constant dense<0.000000e+00> : vector<16x128xf32>
    %268 = tpu.matmul %265, %267, %cst_247 {dimension_numbers = #tpu.dot_dimension_numbers<[1], [0], [0], [1], [0, 0, 1, 1], [], []>} : vector<16x8xf32>, vector<8x128xf32>, vector<16x128xf32> -> vector<16x128xf32>
    %269 = arith.addf %259, %268 : vector<16x128xf32>
    %270 = vector.extract_strided_slice %264 {offsets = [1, 0], sizes = [16, 8], strides = [1, 1]} : vector<18x8xf32> to vector<16x8xf32>
    %c2_248 = arith.constant 2 : index
    %c1_249 = arith.constant 1 : index
    %c0_250 = arith.constant 0 : index
    %c0_251 = arith.constant 0 : index
    %271 = vector.load %arg3[%c2_248, %c1_249, %c0_250, %c0_251] : memref<3x3x8x128xf32, #tpu.memory_space<vmem>>, vector<1x1x8x128xf32>
    %272 = vector.shape_cast %271 : vector<1x1x8x128xf32> to vector<8x128xf32>
    %cst_252 = arith.constant dense<0.000000e+00> : vector<16x128xf32>
    %273 = tpu.matmul %270, %272, %cst_252 {dimension_numbers = #tpu.dot_dimension_numbers<[1], [0], [0], [1], [0, 0, 1, 1], [], []>} : vector<16x8xf32>, vector<8x128xf32>, vector<16x128xf32> -> vector<16x128xf32>
    %274 = arith.addf %269, %273 : vector<16x128xf32>
    %275 = vector.extract_strided_slice %264 {offsets = [2, 0], sizes = [16, 8], strides = [1, 1]} : vector<18x8xf32> to vector<16x8xf32>
    %c2_253 = arith.constant 2 : index
    %c2_254 = arith.constant 2 : index
    %c0_255 = arith.constant 0 : index
    %c0_256 = arith.constant 0 : index
    %276 = vector.load %arg3[%c2_253, %c2_254, %c0_255, %c0_256] : memref<3x3x8x128xf32, #tpu.memory_space<vmem>>, vector<1x1x8x128xf32>
    %277 = vector.shape_cast %276 : vector<1x1x8x128xf32> to vector<8x128xf32>
    %cst_257 = arith.constant dense<0.000000e+00> : vector<16x128xf32>
    %278 = tpu.matmul %275, %277, %cst_257 {dimension_numbers = #tpu.dot_dimension_numbers<[1], [0], [0], [1], [0, 0, 1, 1], [], []>} : vector<16x8xf32>, vector<8x128xf32>, vector<16x128xf32> -> vector<16x128xf32>
    %279 = arith.addf %274, %278 : vector<16x128xf32>
    %c0_258 = arith.constant 0 : index
    %c3 = arith.constant 3 : index
    %c0_259 = arith.constant 0 : index
    %c0_260 = arith.constant 0 : index
    %280 = vector.load %arg4[%c0_258, %c3, %c0_259, %c0_260] : memref<1x8x16x128xf32, #tpu.memory_space<vmem>>, vector<1x1x16x128xf32>
    %281 = vector.shape_cast %280 : vector<1x1x16x128xf32> to vector<16x128xf32>
    %282 = vector.shape_cast %279 : vector<16x128xf32> to vector<1x1x16x128xf32>
    tpu.vector_store %arg4[%c0_258, %c3, %c0_259, %c0_260], %282 {strides = array<i32>} : memref<1x8x16x128xf32, #tpu.memory_space<vmem>>, vector<1x1x16x128xf32>,
    %cst_261 = arith.constant dense<0.000000e+00> : vector<128xf32>
    %283 = vector.multi_reduction <add>, %279, %cst_261 [0] : vector<16x128xf32> to vector<128xf32>
    %284 = vector.shape_cast %283 : vector<128xf32> to vector<1x128xf32>
    %285 = arith.addf %214, %284 : vector<1x128xf32>
    %286 = arith.mulf %279, %279 : vector<16x128xf32>
    %cst_262 = arith.constant dense<0.000000e+00> : vector<128xf32>
    %287 = vector.multi_reduction <add>, %286, %cst_262 [0] : vector<16x128xf32> to vector<128xf32>
    %288 = vector.shape_cast %287 : vector<128xf32> to vector<1x128xf32>
    %289 = arith.addf %218, %288 : vector<1x128xf32>
    %cst_263 = arith.constant 0.000000e+00 : f32
    %290 = vector.broadcast %cst_263 : f32 to vector<16x128xf32>
    %c4_i32 = arith.constant 4 : i32
    %291 = arith.addi %3, %c4_i32 : i32
    %c0_i32_264 = arith.constant 0 : i32
    %292 = arith.addi %291, %c0_i32_264 : i32
    %c0_265 = arith.constant 0 : index
    %293 = arith.index_cast %292 : i32 to index
    %c0_266 = arith.constant 0 : index
    %c0_267 = arith.constant 0 : index
    %294 = vector.load %arg2[%c0_265, %293, %c0_266, %c0_267] : memref<1x18x18x8xf32, #tpu.memory_space<vmem>>, vector<1x1x18x8xf32>
    %295 = vector.shape_cast %294 : vector<1x1x18x8xf32> to vector<18x8xf32>
    %296 = vector.extract_strided_slice %295 {offsets = [0, 0], sizes = [16, 8], strides = [1, 1]} : vector<18x8xf32> to vector<16x8xf32>
    %c0_268 = arith.constant 0 : index
    %c0_269 = arith.constant 0 : index
    %c0_270 = arith.constant 0 : index
    %c0_271 = arith.constant 0 : index
    %297 = vector.load %arg3[%c0_268, %c0_269, %c0_270, %c0_271] : memref<3x3x8x128xf32, #tpu.memory_space<vmem>>, vector<1x1x8x128xf32>
    %298 = vector.shape_cast %297 : vector<1x1x8x128xf32> to vector<8x128xf32>
    %cst_272 = arith.constant dense<0.000000e+00> : vector<16x128xf32>
    %299 = tpu.matmul %296, %298, %cst_272 {dimension_numbers = #tpu.dot_dimension_numbers<[1], [0], [0], [1], [0, 0, 1, 1], [], []>} : vector<16x8xf32>, vector<8x128xf32>, vector<16x128xf32> -> vector<16x128xf32>
    %300 = arith.addf %290, %299 : vector<16x128xf32>
    %301 = vector.extract_strided_slice %295 {offsets = [1, 0], sizes = [16, 8], strides = [1, 1]} : vector<18x8xf32> to vector<16x8xf32>
    %c0_273 = arith.constant 0 : index
    %c1_274 = arith.constant 1 : index
    %c0_275 = arith.constant 0 : index
    %c0_276 = arith.constant 0 : index
    %302 = vector.load %arg3[%c0_273, %c1_274, %c0_275, %c0_276] : memref<3x3x8x128xf32, #tpu.memory_space<vmem>>, vector<1x1x8x128xf32>
    %303 = vector.shape_cast %302 : vector<1x1x8x128xf32> to vector<8x128xf32>
    %cst_277 = arith.constant dense<0.000000e+00> : vector<16x128xf32>
    %304 = tpu.matmul %301, %303, %cst_277 {dimension_numbers = #tpu.dot_dimension_numbers<[1], [0], [0], [1], [0, 0, 1, 1], [], []>} : vector<16x8xf32>, vector<8x128xf32>, vector<16x128xf32> -> vector<16x128xf32>
    %305 = arith.addf %300, %304 : vector<16x128xf32>
    %306 = vector.extract_strided_slice %295 {offsets = [2, 0], sizes = [16, 8], strides = [1, 1]} : vector<18x8xf32> to vector<16x8xf32>
    %c0_278 = arith.constant 0 : index
    %c2_279 = arith.constant 2 : index
    %c0_280 = arith.constant 0 : index
    %c0_281 = arith.constant 0 : index
    %307 = vector.load %arg3[%c0_278, %c2_279, %c0_280, %c0_281] : memref<3x3x8x128xf32, #tpu.memory_space<vmem>>, vector<1x1x8x128xf32>
    %308 = vector.shape_cast %307 : vector<1x1x8x128xf32> to vector<8x128xf32>
    %cst_282 = arith.constant dense<0.000000e+00> : vector<16x128xf32>
    %309 = tpu.matmul %306, %308, %cst_282 {dimension_numbers = #tpu.dot_dimension_numbers<[1], [0], [0], [1], [0, 0, 1, 1], [], []>} : vector<16x8xf32>, vector<8x128xf32>, vector<16x128xf32> -> vector<16x128xf32>
    %310 = arith.addf %305, %309 : vector<16x128xf32>
    %c4_i32_283 = arith.constant 4 : i32
    %311 = arith.addi %3, %c4_i32_283 : i32
    %c1_i32_284 = arith.constant 1 : i32
    %312 = arith.addi %311, %c1_i32_284 : i32
    %c0_285 = arith.constant 0 : index
    %313 = arith.index_cast %312 : i32 to index
    %c0_286 = arith.constant 0 : index
    %c0_287 = arith.constant 0 : index
    %314 = vector.load %arg2[%c0_285, %313, %c0_286, %c0_287] : memref<1x18x18x8xf32, #tpu.memory_space<vmem>>, vector<1x1x18x8xf32>
    %315 = vector.shape_cast %314 : vector<1x1x18x8xf32> to vector<18x8xf32>
    %316 = vector.extract_strided_slice %315 {offsets = [0, 0], sizes = [16, 8], strides = [1, 1]} : vector<18x8xf32> to vector<16x8xf32>
    %c1_288 = arith.constant 1 : index
    %c0_289 = arith.constant 0 : index
    %c0_290 = arith.constant 0 : index
    %c0_291 = arith.constant 0 : index
    %317 = vector.load %arg3[%c1_288, %c0_289, %c0_290, %c0_291] : memref<3x3x8x128xf32, #tpu.memory_space<vmem>>, vector<1x1x8x128xf32>
    %318 = vector.shape_cast %317 : vector<1x1x8x128xf32> to vector<8x128xf32>
    %cst_292 = arith.constant dense<0.000000e+00> : vector<16x128xf32>
    %319 = tpu.matmul %316, %318, %cst_292 {dimension_numbers = #tpu.dot_dimension_numbers<[1], [0], [0], [1], [0, 0, 1, 1], [], []>} : vector<16x8xf32>, vector<8x128xf32>, vector<16x128xf32> -> vector<16x128xf32>
    %320 = arith.addf %310, %319 : vector<16x128xf32>
    %321 = vector.extract_strided_slice %315 {offsets = [1, 0], sizes = [16, 8], strides = [1, 1]} : vector<18x8xf32> to vector<16x8xf32>
    %c1_293 = arith.constant 1 : index
    %c1_294 = arith.constant 1 : index
    %c0_295 = arith.constant 0 : index
    %c0_296 = arith.constant 0 : index
    %322 = vector.load %arg3[%c1_293, %c1_294, %c0_295, %c0_296] : memref<3x3x8x128xf32, #tpu.memory_space<vmem>>, vector<1x1x8x128xf32>
    %323 = vector.shape_cast %322 : vector<1x1x8x128xf32> to vector<8x128xf32>
    %cst_297 = arith.constant dense<0.000000e+00> : vector<16x128xf32>
    %324 = tpu.matmul %321, %323, %cst_297 {dimension_numbers = #tpu.dot_dimension_numbers<[1], [0], [0], [1], [0, 0, 1, 1], [], []>} : vector<16x8xf32>, vector<8x128xf32>, vector<16x128xf32> -> vector<16x128xf32>
    %325 = arith.addf %320, %324 : vector<16x128xf32>
    %326 = vector.extract_strided_slice %315 {offsets = [2, 0], sizes = [16, 8], strides = [1, 1]} : vector<18x8xf32> to vector<16x8xf32>
    %c1_298 = arith.constant 1 : index
    %c2_299 = arith.constant 2 : index
    %c0_300 = arith.constant 0 : index
    %c0_301 = arith.constant 0 : index
    %327 = vector.load %arg3[%c1_298, %c2_299, %c0_300, %c0_301] : memref<3x3x8x128xf32, #tpu.memory_space<vmem>>, vector<1x1x8x128xf32>
    %328 = vector.shape_cast %327 : vector<1x1x8x128xf32> to vector<8x128xf32>
    %cst_302 = arith.constant dense<0.000000e+00> : vector<16x128xf32>
    %329 = tpu.matmul %326, %328, %cst_302 {dimension_numbers = #tpu.dot_dimension_numbers<[1], [0], [0], [1], [0, 0, 1, 1], [], []>} : vector<16x8xf32>, vector<8x128xf32>, vector<16x128xf32> -> vector<16x128xf32>
    %330 = arith.addf %325, %329 : vector<16x128xf32>
    %c4_i32_303 = arith.constant 4 : i32
    %331 = arith.addi %3, %c4_i32_303 : i32
    %c2_i32_304 = arith.constant 2 : i32
    %332 = arith.addi %331, %c2_i32_304 : i32
    %c0_305 = arith.constant 0 : index
    %333 = arith.index_cast %332 : i32 to index
    %c0_306 = arith.constant 0 : index
    %c0_307 = arith.constant 0 : index
    %334 = vector.load %arg2[%c0_305, %333, %c0_306, %c0_307] : memref<1x18x18x8xf32, #tpu.memory_space<vmem>>, vector<1x1x18x8xf32>
    %335 = vector.shape_cast %334 : vector<1x1x18x8xf32> to vector<18x8xf32>
    %336 = vector.extract_strided_slice %335 {offsets = [0, 0], sizes = [16, 8], strides = [1, 1]} : vector<18x8xf32> to vector<16x8xf32>
    %c2_308 = arith.constant 2 : index
    %c0_309 = arith.constant 0 : index
    %c0_310 = arith.constant 0 : index
    %c0_311 = arith.constant 0 : index
    %337 = vector.load %arg3[%c2_308, %c0_309, %c0_310, %c0_311] : memref<3x3x8x128xf32, #tpu.memory_space<vmem>>, vector<1x1x8x128xf32>
    %338 = vector.shape_cast %337 : vector<1x1x8x128xf32> to vector<8x128xf32>
    %cst_312 = arith.constant dense<0.000000e+00> : vector<16x128xf32>
    %339 = tpu.matmul %336, %338, %cst_312 {dimension_numbers = #tpu.dot_dimension_numbers<[1], [0], [0], [1], [0, 0, 1, 1], [], []>} : vector<16x8xf32>, vector<8x128xf32>, vector<16x128xf32> -> vector<16x128xf32>
    %340 = arith.addf %330, %339 : vector<16x128xf32>
    %341 = vector.extract_strided_slice %335 {offsets = [1, 0], sizes = [16, 8], strides = [1, 1]} : vector<18x8xf32> to vector<16x8xf32>
    %c2_313 = arith.constant 2 : index
    %c1_314 = arith.constant 1 : index
    %c0_315 = arith.constant 0 : index
    %c0_316 = arith.constant 0 : index
    %342 = vector.load %arg3[%c2_313, %c1_314, %c0_315, %c0_316] : memref<3x3x8x128xf32, #tpu.memory_space<vmem>>, vector<1x1x8x128xf32>
    %343 = vector.shape_cast %342 : vector<1x1x8x128xf32> to vector<8x128xf32>
    %cst_317 = arith.constant dense<0.000000e+00> : vector<16x128xf32>
    %344 = tpu.matmul %341, %343, %cst_317 {dimension_numbers = #tpu.dot_dimension_numbers<[1], [0], [0], [1], [0, 0, 1, 1], [], []>} : vector<16x8xf32>, vector<8x128xf32>, vector<16x128xf32> -> vector<16x128xf32>
    %345 = arith.addf %340, %344 : vector<16x128xf32>
    %346 = vector.extract_strided_slice %335 {offsets = [2, 0], sizes = [16, 8], strides = [1, 1]} : vector<18x8xf32> to vector<16x8xf32>
    %c2_318 = arith.constant 2 : index
    %c2_319 = arith.constant 2 : index
    %c0_320 = arith.constant 0 : index
    %c0_321 = arith.constant 0 : index
    %347 = vector.load %arg3[%c2_318, %c2_319, %c0_320, %c0_321] : memref<3x3x8x128xf32, #tpu.memory_space<vmem>>, vector<1x1x8x128xf32>
    %348 = vector.shape_cast %347 : vector<1x1x8x128xf32> to vector<8x128xf32>
    %cst_322 = arith.constant dense<0.000000e+00> : vector<16x128xf32>
    %349 = tpu.matmul %346, %348, %cst_322 {dimension_numbers = #tpu.dot_dimension_numbers<[1], [0], [0], [1], [0, 0, 1, 1], [], []>} : vector<16x8xf32>, vector<8x128xf32>, vector<16x128xf32> -> vector<16x128xf32>
    %350 = arith.addf %345, %349 : vector<16x128xf32>
    %c0_323 = arith.constant 0 : index
    %c4 = arith.constant 4 : index
    %c0_324 = arith.constant 0 : index
    %c0_325 = arith.constant 0 : index
    %351 = vector.load %arg4[%c0_323, %c4, %c0_324, %c0_325] : memref<1x8x16x128xf32, #tpu.memory_space<vmem>>, vector<1x1x16x128xf32>
    %352 = vector.shape_cast %351 : vector<1x1x16x128xf32> to vector<16x128xf32>
    %353 = vector.shape_cast %350 : vector<16x128xf32> to vector<1x1x16x128xf32>
    tpu.vector_store %arg4[%c0_323, %c4, %c0_324, %c0_325], %353 {strides = array<i32>} : memref<1x8x16x128xf32, #tpu.memory_space<vmem>>, vector<1x1x16x128xf32>,
    %cst_326 = arith.constant dense<0.000000e+00> : vector<128xf32>
    %354 = vector.multi_reduction <add>, %350, %cst_326 [0] : vector<16x128xf32> to vector<128xf32>
    %355 = vector.shape_cast %354 : vector<128xf32> to vector<1x128xf32>
    %356 = arith.addf %285, %355 : vector<1x128xf32>
    %357 = arith.mulf %350, %350 : vector<16x128xf32>
    %cst_327 = arith.constant dense<0.000000e+00> : vector<128xf32>
    %358 = vector.multi_reduction <add>, %357, %cst_327 [0] : vector<16x128xf32> to vector<128xf32>
    %359 = vector.shape_cast %358 : vector<128xf32> to vector<1x128xf32>
    %360 = arith.addf %289, %359 : vector<1x128xf32>
    %cst_328 = arith.constant 0.000000e+00 : f32
    %361 = vector.broadcast %cst_328 : f32 to vector<16x128xf32>
    %c5_i32 = arith.constant 5 : i32
    %362 = arith.addi %3, %c5_i32 : i32
    %c0_i32_329 = arith.constant 0 : i32
    %363 = arith.addi %362, %c0_i32_329 : i32
    %c0_330 = arith.constant 0 : index
    %364 = arith.index_cast %363 : i32 to index
    %c0_331 = arith.constant 0 : index
    %c0_332 = arith.constant 0 : index
    %365 = vector.load %arg2[%c0_330, %364, %c0_331, %c0_332] : memref<1x18x18x8xf32, #tpu.memory_space<vmem>>, vector<1x1x18x8xf32>
    %366 = vector.shape_cast %365 : vector<1x1x18x8xf32> to vector<18x8xf32>
    %367 = vector.extract_strided_slice %366 {offsets = [0, 0], sizes = [16, 8], strides = [1, 1]} : vector<18x8xf32> to vector<16x8xf32>
    %c0_333 = arith.constant 0 : index
    %c0_334 = arith.constant 0 : index
    %c0_335 = arith.constant 0 : index
    %c0_336 = arith.constant 0 : index
    %368 = vector.load %arg3[%c0_333, %c0_334, %c0_335, %c0_336] : memref<3x3x8x128xf32, #tpu.memory_space<vmem>>, vector<1x1x8x128xf32>
    %369 = vector.shape_cast %368 : vector<1x1x8x128xf32> to vector<8x128xf32>
    %cst_337 = arith.constant dense<0.000000e+00> : vector<16x128xf32>
    %370 = tpu.matmul %367, %369, %cst_337 {dimension_numbers = #tpu.dot_dimension_numbers<[1], [0], [0], [1], [0, 0, 1, 1], [], []>} : vector<16x8xf32>, vector<8x128xf32>, vector<16x128xf32> -> vector<16x128xf32>
    %371 = arith.addf %361, %370 : vector<16x128xf32>
    %372 = vector.extract_strided_slice %366 {offsets = [1, 0], sizes = [16, 8], strides = [1, 1]} : vector<18x8xf32> to vector<16x8xf32>
    %c0_338 = arith.constant 0 : index
    %c1_339 = arith.constant 1 : index
    %c0_340 = arith.constant 0 : index
    %c0_341 = arith.constant 0 : index
    %373 = vector.load %arg3[%c0_338, %c1_339, %c0_340, %c0_341] : memref<3x3x8x128xf32, #tpu.memory_space<vmem>>, vector<1x1x8x128xf32>
    %374 = vector.shape_cast %373 : vector<1x1x8x128xf32> to vector<8x128xf32>
    %cst_342 = arith.constant dense<0.000000e+00> : vector<16x128xf32>
    %375 = tpu.matmul %372, %374, %cst_342 {dimension_numbers = #tpu.dot_dimension_numbers<[1], [0], [0], [1], [0, 0, 1, 1], [], []>} : vector<16x8xf32>, vector<8x128xf32>, vector<16x128xf32> -> vector<16x128xf32>
    %376 = arith.addf %371, %375 : vector<16x128xf32>
    %377 = vector.extract_strided_slice %366 {offsets = [2, 0], sizes = [16, 8], strides = [1, 1]} : vector<18x8xf32> to vector<16x8xf32>
    %c0_343 = arith.constant 0 : index
    %c2_344 = arith.constant 2 : index
    %c0_345 = arith.constant 0 : index
    %c0_346 = arith.constant 0 : index
    %378 = vector.load %arg3[%c0_343, %c2_344, %c0_345, %c0_346] : memref<3x3x8x128xf32, #tpu.memory_space<vmem>>, vector<1x1x8x128xf32>
    %379 = vector.shape_cast %378 : vector<1x1x8x128xf32> to vector<8x128xf32>
    %cst_347 = arith.constant dense<0.000000e+00> : vector<16x128xf32>
    %380 = tpu.matmul %377, %379, %cst_347 {dimension_numbers = #tpu.dot_dimension_numbers<[1], [0], [0], [1], [0, 0, 1, 1], [], []>} : vector<16x8xf32>, vector<8x128xf32>, vector<16x128xf32> -> vector<16x128xf32>
    %381 = arith.addf %376, %380 : vector<16x128xf32>
    %c5_i32_348 = arith.constant 5 : i32
    %382 = arith.addi %3, %c5_i32_348 : i32
    %c1_i32_349 = arith.constant 1 : i32
    %383 = arith.addi %382, %c1_i32_349 : i32
    %c0_350 = arith.constant 0 : index
    %384 = arith.index_cast %383 : i32 to index
    %c0_351 = arith.constant 0 : index
    %c0_352 = arith.constant 0 : index
    %385 = vector.load %arg2[%c0_350, %384, %c0_351, %c0_352] : memref<1x18x18x8xf32, #tpu.memory_space<vmem>>, vector<1x1x18x8xf32>
    %386 = vector.shape_cast %385 : vector<1x1x18x8xf32> to vector<18x8xf32>
    %387 = vector.extract_strided_slice %386 {offsets = [0, 0], sizes = [16, 8], strides = [1, 1]} : vector<18x8xf32> to vector<16x8xf32>
    %c1_353 = arith.constant 1 : index
    %c0_354 = arith.constant 0 : index
    %c0_355 = arith.constant 0 : index
    %c0_356 = arith.constant 0 : index
    %388 = vector.load %arg3[%c1_353, %c0_354, %c0_355, %c0_356] : memref<3x3x8x128xf32, #tpu.memory_space<vmem>>, vector<1x1x8x128xf32>
    %389 = vector.shape_cast %388 : vector<1x1x8x128xf32> to vector<8x128xf32>
    %cst_357 = arith.constant dense<0.000000e+00> : vector<16x128xf32>
    %390 = tpu.matmul %387, %389, %cst_357 {dimension_numbers = #tpu.dot_dimension_numbers<[1], [0], [0], [1], [0, 0, 1, 1], [], []>} : vector<16x8xf32>, vector<8x128xf32>, vector<16x128xf32> -> vector<16x128xf32>
    %391 = arith.addf %381, %390 : vector<16x128xf32>
    %392 = vector.extract_strided_slice %386 {offsets = [1, 0], sizes = [16, 8], strides = [1, 1]} : vector<18x8xf32> to vector<16x8xf32>
    %c1_358 = arith.constant 1 : index
    %c1_359 = arith.constant 1 : index
    %c0_360 = arith.constant 0 : index
    %c0_361 = arith.constant 0 : index
    %393 = vector.load %arg3[%c1_358, %c1_359, %c0_360, %c0_361] : memref<3x3x8x128xf32, #tpu.memory_space<vmem>>, vector<1x1x8x128xf32>
    %394 = vector.shape_cast %393 : vector<1x1x8x128xf32> to vector<8x128xf32>
    %cst_362 = arith.constant dense<0.000000e+00> : vector<16x128xf32>
    %395 = tpu.matmul %392, %394, %cst_362 {dimension_numbers = #tpu.dot_dimension_numbers<[1], [0], [0], [1], [0, 0, 1, 1], [], []>} : vector<16x8xf32>, vector<8x128xf32>, vector<16x128xf32> -> vector<16x128xf32>
    %396 = arith.addf %391, %395 : vector<16x128xf32>
    %397 = vector.extract_strided_slice %386 {offsets = [2, 0], sizes = [16, 8], strides = [1, 1]} : vector<18x8xf32> to vector<16x8xf32>
    %c1_363 = arith.constant 1 : index
    %c2_364 = arith.constant 2 : index
    %c0_365 = arith.constant 0 : index
    %c0_366 = arith.constant 0 : index
    %398 = vector.load %arg3[%c1_363, %c2_364, %c0_365, %c0_366] : memref<3x3x8x128xf32, #tpu.memory_space<vmem>>, vector<1x1x8x128xf32>
    %399 = vector.shape_cast %398 : vector<1x1x8x128xf32> to vector<8x128xf32>
    %cst_367 = arith.constant dense<0.000000e+00> : vector<16x128xf32>
    %400 = tpu.matmul %397, %399, %cst_367 {dimension_numbers = #tpu.dot_dimension_numbers<[1], [0], [0], [1], [0, 0, 1, 1], [], []>} : vector<16x8xf32>, vector<8x128xf32>, vector<16x128xf32> -> vector<16x128xf32>
    %401 = arith.addf %396, %400 : vector<16x128xf32>
    %c5_i32_368 = arith.constant 5 : i32
    %402 = arith.addi %3, %c5_i32_368 : i32
    %c2_i32_369 = arith.constant 2 : i32
    %403 = arith.addi %402, %c2_i32_369 : i32
    %c0_370 = arith.constant 0 : index
    %404 = arith.index_cast %403 : i32 to index
    %c0_371 = arith.constant 0 : index
    %c0_372 = arith.constant 0 : index
    %405 = vector.load %arg2[%c0_370, %404, %c0_371, %c0_372] : memref<1x18x18x8xf32, #tpu.memory_space<vmem>>, vector<1x1x18x8xf32>
    %406 = vector.shape_cast %405 : vector<1x1x18x8xf32> to vector<18x8xf32>
    %407 = vector.extract_strided_slice %406 {offsets = [0, 0], sizes = [16, 8], strides = [1, 1]} : vector<18x8xf32> to vector<16x8xf32>
    %c2_373 = arith.constant 2 : index
    %c0_374 = arith.constant 0 : index
    %c0_375 = arith.constant 0 : index
    %c0_376 = arith.constant 0 : index
    %408 = vector.load %arg3[%c2_373, %c0_374, %c0_375, %c0_376] : memref<3x3x8x128xf32, #tpu.memory_space<vmem>>, vector<1x1x8x128xf32>
    %409 = vector.shape_cast %408 : vector<1x1x8x128xf32> to vector<8x128xf32>
    %cst_377 = arith.constant dense<0.000000e+00> : vector<16x128xf32>
    %410 = tpu.matmul %407, %409, %cst_377 {dimension_numbers = #tpu.dot_dimension_numbers<[1], [0], [0], [1], [0, 0, 1, 1], [], []>} : vector<16x8xf32>, vector<8x128xf32>, vector<16x128xf32> -> vector<16x128xf32>
    %411 = arith.addf %401, %410 : vector<16x128xf32>
    %412 = vector.extract_strided_slice %406 {offsets = [1, 0], sizes = [16, 8], strides = [1, 1]} : vector<18x8xf32> to vector<16x8xf32>
    %c2_378 = arith.constant 2 : index
    %c1_379 = arith.constant 1 : index
    %c0_380 = arith.constant 0 : index
    %c0_381 = arith.constant 0 : index
    %413 = vector.load %arg3[%c2_378, %c1_379, %c0_380, %c0_381] : memref<3x3x8x128xf32, #tpu.memory_space<vmem>>, vector<1x1x8x128xf32>
    %414 = vector.shape_cast %413 : vector<1x1x8x128xf32> to vector<8x128xf32>
    %cst_382 = arith.constant dense<0.000000e+00> : vector<16x128xf32>
    %415 = tpu.matmul %412, %414, %cst_382 {dimension_numbers = #tpu.dot_dimension_numbers<[1], [0], [0], [1], [0, 0, 1, 1], [], []>} : vector<16x8xf32>, vector<8x128xf32>, vector<16x128xf32> -> vector<16x128xf32>
    %416 = arith.addf %411, %415 : vector<16x128xf32>
    %417 = vector.extract_strided_slice %406 {offsets = [2, 0], sizes = [16, 8], strides = [1, 1]} : vector<18x8xf32> to vector<16x8xf32>
    %c2_383 = arith.constant 2 : index
    %c2_384 = arith.constant 2 : index
    %c0_385 = arith.constant 0 : index
    %c0_386 = arith.constant 0 : index
    %418 = vector.load %arg3[%c2_383, %c2_384, %c0_385, %c0_386] : memref<3x3x8x128xf32, #tpu.memory_space<vmem>>, vector<1x1x8x128xf32>
    %419 = vector.shape_cast %418 : vector<1x1x8x128xf32> to vector<8x128xf32>
    %cst_387 = arith.constant dense<0.000000e+00> : vector<16x128xf32>
    %420 = tpu.matmul %417, %419, %cst_387 {dimension_numbers = #tpu.dot_dimension_numbers<[1], [0], [0], [1], [0, 0, 1, 1], [], []>} : vector<16x8xf32>, vector<8x128xf32>, vector<16x128xf32> -> vector<16x128xf32>
    %421 = arith.addf %416, %420 : vector<16x128xf32>
    %c0_388 = arith.constant 0 : index
    %c5 = arith.constant 5 : index
    %c0_389 = arith.constant 0 : index
    %c0_390 = arith.constant 0 : index
    %422 = vector.load %arg4[%c0_388, %c5, %c0_389, %c0_390] : memref<1x8x16x128xf32, #tpu.memory_space<vmem>>, vector<1x1x16x128xf32>
    %423 = vector.shape_cast %422 : vector<1x1x16x128xf32> to vector<16x128xf32>
    %424 = vector.shape_cast %421 : vector<16x128xf32> to vector<1x1x16x128xf32>
    tpu.vector_store %arg4[%c0_388, %c5, %c0_389, %c0_390], %424 {strides = array<i32>} : memref<1x8x16x128xf32, #tpu.memory_space<vmem>>, vector<1x1x16x128xf32>,
    %cst_391 = arith.constant dense<0.000000e+00> : vector<128xf32>
    %425 = vector.multi_reduction <add>, %421, %cst_391 [0] : vector<16x128xf32> to vector<128xf32>
    %426 = vector.shape_cast %425 : vector<128xf32> to vector<1x128xf32>
    %427 = arith.addf %356, %426 : vector<1x128xf32>
    %428 = arith.mulf %421, %421 : vector<16x128xf32>
    %cst_392 = arith.constant dense<0.000000e+00> : vector<128xf32>
    %429 = vector.multi_reduction <add>, %428, %cst_392 [0] : vector<16x128xf32> to vector<128xf32>
    %430 = vector.shape_cast %429 : vector<128xf32> to vector<1x128xf32>
    %431 = arith.addf %360, %430 : vector<1x128xf32>
    %cst_393 = arith.constant 0.000000e+00 : f32
    %432 = vector.broadcast %cst_393 : f32 to vector<16x128xf32>
    %c6_i32 = arith.constant 6 : i32
    %433 = arith.addi %3, %c6_i32 : i32
    %c0_i32_394 = arith.constant 0 : i32
    %434 = arith.addi %433, %c0_i32_394 : i32
    %c0_395 = arith.constant 0 : index
    %435 = arith.index_cast %434 : i32 to index
    %c0_396 = arith.constant 0 : index
    %c0_397 = arith.constant 0 : index
    %436 = vector.load %arg2[%c0_395, %435, %c0_396, %c0_397] : memref<1x18x18x8xf32, #tpu.memory_space<vmem>>, vector<1x1x18x8xf32>
    %437 = vector.shape_cast %436 : vector<1x1x18x8xf32> to vector<18x8xf32>
    %438 = vector.extract_strided_slice %437 {offsets = [0, 0], sizes = [16, 8], strides = [1, 1]} : vector<18x8xf32> to vector<16x8xf32>
    %c0_398 = arith.constant 0 : index
    %c0_399 = arith.constant 0 : index
    %c0_400 = arith.constant 0 : index
    %c0_401 = arith.constant 0 : index
    %439 = vector.load %arg3[%c0_398, %c0_399, %c0_400, %c0_401] : memref<3x3x8x128xf32, #tpu.memory_space<vmem>>, vector<1x1x8x128xf32>
    %440 = vector.shape_cast %439 : vector<1x1x8x128xf32> to vector<8x128xf32>
    %cst_402 = arith.constant dense<0.000000e+00> : vector<16x128xf32>
    %441 = tpu.matmul %438, %440, %cst_402 {dimension_numbers = #tpu.dot_dimension_numbers<[1], [0], [0], [1], [0, 0, 1, 1], [], []>} : vector<16x8xf32>, vector<8x128xf32>, vector<16x128xf32> -> vector<16x128xf32>
    %442 = arith.addf %432, %441 : vector<16x128xf32>
    %443 = vector.extract_strided_slice %437 {offsets = [1, 0], sizes = [16, 8], strides = [1, 1]} : vector<18x8xf32> to vector<16x8xf32>
    %c0_403 = arith.constant 0 : index
    %c1_404 = arith.constant 1 : index
    %c0_405 = arith.constant 0 : index
    %c0_406 = arith.constant 0 : index
    %444 = vector.load %arg3[%c0_403, %c1_404, %c0_405, %c0_406] : memref<3x3x8x128xf32, #tpu.memory_space<vmem>>, vector<1x1x8x128xf32>
    %445 = vector.shape_cast %444 : vector<1x1x8x128xf32> to vector<8x128xf32>
    %cst_407 = arith.constant dense<0.000000e+00> : vector<16x128xf32>
    %446 = tpu.matmul %443, %445, %cst_407 {dimension_numbers = #tpu.dot_dimension_numbers<[1], [0], [0], [1], [0, 0, 1, 1], [], []>} : vector<16x8xf32>, vector<8x128xf32>, vector<16x128xf32> -> vector<16x128xf32>
    %447 = arith.addf %442, %446 : vector<16x128xf32>
    %448 = vector.extract_strided_slice %437 {offsets = [2, 0], sizes = [16, 8], strides = [1, 1]} : vector<18x8xf32> to vector<16x8xf32>
    %c0_408 = arith.constant 0 : index
    %c2_409 = arith.constant 2 : index
    %c0_410 = arith.constant 0 : index
    %c0_411 = arith.constant 0 : index
    %449 = vector.load %arg3[%c0_408, %c2_409, %c0_410, %c0_411] : memref<3x3x8x128xf32, #tpu.memory_space<vmem>>, vector<1x1x8x128xf32>
    %450 = vector.shape_cast %449 : vector<1x1x8x128xf32> to vector<8x128xf32>
    %cst_412 = arith.constant dense<0.000000e+00> : vector<16x128xf32>
    %451 = tpu.matmul %448, %450, %cst_412 {dimension_numbers = #tpu.dot_dimension_numbers<[1], [0], [0], [1], [0, 0, 1, 1], [], []>} : vector<16x8xf32>, vector<8x128xf32>, vector<16x128xf32> -> vector<16x128xf32>
    %452 = arith.addf %447, %451 : vector<16x128xf32>
    %c6_i32_413 = arith.constant 6 : i32
    %453 = arith.addi %3, %c6_i32_413 : i32
    %c1_i32_414 = arith.constant 1 : i32
    %454 = arith.addi %453, %c1_i32_414 : i32
    %c0_415 = arith.constant 0 : index
    %455 = arith.index_cast %454 : i32 to index
    %c0_416 = arith.constant 0 : index
    %c0_417 = arith.constant 0 : index
    %456 = vector.load %arg2[%c0_415, %455, %c0_416, %c0_417] : memref<1x18x18x8xf32, #tpu.memory_space<vmem>>, vector<1x1x18x8xf32>
    %457 = vector.shape_cast %456 : vector<1x1x18x8xf32> to vector<18x8xf32>
    %458 = vector.extract_strided_slice %457 {offsets = [0, 0], sizes = [16, 8], strides = [1, 1]} : vector<18x8xf32> to vector<16x8xf32>
    %c1_418 = arith.constant 1 : index
    %c0_419 = arith.constant 0 : index
    %c0_420 = arith.constant 0 : index
    %c0_421 = arith.constant 0 : index
    %459 = vector.load %arg3[%c1_418, %c0_419, %c0_420, %c0_421] : memref<3x3x8x128xf32, #tpu.memory_space<vmem>>, vector<1x1x8x128xf32>
    %460 = vector.shape_cast %459 : vector<1x1x8x128xf32> to vector<8x128xf32>
    %cst_422 = arith.constant dense<0.000000e+00> : vector<16x128xf32>
    %461 = tpu.matmul %458, %460, %cst_422 {dimension_numbers = #tpu.dot_dimension_numbers<[1], [0], [0], [1], [0, 0, 1, 1], [], []>} : vector<16x8xf32>, vector<8x128xf32>, vector<16x128xf32> -> vector<16x128xf32>
    %462 = arith.addf %452, %461 : vector<16x128xf32>
    %463 = vector.extract_strided_slice %457 {offsets = [1, 0], sizes = [16, 8], strides = [1, 1]} : vector<18x8xf32> to vector<16x8xf32>
    %c1_423 = arith.constant 1 : index
    %c1_424 = arith.constant 1 : index
    %c0_425 = arith.constant 0 : index
    %c0_426 = arith.constant 0 : index
    %464 = vector.load %arg3[%c1_423, %c1_424, %c0_425, %c0_426] : memref<3x3x8x128xf32, #tpu.memory_space<vmem>>, vector<1x1x8x128xf32>
    %465 = vector.shape_cast %464 : vector<1x1x8x128xf32> to vector<8x128xf32>
    %cst_427 = arith.constant dense<0.000000e+00> : vector<16x128xf32>
    %466 = tpu.matmul %463, %465, %cst_427 {dimension_numbers = #tpu.dot_dimension_numbers<[1], [0], [0], [1], [0, 0, 1, 1], [], []>} : vector<16x8xf32>, vector<8x128xf32>, vector<16x128xf32> -> vector<16x128xf32>
    %467 = arith.addf %462, %466 : vector<16x128xf32>
    %468 = vector.extract_strided_slice %457 {offsets = [2, 0], sizes = [16, 8], strides = [1, 1]} : vector<18x8xf32> to vector<16x8xf32>
    %c1_428 = arith.constant 1 : index
    %c2_429 = arith.constant 2 : index
    %c0_430 = arith.constant 0 : index
    %c0_431 = arith.constant 0 : index
    %469 = vector.load %arg3[%c1_428, %c2_429, %c0_430, %c0_431] : memref<3x3x8x128xf32, #tpu.memory_space<vmem>>, vector<1x1x8x128xf32>
    %470 = vector.shape_cast %469 : vector<1x1x8x128xf32> to vector<8x128xf32>
    %cst_432 = arith.constant dense<0.000000e+00> : vector<16x128xf32>
    %471 = tpu.matmul %468, %470, %cst_432 {dimension_numbers = #tpu.dot_dimension_numbers<[1], [0], [0], [1], [0, 0, 1, 1], [], []>} : vector<16x8xf32>, vector<8x128xf32>, vector<16x128xf32> -> vector<16x128xf32>
    %472 = arith.addf %467, %471 : vector<16x128xf32>
    %c6_i32_433 = arith.constant 6 : i32
    %473 = arith.addi %3, %c6_i32_433 : i32
    %c2_i32_434 = arith.constant 2 : i32
    %474 = arith.addi %473, %c2_i32_434 : i32
    %c0_435 = arith.constant 0 : index
    %475 = arith.index_cast %474 : i32 to index
    %c0_436 = arith.constant 0 : index
    %c0_437 = arith.constant 0 : index
    %476 = vector.load %arg2[%c0_435, %475, %c0_436, %c0_437] : memref<1x18x18x8xf32, #tpu.memory_space<vmem>>, vector<1x1x18x8xf32>
    %477 = vector.shape_cast %476 : vector<1x1x18x8xf32> to vector<18x8xf32>
    %478 = vector.extract_strided_slice %477 {offsets = [0, 0], sizes = [16, 8], strides = [1, 1]} : vector<18x8xf32> to vector<16x8xf32>
    %c2_438 = arith.constant 2 : index
    %c0_439 = arith.constant 0 : index
    %c0_440 = arith.constant 0 : index
    %c0_441 = arith.constant 0 : index
    %479 = vector.load %arg3[%c2_438, %c0_439, %c0_440, %c0_441] : memref<3x3x8x128xf32, #tpu.memory_space<vmem>>, vector<1x1x8x128xf32>
    %480 = vector.shape_cast %479 : vector<1x1x8x128xf32> to vector<8x128xf32>
    %cst_442 = arith.constant dense<0.000000e+00> : vector<16x128xf32>
    %481 = tpu.matmul %478, %480, %cst_442 {dimension_numbers = #tpu.dot_dimension_numbers<[1], [0], [0], [1], [0, 0, 1, 1], [], []>} : vector<16x8xf32>, vector<8x128xf32>, vector<16x128xf32> -> vector<16x128xf32>
    %482 = arith.addf %472, %481 : vector<16x128xf32>
    %483 = vector.extract_strided_slice %477 {offsets = [1, 0], sizes = [16, 8], strides = [1, 1]} : vector<18x8xf32> to vector<16x8xf32>
    %c2_443 = arith.constant 2 : index
    %c1_444 = arith.constant 1 : index
    %c0_445 = arith.constant 0 : index
    %c0_446 = arith.constant 0 : index
    %484 = vector.load %arg3[%c2_443, %c1_444, %c0_445, %c0_446] : memref<3x3x8x128xf32, #tpu.memory_space<vmem>>, vector<1x1x8x128xf32>
    %485 = vector.shape_cast %484 : vector<1x1x8x128xf32> to vector<8x128xf32>
    %cst_447 = arith.constant dense<0.000000e+00> : vector<16x128xf32>
    %486 = tpu.matmul %483, %485, %cst_447 {dimension_numbers = #tpu.dot_dimension_numbers<[1], [0], [0], [1], [0, 0, 1, 1], [], []>} : vector<16x8xf32>, vector<8x128xf32>, vector<16x128xf32> -> vector<16x128xf32>
    %487 = arith.addf %482, %486 : vector<16x128xf32>
    %488 = vector.extract_strided_slice %477 {offsets = [2, 0], sizes = [16, 8], strides = [1, 1]} : vector<18x8xf32> to vector<16x8xf32>
    %c2_448 = arith.constant 2 : index
    %c2_449 = arith.constant 2 : index
    %c0_450 = arith.constant 0 : index
    %c0_451 = arith.constant 0 : index
    %489 = vector.load %arg3[%c2_448, %c2_449, %c0_450, %c0_451] : memref<3x3x8x128xf32, #tpu.memory_space<vmem>>, vector<1x1x8x128xf32>
    %490 = vector.shape_cast %489 : vector<1x1x8x128xf32> to vector<8x128xf32>
    %cst_452 = arith.constant dense<0.000000e+00> : vector<16x128xf32>
    %491 = tpu.matmul %488, %490, %cst_452 {dimension_numbers = #tpu.dot_dimension_numbers<[1], [0], [0], [1], [0, 0, 1, 1], [], []>} : vector<16x8xf32>, vector<8x128xf32>, vector<16x128xf32> -> vector<16x128xf32>
    %492 = arith.addf %487, %491 : vector<16x128xf32>
    %c0_453 = arith.constant 0 : index
    %c6 = arith.constant 6 : index
    %c0_454 = arith.constant 0 : index
    %c0_455 = arith.constant 0 : index
    %493 = vector.load %arg4[%c0_453, %c6, %c0_454, %c0_455] : memref<1x8x16x128xf32, #tpu.memory_space<vmem>>, vector<1x1x16x128xf32>
    %494 = vector.shape_cast %493 : vector<1x1x16x128xf32> to vector<16x128xf32>
    %495 = vector.shape_cast %492 : vector<16x128xf32> to vector<1x1x16x128xf32>
    tpu.vector_store %arg4[%c0_453, %c6, %c0_454, %c0_455], %495 {strides = array<i32>} : memref<1x8x16x128xf32, #tpu.memory_space<vmem>>, vector<1x1x16x128xf32>,
    %cst_456 = arith.constant dense<0.000000e+00> : vector<128xf32>
    %496 = vector.multi_reduction <add>, %492, %cst_456 [0] : vector<16x128xf32> to vector<128xf32>
    %497 = vector.shape_cast %496 : vector<128xf32> to vector<1x128xf32>
    %498 = arith.addf %427, %497 : vector<1x128xf32>
    %499 = arith.mulf %492, %492 : vector<16x128xf32>
    %cst_457 = arith.constant dense<0.000000e+00> : vector<128xf32>
    %500 = vector.multi_reduction <add>, %499, %cst_457 [0] : vector<16x128xf32> to vector<128xf32>
    %501 = vector.shape_cast %500 : vector<128xf32> to vector<1x128xf32>
    %502 = arith.addf %431, %501 : vector<1x128xf32>
    %cst_458 = arith.constant 0.000000e+00 : f32
    %503 = vector.broadcast %cst_458 : f32 to vector<16x128xf32>
    %c7_i32 = arith.constant 7 : i32
    %504 = arith.addi %3, %c7_i32 : i32
    %c0_i32_459 = arith.constant 0 : i32
    %505 = arith.addi %504, %c0_i32_459 : i32
    %c0_460 = arith.constant 0 : index
    %506 = arith.index_cast %505 : i32 to index
    %c0_461 = arith.constant 0 : index
    %c0_462 = arith.constant 0 : index
    %507 = vector.load %arg2[%c0_460, %506, %c0_461, %c0_462] : memref<1x18x18x8xf32, #tpu.memory_space<vmem>>, vector<1x1x18x8xf32>
    %508 = vector.shape_cast %507 : vector<1x1x18x8xf32> to vector<18x8xf32>
    %509 = vector.extract_strided_slice %508 {offsets = [0, 0], sizes = [16, 8], strides = [1, 1]} : vector<18x8xf32> to vector<16x8xf32>
    %c0_463 = arith.constant 0 : index
    %c0_464 = arith.constant 0 : index
    %c0_465 = arith.constant 0 : index
    %c0_466 = arith.constant 0 : index
    %510 = vector.load %arg3[%c0_463, %c0_464, %c0_465, %c0_466] : memref<3x3x8x128xf32, #tpu.memory_space<vmem>>, vector<1x1x8x128xf32>
    %511 = vector.shape_cast %510 : vector<1x1x8x128xf32> to vector<8x128xf32>
    %cst_467 = arith.constant dense<0.000000e+00> : vector<16x128xf32>
    %512 = tpu.matmul %509, %511, %cst_467 {dimension_numbers = #tpu.dot_dimension_numbers<[1], [0], [0], [1], [0, 0, 1, 1], [], []>} : vector<16x8xf32>, vector<8x128xf32>, vector<16x128xf32> -> vector<16x128xf32>
    %513 = arith.addf %503, %512 : vector<16x128xf32>
    %514 = vector.extract_strided_slice %508 {offsets = [1, 0], sizes = [16, 8], strides = [1, 1]} : vector<18x8xf32> to vector<16x8xf32>
    %c0_468 = arith.constant 0 : index
    %c1_469 = arith.constant 1 : index
    %c0_470 = arith.constant 0 : index
    %c0_471 = arith.constant 0 : index
    %515 = vector.load %arg3[%c0_468, %c1_469, %c0_470, %c0_471] : memref<3x3x8x128xf32, #tpu.memory_space<vmem>>, vector<1x1x8x128xf32>
    %516 = vector.shape_cast %515 : vector<1x1x8x128xf32> to vector<8x128xf32>
    %cst_472 = arith.constant dense<0.000000e+00> : vector<16x128xf32>
    %517 = tpu.matmul %514, %516, %cst_472 {dimension_numbers = #tpu.dot_dimension_numbers<[1], [0], [0], [1], [0, 0, 1, 1], [], []>} : vector<16x8xf32>, vector<8x128xf32>, vector<16x128xf32> -> vector<16x128xf32>
    %518 = arith.addf %513, %517 : vector<16x128xf32>
    %519 = vector.extract_strided_slice %508 {offsets = [2, 0], sizes = [16, 8], strides = [1, 1]} : vector<18x8xf32> to vector<16x8xf32>
    %c0_473 = arith.constant 0 : index
    %c2_474 = arith.constant 2 : index
    %c0_475 = arith.constant 0 : index
    %c0_476 = arith.constant 0 : index
    %520 = vector.load %arg3[%c0_473, %c2_474, %c0_475, %c0_476] : memref<3x3x8x128xf32, #tpu.memory_space<vmem>>, vector<1x1x8x128xf32>
    %521 = vector.shape_cast %520 : vector<1x1x8x128xf32> to vector<8x128xf32>
    %cst_477 = arith.constant dense<0.000000e+00> : vector<16x128xf32>
    %522 = tpu.matmul %519, %521, %cst_477 {dimension_numbers = #tpu.dot_dimension_numbers<[1], [0], [0], [1], [0, 0, 1, 1], [], []>} : vector<16x8xf32>, vector<8x128xf32>, vector<16x128xf32> -> vector<16x128xf32>
    %523 = arith.addf %518, %522 : vector<16x128xf32>
    %c7_i32_478 = arith.constant 7 : i32
    %524 = arith.addi %3, %c7_i32_478 : i32
    %c1_i32_479 = arith.constant 1 : i32
    %525 = arith.addi %524, %c1_i32_479 : i32
    %c0_480 = arith.constant 0 : index
    %526 = arith.index_cast %525 : i32 to index
    %c0_481 = arith.constant 0 : index
    %c0_482 = arith.constant 0 : index
    %527 = vector.load %arg2[%c0_480, %526, %c0_481, %c0_482] : memref<1x18x18x8xf32, #tpu.memory_space<vmem>>, vector<1x1x18x8xf32>
    %528 = vector.shape_cast %527 : vector<1x1x18x8xf32> to vector<18x8xf32>
    %529 = vector.extract_strided_slice %528 {offsets = [0, 0], sizes = [16, 8], strides = [1, 1]} : vector<18x8xf32> to vector<16x8xf32>
    %c1_483 = arith.constant 1 : index
    %c0_484 = arith.constant 0 : index
    %c0_485 = arith.constant 0 : index
    %c0_486 = arith.constant 0 : index
    %530 = vector.load %arg3[%c1_483, %c0_484, %c0_485, %c0_486] : memref<3x3x8x128xf32, #tpu.memory_space<vmem>>, vector<1x1x8x128xf32>
    %531 = vector.shape_cast %530 : vector<1x1x8x128xf32> to vector<8x128xf32>
    %cst_487 = arith.constant dense<0.000000e+00> : vector<16x128xf32>
    %532 = tpu.matmul %529, %531, %cst_487 {dimension_numbers = #tpu.dot_dimension_numbers<[1], [0], [0], [1], [0, 0, 1, 1], [], []>} : vector<16x8xf32>, vector<8x128xf32>, vector<16x128xf32> -> vector<16x128xf32>
    %533 = arith.addf %523, %532 : vector<16x128xf32>
    %534 = vector.extract_strided_slice %528 {offsets = [1, 0], sizes = [16, 8], strides = [1, 1]} : vector<18x8xf32> to vector<16x8xf32>
    %c1_488 = arith.constant 1 : index
    %c1_489 = arith.constant 1 : index
    %c0_490 = arith.constant 0 : index
    %c0_491 = arith.constant 0 : index
    %535 = vector.load %arg3[%c1_488, %c1_489, %c0_490, %c0_491] : memref<3x3x8x128xf32, #tpu.memory_space<vmem>>, vector<1x1x8x128xf32>
    %536 = vector.shape_cast %535 : vector<1x1x8x128xf32> to vector<8x128xf32>
    %cst_492 = arith.constant dense<0.000000e+00> : vector<16x128xf32>
    %537 = tpu.matmul %534, %536, %cst_492 {dimension_numbers = #tpu.dot_dimension_numbers<[1], [0], [0], [1], [0, 0, 1, 1], [], []>} : vector<16x8xf32>, vector<8x128xf32>, vector<16x128xf32> -> vector<16x128xf32>
    %538 = arith.addf %533, %537 : vector<16x128xf32>
    %539 = vector.extract_strided_slice %528 {offsets = [2, 0], sizes = [16, 8], strides = [1, 1]} : vector<18x8xf32> to vector<16x8xf32>
    %c1_493 = arith.constant 1 : index
    %c2_494 = arith.constant 2 : index
    %c0_495 = arith.constant 0 : index
    %c0_496 = arith.constant 0 : index
    %540 = vector.load %arg3[%c1_493, %c2_494, %c0_495, %c0_496] : memref<3x3x8x128xf32, #tpu.memory_space<vmem>>, vector<1x1x8x128xf32>
    %541 = vector.shape_cast %540 : vector<1x1x8x128xf32> to vector<8x128xf32>
    %cst_497 = arith.constant dense<0.000000e+00> : vector<16x128xf32>
    %542 = tpu.matmul %539, %541, %cst_497 {dimension_numbers = #tpu.dot_dimension_numbers<[1], [0], [0], [1], [0, 0, 1, 1], [], []>} : vector<16x8xf32>, vector<8x128xf32>, vector<16x128xf32> -> vector<16x128xf32>
    %543 = arith.addf %538, %542 : vector<16x128xf32>
    %c7_i32_498 = arith.constant 7 : i32
    %544 = arith.addi %3, %c7_i32_498 : i32
    %c2_i32_499 = arith.constant 2 : i32
    %545 = arith.addi %544, %c2_i32_499 : i32
    %c0_500 = arith.constant 0 : index
    %546 = arith.index_cast %545 : i32 to index
    %c0_501 = arith.constant 0 : index
    %c0_502 = arith.constant 0 : index
    %547 = vector.load %arg2[%c0_500, %546, %c0_501, %c0_502] : memref<1x18x18x8xf32, #tpu.memory_space<vmem>>, vector<1x1x18x8xf32>
    %548 = vector.shape_cast %547 : vector<1x1x18x8xf32> to vector<18x8xf32>
    %549 = vector.extract_strided_slice %548 {offsets = [0, 0], sizes = [16, 8], strides = [1, 1]} : vector<18x8xf32> to vector<16x8xf32>
    %c2_503 = arith.constant 2 : index
    %c0_504 = arith.constant 0 : index
    %c0_505 = arith.constant 0 : index
    %c0_506 = arith.constant 0 : index
    %550 = vector.load %arg3[%c2_503, %c0_504, %c0_505, %c0_506] : memref<3x3x8x128xf32, #tpu.memory_space<vmem>>, vector<1x1x8x128xf32>
    %551 = vector.shape_cast %550 : vector<1x1x8x128xf32> to vector<8x128xf32>
    %cst_507 = arith.constant dense<0.000000e+00> : vector<16x128xf32>
    %552 = tpu.matmul %549, %551, %cst_507 {dimension_numbers = #tpu.dot_dimension_numbers<[1], [0], [0], [1], [0, 0, 1, 1], [], []>} : vector<16x8xf32>, vector<8x128xf32>, vector<16x128xf32> -> vector<16x128xf32>
    %553 = arith.addf %543, %552 : vector<16x128xf32>
    %554 = vector.extract_strided_slice %548 {offsets = [1, 0], sizes = [16, 8], strides = [1, 1]} : vector<18x8xf32> to vector<16x8xf32>
    %c2_508 = arith.constant 2 : index
    %c1_509 = arith.constant 1 : index
    %c0_510 = arith.constant 0 : index
    %c0_511 = arith.constant 0 : index
    %555 = vector.load %arg3[%c2_508, %c1_509, %c0_510, %c0_511] : memref<3x3x8x128xf32, #tpu.memory_space<vmem>>, vector<1x1x8x128xf32>
    %556 = vector.shape_cast %555 : vector<1x1x8x128xf32> to vector<8x128xf32>
    %cst_512 = arith.constant dense<0.000000e+00> : vector<16x128xf32>
    %557 = tpu.matmul %554, %556, %cst_512 {dimension_numbers = #tpu.dot_dimension_numbers<[1], [0], [0], [1], [0, 0, 1, 1], [], []>} : vector<16x8xf32>, vector<8x128xf32>, vector<16x128xf32> -> vector<16x128xf32>
    %558 = arith.addf %553, %557 : vector<16x128xf32>
    %559 = vector.extract_strided_slice %548 {offsets = [2, 0], sizes = [16, 8], strides = [1, 1]} : vector<18x8xf32> to vector<16x8xf32>
    %c2_513 = arith.constant 2 : index
    %c2_514 = arith.constant 2 : index
    %c0_515 = arith.constant 0 : index
    %c0_516 = arith.constant 0 : index
    %560 = vector.load %arg3[%c2_513, %c2_514, %c0_515, %c0_516] : memref<3x3x8x128xf32, #tpu.memory_space<vmem>>, vector<1x1x8x128xf32>
    %561 = vector.shape_cast %560 : vector<1x1x8x128xf32> to vector<8x128xf32>
    %cst_517 = arith.constant dense<0.000000e+00> : vector<16x128xf32>
    %562 = tpu.matmul %559, %561, %cst_517 {dimension_numbers = #tpu.dot_dimension_numbers<[1], [0], [0], [1], [0, 0, 1, 1], [], []>} : vector<16x8xf32>, vector<8x128xf32>, vector<16x128xf32> -> vector<16x128xf32>
    %563 = arith.addf %558, %562 : vector<16x128xf32>
    %c0_518 = arith.constant 0 : index
    %c7 = arith.constant 7 : index
    %c0_519 = arith.constant 0 : index
    %c0_520 = arith.constant 0 : index
    %564 = vector.load %arg4[%c0_518, %c7, %c0_519, %c0_520] : memref<1x8x16x128xf32, #tpu.memory_space<vmem>>, vector<1x1x16x128xf32>
    %565 = vector.shape_cast %564 : vector<1x1x16x128xf32> to vector<16x128xf32>
    %566 = vector.shape_cast %563 : vector<16x128xf32> to vector<1x1x16x128xf32>
    tpu.vector_store %arg4[%c0_518, %c7, %c0_519, %c0_520], %566 {strides = array<i32>} : memref<1x8x16x128xf32, #tpu.memory_space<vmem>>, vector<1x1x16x128xf32>,
    %cst_521 = arith.constant dense<0.000000e+00> : vector<128xf32>
    %567 = vector.multi_reduction <add>, %563, %cst_521 [0] : vector<16x128xf32> to vector<128xf32>
    %568 = vector.shape_cast %567 : vector<128xf32> to vector<1x128xf32>
    %569 = arith.addf %498, %568 : vector<1x128xf32>
    %570 = arith.mulf %563, %563 : vector<16x128xf32>
    %cst_522 = arith.constant dense<0.000000e+00> : vector<128xf32>
    %571 = vector.multi_reduction <add>, %570, %cst_522 [0] : vector<16x128xf32> to vector<128xf32>
    %572 = vector.shape_cast %571 : vector<128xf32> to vector<1x128xf32>
    %573 = arith.addf %502, %572 : vector<1x128xf32>
    %c0_523 = arith.constant 0 : index
    %c0_524 = arith.constant 0 : index
    %c0_525 = arith.constant 0 : index
    %574 = vector.load %arg5[%c0_523, %c0_524, %c0_525] : memref<1x1x128xf32, #tpu.memory_space<vmem>>, vector<1x1x128xf32>
    %575 = vector.shape_cast %574 : vector<1x1x128xf32> to vector<1x128xf32>
    %576 = arith.addf %575, %569 : vector<1x128xf32>
    %c0_526 = arith.constant 0 : index
    %c0_527 = arith.constant 0 : index
    %c0_528 = arith.constant 0 : index
    %577 = vector.load %arg5[%c0_526, %c0_527, %c0_528] : memref<1x1x128xf32, #tpu.memory_space<vmem>>, vector<1x1x128xf32>
    %578 = vector.shape_cast %577 : vector<1x1x128xf32> to vector<1x128xf32>
    %579 = vector.shape_cast %576 : vector<1x128xf32> to vector<1x1x128xf32>
    tpu.vector_store %arg5[%c0_526, %c0_527, %c0_528], %579 {strides = array<i32>} : memref<1x1x128xf32, #tpu.memory_space<vmem>>, vector<1x1x128xf32>,
    %c0_529 = arith.constant 0 : index
    %c0_530 = arith.constant 0 : index
    %c0_531 = arith.constant 0 : index
    %580 = vector.load %arg6[%c0_529, %c0_530, %c0_531] : memref<1x1x128xf32, #tpu.memory_space<vmem>>, vector<1x1x128xf32>
    %581 = vector.shape_cast %580 : vector<1x1x128xf32> to vector<1x128xf32>
    %582 = arith.addf %581, %573 : vector<1x128xf32>
    %c0_532 = arith.constant 0 : index
    %c0_533 = arith.constant 0 : index
    %c0_534 = arith.constant 0 : index
    %583 = vector.load %arg6[%c0_532, %c0_533, %c0_534] : memref<1x1x128xf32, #tpu.memory_space<vmem>>, vector<1x1x128xf32>
    %584 = vector.shape_cast %583 : vector<1x1x128xf32> to vector<1x128xf32>
    %585 = vector.shape_cast %582 : vector<1x128xf32> to vector<1x1x128xf32>
    tpu.vector_store %arg6[%c0_532, %c0_533, %c0_534], %585 {strides = array<i32>} : memref<1x1x128xf32, #tpu.memory_space<vmem>>, vector<1x1x128xf32>,
    return
  }
  func.func @transform_0(%arg0: i32, %arg1: i32) -> (i32, i32, i32, i32) {
    %c0_i32 = arith.constant 0 : i32
    %c0_i32_0 = arith.constant 0 : i32
    %c0_i32_1 = arith.constant 0 : i32
    %c0_i32_2 = arith.constant 0 : i32
    return %arg0, %c0_i32, %c0_i32_0, %c0_i32_1 : i32, i32, i32, i32
  }
  func.func @transform_1(%arg0: i32, %arg1: i32) -> (i32, i32, i32, i32) {
    %c0_i32 = arith.constant 0 : i32
    %c0_i32_0 = arith.constant 0 : i32
    %c0_i32_1 = arith.constant 0 : i32
    %c0_i32_2 = arith.constant 0 : i32
    %c0_i32_3 = arith.constant 0 : i32
    return %c0_i32, %c0_i32_0, %c0_i32_1, %c0_i32_2 : i32, i32, i32, i32
  }
  func.func @transform_2(%arg0: i32, %arg1: i32) -> (i32, i32, i32, i32) {
    %c0_i32 = arith.constant 0 : i32
    %c0_i32_0 = arith.constant 0 : i32
    %c0_i32_1 = arith.constant 0 : i32
    return %arg0, %arg1, %c0_i32, %c0_i32_0 : i32, i32, i32, i32
  }
  func.func @transform_3(%arg0: i32, %arg1: i32) -> (i32, i32, i32) {
    %c0_i32 = arith.constant 0 : i32
    %c0_i32_0 = arith.constant 0 : i32
    %c0_i32_1 = arith.constant 0 : i32
    return %arg0, %c0_i32, %c0_i32_0 : i32, i32, i32
  }
  func.func @transform_4(%arg0: i32, %arg1: i32) -> (i32, i32, i32) {
    %c0_i32 = arith.constant 0 : i32
    %c0_i32_0 = arith.constant 0 : i32
    %c0_i32_1 = arith.constant 0 : i32
    return %arg0, %c0_i32, %c0_i32_0 : i32, i32, i32
  }
}

</mosaic_0001>

<bundles_post_ra>
// kernel: conv_block_forward.3
= control target key start
LH: loop header
LB: loop body
LE: loop exit
PB: predicated region body
PF: predicated region fallthrough
CT: control target
= control target key end

     0   :  { %s525_s12 = smov 0   ;;  %s527_s13 = smov 0   ;;  %s625_s0 = inlined_call_operand.vmem [shape: f32[2,16,16,128], index: 0, kind: input, shape index: {}, may-alias: {0,3}]   ;;  %s626_s1 = inlined_call_operand.vmem [shape: f32[1,1,1,128], index: 1, kind: input, shape index: {}]   ;;  %s627_s2 = inlined_call_operand.vmem [shape: f32[1,1,1,128], index: 2, kind: input, shape index: {}]   ;;  %s628_s3 = inlined_call_operand.vmem [shape: f32[2,16,16,128], index: 3, kind: output, shape index: {}, may-alias: {0,3}]  }
   0x1   :  { %s529_s14 = smov 0   ;;  %s531_s15 = smov 0  }
   0x2   :  { %s533_s16 = smov 0  }
   0x3 LB: > { %s22_s17 = sadd.s32 1, %s495_s14  ;;  %s25_s18 = sadd.s32 1, %s499_s15  ;;  %s503_s16 = sphi %s533_s16, %s13_s16   ;;  %s499_s15 = sphi %s531_s15, %s632_s15   ;;  %s495_s14 = sphi %s529_s14, %s631_s14   ;;  %s491_s13 = sphi %s527_s13, %s630_s13   ;;  %s487_s12 = sphi %s525_s12, %s629_s12  }
   0x4   : > { %p23_p0 = scmp.ge.s32.totalorder %s22_s17, 2  ;;  %p412_p1 = scmp.ge.s32.totalorder %s503_s16, 1 }
   0x5   : > { %p159_p2 = scmp.lt.s32.totalorder %s503_s16, 5 }
   0x6   : > { %s634_s17 = smov (%p23_p0, %s22_s17), 0  ;;  %s636_s18 = smov (!%p23_p0, %s25_s18), %s499_s15 }
   0x7   : > { %p160_p3 = pnand %p412_p1, %p159_p2  ;;  %p27_p4 = scmp.ge.s32.totalorder %s636_s18, 2 }
   0x8   : > { %s413_s19 = sshll.u32 (!%p160_p3), %s487_s12, 3  ;;  %p194_p5 = scmp.lt.s32.totalorder (!%p160_p3), %s491_s13, 1 }
   0x9   : > { %s638_s18 = smov (%p27_p4, %s636_s18), 0  ;;  %163 = sbr.rel (%p160_p3) target bundleno = 38 (0x26), region = 32 }
   0xa   : > { %p196_p6 = scmp.lt.s32.totalorder (!%p160_p3), %s413_s19, 15 }
   0xe   : > { %s640_s13 = smov (!%p194_p5, %s491_s13), 1  ;;  %s642_s19 = smov (!%p196_p6, %s413_s19), 15  ;;  %v421_v0 = vld [vmem:[%s626_s1] ss:$0 sm:$0xff] }
   0xf   : > { %s415_s20 = sshll.u32 %s640_s13, 5  ;;  %s414_s21 = sshll.u32 %s642_s19, 1  ;;  %v422_v1 = vld [vmem:[%s627_s2] ss:$0 sm:$0xff] }
  0x10   : > { %s555_s22 = sadd.s32 %s415_s20, %s414_s21 }
  0x11   : > { %s416_s23 = sshll.u32 %s555_s22, 3 }
  0x12   : > { %s566_s28 = scalar_lea.vmem %s625_s0, %s416_s23  ;;  %s592_s6 = scalar_lea.vmem %s628_s3, %s416_s23 }
  0x13   : > { %v215_v2 = vld [vmem:[%s566_s28] sm:$0xff]  ;;  %v216_v3 = vld [vmem:[%s566_s28 + $0x8] sm:$0xff]  ;;  %v217_v4 = vld [vmem:[%s566_s28 + $0x10] sm:$0xff] }
  0x14   : > { %v218_v5 = vld [vmem:[%s566_s28 + $0x18] sm:$0xff]  ;;  %v219_v6 = vld [vmem:[%s566_s28 + $0x20] sm:$0xff]  ;;  %v220_v7 = vld [vmem:[%s566_s28 + $0x28] sm:$0xff]  ;;  %v238_v8 = vmul.f32 %v421_v0, %v215_v2  ;;  %v239_v9 = vmul.f32 %v421_v0, %v216_v3  ;;  %v240_v10 = vmul.f32 %v421_v0, %v217_v4 }
  0x15   : > { %v221_v11 = vld [vmem:[%s566_s28 + $0x30] sm:$0xff]  ;;  %v222_v12 = vld [vmem:[%s566_s28 + $0x38] sm:$0xff]  ;;  %v223_v13 = vld [vmem:[%s566_s28 + $0x40] sm:$0xff]  ;;  %v241_v14 = vmul.f32 %v421_v0, %v218_v5  ;;  %v242_v15 = vmul.f32 %v421_v0, %v219_v6  ;;  %v243_v16 = vmul.f32 %v421_v0, %v220_v7 }
  0x16   : > { %v224_v17 = vld [vmem:[%s566_s28 + $0x48] sm:$0xff]  ;;  %v225_v18 = vld [vmem:[%s566_s28 + $0x50] sm:$0xff]  ;;  %v226_v19 = vld [vmem:[%s566_s28 + $0x58] sm:$0xff]  ;;  %v244_v20 = vmul.f32 %v421_v0, %v221_v11  ;;  %v245_v21 = vmul.f32 %v421_v0, %v222_v12  ;;  %v246_v22 = vmul.f32 %v421_v0, %v223_v13  ;;  %v261_v23 = vadd.f32 %v422_v1, %v238_v8 }
  0x17   : > { %v227_v24 = vld [vmem:[%s566_s28 + $0x60] sm:$0xff]  ;;  %v228_v25 = vld [vmem:[%s566_s28 + $0x68] sm:$0xff]  ;;  %v229_v26 = vld [vmem:[%s566_s28 + $0x70] sm:$0xff]  ;;  %v247_v27 = vmul.f32 %v421_v0, %v224_v17  ;;  %v248_v28 = vmul.f32 %v421_v0, %v225_v18  ;;  %v249_v29 = vmul.f32 %v421_v0, %v226_v19  ;;  %v262_v30 = vadd.f32 %v422_v1, %v239_v9 }
  0x18   : > { %v230_v31 = vld [vmem:[%s566_s28 + $0x78] sm:$0xff]  ;;  %v250_v32 = vmul.f32 %v421_v0, %v227_v24  ;;  %v251_v33 = vmul.f32 %v421_v0, %v228_v25  ;;  %v252_v34 = vmul.f32 %v421_v0, %v229_v26  ;;  %v263_v35 = vadd.f32 %v422_v1, %v240_v10 }
  0x19   : > { %v253_v36 = vmul.f32 %v421_v0, %v230_v31  ;;  %v264_v37 = vadd.f32 %v422_v1, %v241_v14  ;;  %v265_v38 = vadd.f32 %v422_v1, %v242_v15  ;;  %v266_v39 = vadd.f32 %v422_v1, %v243_v16 }
  0x1a   : > { %v267_v40 = vadd.f32 %v422_v1, %v244_v20  ;;  %v268_v41 = vadd.f32 %v422_v1, %v245_v21  ;;  %v269_v42 = vadd.f32 %v422_v1, %v246_v22  ;;  %v270_v43 = vadd.f32 %v422_v1, %v247_v27 }
  0x1b   : > { %v271_v44 = vadd.f32 %v422_v1, %v248_v28  ;;  %v272_v45 = vadd.f32 %v422_v1, %v249_v29  ;;  %v273_v46 = vadd.f32 %v422_v1, %v250_v32  ;;  %v274_v47 = vadd.f32 %v422_v1, %v251_v33 }
  0x1c   : > { %v275_v48 = vadd.f32 %v422_v1, %v252_v34  ;;  %v276_v49 = vadd.f32 %v422_v1, %v253_v36  ;;  %v277_v50 = vmax.f32 %v261_v23, 0.0  ;;  %v278_v51 = vmax.f32 %v262_v30, 0.0 }
  0x1d   : > { %v279_v52 = vmax.f32 %v263_v35, 0.0  ;;  %v280_v53 = vmax.f32 %v264_v37, 0.0  ;;  %v281_v54 = vmax.f32 %v265_v38, 0.0  ;;  %v282_v55 = vmax.f32 %v266_v39, 0.0 }
  0x1e   : > { %v283_v56 = vmax.f32 %v267_v40, 0.0  ;;  %v284_v57 = vmax.f32 %v268_v41, 0.0  ;;  %v285_v58 = vmax.f32 %v269_v42, 0.0  ;;  %v286_v59 = vmax.f32 %v270_v43, 0.0  ;;  %293 = vst [vmem:[%s592_s6] sm:$0xff] %v277_v50  ;;  %294 = vst [vmem:[%s592_s6 + $0x8] sm:$0xff] %v278_v51 }
  0x1f   : > { %v287_v60 = vmax.f32 %v271_v44, 0.0  ;;  %v288_v61 = vmax.f32 %v272_v45, 0.0  ;;  %v289_v62 = vmax.f32 %v273_v46, 0.0  ;;  %v290_v63 = vmax.f32 %v274_v47, 0.0  ;;  %295 = vst [vmem:[%s592_s6 + $0x10] sm:$0xff] %v279_v52  ;;  %296 = vst [vmem:[%s592_s6 + $0x18] sm:$0xff] %v280_v53 }
  0x20   : > { %297 = vst [vmem:[%s592_s6 + $0x20] sm:$0xff] %v281_v54  ;;  %298 = vst [vmem:[%s592_s6 + $0x28] sm:$0xff] %v282_v55  ;;  %v291_v0 = vmax.f32 %v275_v48, 0.0  ;;  %v292_v1 = vmax.f32 %v276_v49, 0.0 }
  0x21   : > { %299 = vst [vmem:[%s592_s6 + $0x30] sm:$0xff] %v283_v56  ;;  %300 = vst [vmem:[%s592_s6 + $0x38] sm:$0xff] %v284_v57 }
  0x22   : > { %301 = vst [vmem:[%s592_s6 + $0x40] sm:$0xff] %v285_v58  ;;  %302 = vst [vmem:[%s592_s6 + $0x48] sm:$0xff] %v286_v59 }
  0x23   : > { %303 = vst [vmem:[%s592_s6 + $0x50] sm:$0xff] %v287_v60  ;;  %304 = vst [vmem:[%s592_s6 + $0x58] sm:$0xff] %v288_v61 }
  0x24   : > { %305 = vst [vmem:[%s592_s6 + $0x60] sm:$0xff] %v289_v62  ;;  %306 = vst [vmem:[%s592_s6 + $0x68] sm:$0xff] %v290_v63 }
  0x25   : > { %307 = vst [vmem:[%s592_s6 + $0x70] sm:$0xff] %v291_v0  ;;  %308 = vst [vmem:[%s592_s6 + $0x78] sm:$0xff] %v292_v1 }
  0x26 PF: > { %s13_s16 = sadd.s32 1, %s503_s16   ;;  %s629_s12 = smov %s495_s14 }
  0x27   : > { %p10_p7 = scmp.ge.s32.totalorder %s13_s16, 6   ;;  %s630_s13 = smov %s499_s15 }
  0x28   : > { %s631_s14 = smov %s634_s17  ;;  %s632_s15 = smov %s638_s18 }
  0x29   :  { %12 = sbr.rel (!%p10_p7) target bundleno = 3 (0x3), region = 62 }

// kernel: conv_block_forward.2
= control target key start
LH: loop header
LB: loop body
LE: loop exit
PB: predicated region body
PF: predicated region fallthrough
CT: control target
= control target key end

     0   :  { %s7902_s15 = smov 0   ;;  %s7904_s16 = smov 0   ;;  %s8811_s0 = inlined_call_operand.vmem [shape: f32[2,18,18,8], index: 0, kind: input, shape index: {}]   ;;  %s8812_s1 = inlined_call_operand.vmem [shape: f32[3,3,8,128], index: 1, kind: input, shape index: {}]   ;;  %s8813_s2 = inlined_call_operand.vmem [shape: f32[2,16,16,128], index: 2, kind: output, shape index: {0}]   ;;  %s8814_s3 = inlined_call_operand.vmem [shape: f32[2,1,128], index: 3, kind: output, shape index: {1}]   ;;  %s8815_s4 = inlined_call_operand.vmem [shape: f32[2,1,128], index: 4, kind: output, shape index: {2}]  }
   0x1   :  { %s7906_s17 = smov 0   ;;  %s7908_s18 = smov 0  }
   0x2   :  { %s7910_s19 = smov 0  }
   0x3 LB: > { %s24_s20 = sadd.s32 1, %s7866_s17  ;;  %s27_s21 = sadd.s32 1, %s7870_s18  ;;  %s7874_s19 = sphi %s7910_s19, %s15_s19   ;;  %s7870_s18 = sphi %s7908_s18, %s8863_s18   ;;  %s7866_s17 = sphi %s7906_s17, %s8862_s17   ;;  %s7862_s16 = sphi %s7904_s16, %s8861_s16   ;;  %s7858_s15 = sphi %s7902_s15, %s8860_s15  }
   0x4   : > { %p25_p0 = scmp.ge.s32.totalorder %s24_s20, 2  ;;  %p6898_p1 = scmp.ge.s32.totalorder %s7874_s19, 1 }
   0x5   : > { %p181_p2 = scmp.lt.s32.totalorder %s7874_s19, 5 }
   0x6   : > { %s8865_s20 = smov (%p25_p0, %s24_s20), 0  ;;  %s8867_s21 = smov (!%p25_p0, %s27_s21), %s7870_s18 }
   0x7   : > { %p182_p3 = pnand %p6898_p1, %p181_p2  ;;  %p29_p4 = scmp.ge.s32.totalorder %s8867_s21, 2 }
   0x9   : > { %s8869_s21 = smov (%p29_p4, %s8867_s21), 0  ;;  %185 = sbr.rel (%p182_p3) target bundleno = 396 (0x18c), region = 28 }
   0xe   : > { %p218_p5 = scmp.lt.s32.totalorder %s7862_s16, 1  ;;  %s6900_s22 = sshll.u32 %s7858_s15, 3 }
   0xf   : > { %p226_p6 = scmp.lt.s32.totalorder %s6900_s22, 15  ;;  %p6904_p7 = scmp.ne.s32.totalorder %s7858_s15, 0 }
  0x10   : > { %s8871_s16 = smov (!%p218_p5, %s7862_s16), 1 }
  0x11   : > { %s8873_s22 = smov (!%p226_p6, %s6900_s22), 15  ;;  %s7794_s23 = smul.u32 432, %s8871_s16 }
  0x12   : > { %s6902_s24 = sshll.u32 %s8871_s16, 5  ;;  %s6901_s25 = sshll.u32 %s8873_s22, 1 }
  0x13   : > { %s7938_s28 = scalar_lea.vmem %s8814_s3, %s8871_s16  ;;  %s222_s5 = scalar_lea.vmem %s8811_s0, %s7794_s23 }
  0x14   : > { %s230_s6 = sadd.s32 %s6902_s24, %s6901_s25  ;;  %s7946_s10 = scalar_lea.vmem %s8815_s4, %s8871_s16 }
  0x15   : > { %s6903_s7 = sshll.u32 %s230_s6, 3  ;;  %243 = sbr.rel (%p6904_p7) target bundleno = 28 (0x1c), region = 32 }
  0x16   : > { %s7951_s13 = scalar_lea.vmem %s8813_s2, %s6903_s7 }
  0x1a   : > { %v7876_v0 = vmov 0.0  }
  0x1b   : > { %244 = vst [vmem:[%s7938_s28] sm:$0x1] %v7876_v0  ;;  %245 = vst [vmem:[%s7946_s10] sm:$0x1] %v7876_v0 }
  0x1c PF: > { %v7959_v1 = vld [vmem:[%s8812_s1 + $0x8] sm:$0xff]  ;;  %v7964_v2 = vld [vmem:[%s8812_s1] sm:$0xff]  ;;  %s6906_s24 = smul.u32 192, %s7858_s15  ;;  %v7970_v3 = vld [vmem:[%s8812_s1 + $0x10] sm:$0xff]  ;;  %vm264_vm0 = vcmask 64512   ;;  %vm258_vm1 = vcmask 1046528  }
  0x1d   : > { %7434 = vmatprep.subr.mxu0 %v7959_v1  ;;  %7439 = vmatprep.subr.mxu1 %v7964_v2  ;;  %v7977_v4 = vld [vmem:[%s8812_s1 + $0x18] sm:$0xff]  ;;  %v7986_v5 = vld [vmem:[%s8812_s1 + $0x28] sm:$0xff]  ;;  %vm425_vm2 = vcmask 1045504   ;;  %v8026_v27 = vld [vmem:[%s8812_s1 + $0x20] sm:$0xff] }
  0x1e   : > { %7435 = vmatpush3.msra.mxu0 %v7959_v1  ;;  %s7980_s30 = scalar_lea.vmem %s222_s5, %s6906_s24  ;;  %7440 = vmatpush3.msra.mxu1 %v7964_v2  ;;  %v8042_v34 = vld [vmem:[%s8812_s1 + $0x38] sm:$0xff]  ;;  %v8058_v37 = vld [vmem:[%s8812_s1 + $0x30] sm:$0xff]  ;;  %v8092_v48 = vld [vmem:[%s8812_s1 + $0x40] sm:$0xff] }
  0x1f   : > { %v249_v6 = vld [vmem:[%s7980_s30] sm:$0xff]  ;;  %v250_v7 = vld [vmem:[%s7980_s30 + $0x8] sm:$0xff]  ;;  %7444 = vmatprep.subr.mxu0 %v7970_v3  ;;  %v251_v8 = vld [vmem:[%s7980_s30 + $0x10] sm:$0x3]  ;;  %7449 = vmatprep.subr.mxu1 %v7977_v4 }
  0x20   : > { %v259_v9 = vrot.slane %v249_v6, 1  ;;  %v260_v10 = vrot.slane %v250_v7, 1  ;;  %7441 = vmatprep.mubr.msk.f32.mxu1 %vm264_vm0, %v249_v6  ;;  %v262_v11 = vrot.slane %v251_v8, 1  ;;  %v429_v12 = vrot.slane %v251_v8, 2  ;;  %v7995_v13 = vld [vmem:[%s7980_s30 + $0x18] sm:$0xff]  ;;  %v7998_v14 = vld [vmem:[%s7980_s30 + $0x20] sm:$0xff] }
  0x21   : > { %7442 = vmatmul.mubr.msk.f32.vlgmr.msra.gmra.mxu1 %vm264_vm0, %v250_v7  ;;  %v426_v15 = vrot.slane %v249_v6, 2  ;;  %v427_v16 = vrot.slane %v250_v7, 2  ;;  %v606_v17 = vrot.slane %v7995_v13, 1  ;;  %v694_v18 = vrot.slane %v7995_v13, 2  ;;  %v6919_v19 = vld [vmem:[%s7980_s30 + $0x28] sm:$0x3] }
  0x22   : > { %v261_v20 = vsel %vm258_vm1, %v259_v9, %v260_v10  ;;  %v263_v21 = vsel %vm258_vm1, %v260_v10, %v262_v11  ;;  %7450 = vmatpush3.msra.mxu1 %v7977_v4  ;;  %7451 = vmatprep.mubr.msk.f32.mxu1 %vm264_vm0, %v7995_v13  ;;  %v8010_v22 = vrot.slane %v7998_v14, 1  ;;  %v8013_v23 = vrot.slane %v7998_v14, 2  ;;  %v8016_v24 = vld [vmem:[%s7980_s30 + $0x30] sm:$0xff]  ;;  %v8019_v25 = vld [vmem:[%s7980_s30 + $0x38] sm:$0xff]  ;;  %v6933_v31 = vld [vmem:[%s7980_s30 + $0x40] sm:$0x3] }
  0x23   : > { %7436 = vmatprep.mubr.msk.f32.mxu0 %vm264_vm0, %v261_v20  ;;  %v428_v26 = vsel %vm425_vm2, %v426_v15, %v427_v16  ;;  %7459 = vmatprep.subr.mxu1 %v7986_v5  ;;  %v697_v28 = vrot.slane %v6919_v19, 2  ;;  %v874_v30 = vrot.slane %v8016_v24, 1  ;;  %v430_v32 = vsel %vm425_vm2, %v427_v16, %v429_v12  ;;  %v6945_v41 = vld [vmem:[%s7980_s30 + $0x28] sm:$0x3]  ;;  %v6956_v43 = vld [vmem:[%s7980_s30 + $0x40] sm:$0x3] }
  0x24   : > { %7437 = vmatmul.mubr.msk.f32.vlgmr.msra.gmra.mxu0 %vm264_vm0, %v263_v21  ;;  %v8032_v29 = vsel %vm425_vm2, %v694_v18, %v8013_v23  ;;  %v609_v33 = vrot.slane %v6919_v19, 1  ;;  %v8045_v35 = vrot.slane %v8019_v25, 1  ;;  %v608_v36 = vsel %vm258_vm1, %v606_v17, %v8010_v22  ;;  %v8081_v46 = vld [vmem:[%s7980_s30 + $0x48] sm:$0xff]  ;;  %v8084_v47 = vld [vmem:[%s7980_s30 + $0x50] sm:$0xff]  ;;  %v8097_v52 = vld [vmem:[%s7980_s30 + $0x58] sm:$0x3] }
  0x25   : > { %7445 = vmatpush3.msra.mxu0 %v7970_v3  ;;  %7446 = vmatprep.mubr.msk.f32.mxu0 %vm264_vm0, %v428_v26  ;;  %v698_v38 = vsel %vm425_vm2, %v8013_v23, %v697_v28  ;;  %v877_v39 = vrot.slane %v6933_v31, 1  ;;  %v962_v44 = vrot.slane %v8016_v24, 2  ;;  %v8078_v45 = vrot.slane %v8019_v25, 2  ;;  %v8109_v58 = vld [vmem:[%s7980_s30 + $0x78] sm:$0xff]  ;;  %v8123_v63 = vld [vmem:[%s7980_s30 + $0x40] sm:$0x3] }
  0x26   : > { %7454 = vmatprep.subr.mxu0 %v8026_v27  ;;  %7452 = vmatmul.mubr.msk.f32.vlgmr.msra.gmra.mxu1 %vm264_vm0, %v7998_v14  ;;  %v8066_v40 = vsel %vm258_vm1, %v874_v30, %v8045_v35  ;;  %v610_v42 = vsel %vm258_vm1, %v8010_v22, %v609_v33  ;;  %v965_v50 = vrot.slane %v6933_v31, 2  ;;  %v1079_v51 = vrot.slane %v6945_v41, 1  ;;  %v8132_v7 = vld [vmem:[%s7980_s30 + $0x68] sm:$0xff]  ;;  %v8135_v8 = vld [vmem:[%s7980_s30 + $0x80] sm:$0xff]  ;;  %v7062_v16 = vld [vmem:[%s7980_s30 + $0x70] sm:$0x3] }
  0x27   : > { %7460 = vmatpush3.msra.mxu1 %v7986_v5  ;;  %7461 = vmatprep.mubr.msk.f32.mxu1 %vm264_vm0, %v8032_v29  ;;  %v878_v49 = vsel %vm258_vm1, %v8045_v35, %v877_v39  ;;  %v1243_v53 = vrot.slane %v6945_v41, 2  ;;  %v1418_v54 = vrot.slane %v6956_v43, 1  ;;  %v1680_v55 = vrot.slane %v8081_v46, 1  ;;  %v7048_v15 = vld [vmem:[%s7980_s30 + $0x88] sm:$0x3] }
  0x28   : > { %7447 = vmatmul.mubr.msk.f32.vlgmr.msra.gmra.mxu0 %vm264_vm0, %v430_v32  ;;  %7469 = vmatprep.subr.mxu1 %v8042_v34  ;;  %v1505_v56 = vrot.slane %v6956_v43, 2  ;;  %v8106_v57 = vrot.slane %v8084_v47, 1  ;;  %v8115_v59 = vsel %vm425_vm2, %v962_v44, %v8078_v45  ;;  %v1767_v60 = vrot.slane %v8081_v46, 2  ;;  %v7073_v21 = vld [vmem:[%s7980_s30 + $0x88] sm:$0x3] }
  0x29   : > { %7455 = vmatpush3.msra.mxu0 %v8026_v27  ;;  %7456 = vmatprep.mubr.msk.f32.mxu0 %vm264_vm0, %v608_v36  ;;  %v8119_v61 = vrot.slane %v8084_v47, 2  ;;  %v1683_v62 = vrot.slane %v8097_v52, 1  ;;  %v966_v0 = vsel %vm425_vm2, %v8078_v45, %v965_v50  ;;  %v1080_v6 = vsel %vm258_vm1, %v8010_v22, %v1079_v51  ;;  %v7087_v43 = vld [vmem:[%s7980_s30 + $0xa0] sm:$0x3] }
  0x2a   : > { %7464 = vmatprep.subr.mxu0 %v8058_v37  ;;  %7462 = vmatmul.mubr.msk.f32.vlgmr.msra.gmra.mxu1 %vm264_vm0, %v698_v38  ;;  %v1244_v9 = vsel %vm425_vm2, %v8013_v23, %v1243_v53  ;;  %v8144_v10 = vsel %vm258_vm1, %v8045_v35, %v1418_v54  ;;  %v1770_v11 = vrot.slane %v8097_v52, 2  ;;  %v3292_v12 = vrot.slane %v8109_v58, 1  ;;  %v7101_v52 = vld [vmem:[%s7980_s30 + $0x88] sm:$0x3] }
  0x2b   : > { %7470 = vmatpush3.msra.mxu1 %v8042_v34  ;;  %7471 = vmatprep.mubr.msk.f32.mxu1 %vm264_vm0, %v8066_v40  ;;  %v8155_v17 = vsel %vm425_vm2, %v8078_v45, %v1505_v56  ;;  %v8159_v18 = vsel %vm258_vm1, %v1680_v55, %v8106_v57  ;;  %v8168_v22 = vsel %vm425_vm2, %v1767_v60, %v8119_v61  ;;  %v8175_v26 = vrot.slane %v8132_v7, 1  ;;  %v7112_v56 = vld [vmem:[%s7980_s30 + $0xa0] sm:$0x3]  ;;  %v8230_v60 = vld [vmem:[%s7980_s30 + $0xa8] sm:$0xff] }
  0x2c   : > { %7457 = vmatmul.mubr.msk.f32.vlgmr.msra.gmra.mxu0 %vm264_vm0, %v610_v42  ;;  %7479 = vmatprep.subr.mxu1 %v7959_v1  ;;  %v8172_v23 = vsel %vm258_vm1, %v8106_v57, %v1683_v62  ;;  %v3293_v28 = vrot.slane %v8135_v8, 1  ;;  %v8182_v30 = vrot.slane %v8135_v8, 2  ;;  %v3295_v31 = vrot.slane %v7048_v15, 1  ;;  %v8196_v42 = vld [vmem:[%s7980_s30 + $0x98] sm:$0xff]  ;;  %8826 = vst [vmem:[#allocation2_spill] sm:$0xff] %v8230_v60 }
  0x2d   : > { %7465 = vmatpush3.msra.mxu0 %v8058_v37  ;;  %7466 = vmatprep.mubr.msk.f32.mxu0 %vm264_vm0, %v8016_v24  ;;  %v3382_v32 = vrot.slane %v7048_v15, 2  ;;  %v3497_v33 = vrot.slane %v7062_v16, 1  ;;  %v8190_v38 = vrot.slane %v8132_v7, 2  ;;  %v3836_v41 = vrot.slane %v7073_v21, 1 }
  0x2e   : > { %7474 = vmatprep.subr.mxu0 %v8092_v48  ;;  %7472 = vmatmul.mubr.msk.f32.vlgmr.msra.gmra.mxu1 %vm264_vm0, %v878_v49  ;;  %v8193_v39 = vsel %vm258_vm1, %v3292_v12, %v3293_v28  ;;  %v8204_v44 = vsel %vm425_vm2, %v8119_v61, %v1770_v11  ;;  %v8207_v49 = vsel %vm258_vm1, %v3293_v28, %v3295_v31  ;;  %v3923_v51 = vrot.slane %v7073_v21, 2  ;;  %v8246_v21 = vld [vmem:[%s7980_s30 + $0xb0] sm:$0xff] }
  0x2f   : > { %7480 = vmatpush3.msra.mxu1 %v7959_v1  ;;  %7481 = vmatprep.mubr.msk.f32.mxu1 %vm264_vm0, %v608_v36  ;;  %v8185_v36 = vld [vmem:[%s7980_s30 + $0x90] sm:$0xff]  ;;  %v8211_v50 = vsel %vm425_vm2, %v8182_v30, %v3382_v32  ;;  %v8225_v54 = vsel %vm258_vm1, %v3293_v28, %v3836_v41  ;;  %v4186_v11 = vrot.slane %v8196_v42, 2  ;;  %v4188_v12 = vrot.slane %v7087_v43, 2  ;;  %8827 = vst [vmem:[#allocation3_spill] sm:$0xff] %v8246_v21  ;;  %v7140_v41 = vld [vmem:[%s7980_s30 + $0xa0] sm:$0x3] }
  0x30   : > { %7467 = vmatmul.mubr.msk.f32.vlgmr.msra.gmra.mxu0 %vm264_vm0, %v8019_v25  ;;  %7489 = vmatprep.subr.mxu1 %v7970_v3  ;;  %v4098_v55 = vrot.slane %v8185_v36, 1  ;;  %v8237_v62 = vsel %vm425_vm2, %v8182_v30, %v3923_v51  ;;  %v4303_v15 = vrot.slane %v7101_v52, 1  ;;  %v4642_v32 = vrot.slane %v7112_v56, 1 }
  0x31   : > { %7475 = vmatpush3.msra.mxu0 %v8092_v48  ;;  %7476 = vmatprep.mubr.msk.f32.mxu0 %vm264_vm0, %v8115_v59  ;;  %v8267_v51 = vsel %vm425_vm2, %v4186_v11, %v4188_v12  ;;  %v4729_v12 = vrot.slane %v7112_v56, 2 }
  0x32   : > { %7484 = vmatprep.subr.mxu0 %v7964_v2  ;;  %7482 = vmatmul.mubr.msk.f32.vlgmr.msra.gmra.mxu1 %vm264_vm0, %v1080_v6  ;;  %v4099_v6 = vrot.slane %v8196_v42, 1  ;;  %8828 = vst [vmem:[#allocation4_spill] sm:$0xff] %v8267_v51 }
  0x33   : > { %7490 = vmatpush3.msra.mxu1 %v7970_v3  ;;  %7491 = vmatprep.mubr.msk.f32.mxu1 %vm264_vm0, %v8032_v29  ;;  %v3661_v29 = vrot.slane %v7062_v16, 2  ;;  %v4467_v16 = vrot.slane %v7101_v52, 2  ;;  %v8270_v52 = vsel %vm258_vm1, %v3293_v28, %v4303_v15  ;;  %v4905_v28 = vrot.slane %v8246_v21, 1 }
  0x34   : > { %7477 = vmatmul.mubr.msk.f32.vlgmr.msra.gmra.mxu0 %vm264_vm0, %v966_v0  ;;  %7499 = vmatprep.subr.mxu1 %v8026_v27  ;;  %v4185_v0 = vrot.slane %v8185_v36, 2  ;;  %v8252_v31 = vsel %vm258_vm1, %v4098_v55, %v4099_v6  ;;  %8829 = vst [vmem:[#allocation5_spill] sm:$0xff] %v8270_v52  ;;  %v4991_v55 = vrot.slane %v8230_v60, 2  ;;  %v4992_v15 = vrot.slane %v8246_v21, 2  ;;  %v8302_v21 = vld [vmem:[%s7980_s30 + $0xc8] sm:$0xff] }
  0x35   : > { %7485 = vmatpush3.msra.mxu0 %v7964_v2  ;;  %7486 = vmatprep.mubr.msk.f32.mxu0 %vm264_vm0, %v7995_v13  ;;  %v8218_v13 = vsel %vm258_vm1, %v8175_v26, %v3497_v33  ;;  %v8222_v53 = vsel %vm425_vm2, %v8190_v38, %v3661_v29  ;;  %v4904_v33 = vrot.slane %v8230_v60, 1  ;;  %v7126_v29 = vld [vmem:[%s7980_s30 + $0xb8] sm:$0x3]  ;;  %v5109_v60 = vrot.slane %v7140_v41, 1  ;;  %8835 = vst [vmem:[#allocation11_spill] sm:$0xff] %v8302_v21 }
  0x36   : > { %7494 = vmatprep.subr.mxu0 %v7977_v4  ;;  %7492 = vmatmul.mubr.msk.f32.vlgmr.msra.gmra.mxu1 %vm264_vm0, %v1244_v9  ;;  %v4101_v9 = vrot.slane %v7087_v43, 1  ;;  %v8264_v43 = vsel %vm425_vm2, %v4185_v0, %v4186_v11  ;;  %v8282_v0 = vsel %vm258_vm1, %v4099_v6, %v4642_v32  ;;  %v4907_v20 = vrot.slane %v7126_v29, 1 }
  0x37   : > { %7500 = vmatpush3.msra.mxu1 %v8026_v27  ;;  %7501 = vmatprep.mubr.msk.f32.mxu1 %vm264_vm0, %v8066_v40  ;;  %8831 = vst [vmem:[#allocation7_spill] sm:$0xff] %v8282_v0  ;;  %v4994_v19 = vrot.slane %v7126_v29, 2  ;;  %v8296_v56 = vsel %vm425_vm2, %v4186_v11, %v4729_v12  ;;  %v8299_v32 = vsel %vm258_vm1, %v4904_v33, %v4905_v28  ;;  %v5273_v0 = vrot.slane %v7140_v41, 2  ;;  %v7165_v29 = vld [vmem:[%s7980_s30 + $0xd0] sm:$0x3] }
  0x38   : > { %7487 = vmatmul.mubr.msk.f32.vlgmr.msra.gmra.mxu0 %vm264_vm0, %v7998_v14  ;;  %7509 = vmatprep.subr.mxu1 %v8058_v37  ;;  %v8255_v14 = vsel %vm258_vm1, %v4099_v6, %v4101_v9  ;;  %v7151_v9 = vld [vmem:[%s7980_s30 + $0xb8] sm:$0x3]  ;;  %8833 = vst [vmem:[#allocation9_spill] sm:$0xff] %v8296_v56  ;;  %8834 = vst [vmem:[#allocation10_spill] sm:$0xff] %v8299_v32  ;;  %v8309_v51 = vsel %vm425_vm2, %v4991_v55, %v4992_v15 }
  0x39   : > { %7495 = vmatpush3.msra.mxu0 %v7977_v4  ;;  %7496 = vmatprep.mubr.msk.f32.mxu0 %vm264_vm0, %v8016_v24  ;;  %v8312_v12 = vsel %vm258_vm1, %v4905_v28, %v4907_v20  ;;  %v8315_v33 = vsel %vm425_vm2, %v4992_v15, %v4994_v19  ;;  %v5535_v41 = vrot.slane %v7151_v9, 2  ;;  %v7179_v32 = vld [vmem:[%s7980_s30 + $0xb8] sm:$0x3]  ;;  %v8322_v56 = vsel %vm258_vm1, %v4099_v6, %v5109_v60  ;;  %v7190_v20 = vld [vmem:[%s7980_s30 + $0xd0] sm:$0x3] }
  0x3a   : > { %7504 = vmatprep.subr.mxu0 %v7986_v5  ;;  %7502 = vmatmul.mubr.msk.f32.vlgmr.msra.gmra.mxu1 %vm264_vm0, %v8144_v10  ;;  %v8279_v10 = vsel %vm425_vm2, %v8182_v30, %v4467_v16  ;;  %v8290_v16 = vld [vmem:[%s7980_s30 + $0xc0] sm:$0xff]  ;;  %8836 = vst [vmem:[#allocation12_spill] sm:$0xff] %v8322_v56  ;;  %v8325_v52 = vsel %vm425_vm2, %v4186_v11, %v5273_v0  ;;  %v5711_v11 = vrot.slane %v8302_v21, 1  ;;  %v5798_v0 = vrot.slane %v8302_v21, 2 }
  0x3b   : > { %7510 = vmatpush3.msra.mxu1 %v8058_v37  ;;  %7511 = vmatprep.mubr.msk.f32.mxu1 %vm264_vm0, %v8081_v46  ;;  %8830 = vst [vmem:[#allocation6_spill] sm:$0xff] %v8279_v10  ;;  %8832 = vst [vmem:[#allocation8_spill] sm:$0xff] %v8290_v16  ;;  %v5448_v10 = vrot.slane %v7151_v9, 1  ;;  %v5710_v19 = vrot.slane %v8290_v16, 1  ;;  %v8333_v9 = vld [vmem:[%s7980_s30 + $0xd8] sm:$0xff]  ;;  %v8339_v60 = vsel %vm425_vm2, %v4992_v15, %v5535_v41  ;;  %v5797_v6 = vrot.slane %v8290_v16, 2 }
  0x3c   : > { %7497 = vmatmul.mubr.msk.f32.vlgmr.msra.gmra.mxu0 %vm264_vm0, %v8019_v25  ;;  %7519 = vmatprep.subr.mxu1 %v8092_v48  ;;  %8837 = vst [vmem:[#allocation13_spill] sm:$0xff] %v8325_v52  ;;  %8839 = vst [vmem:[#allocation15_spill] sm:$0xff] %v8339_v60  ;;  %v6079_v52 = vrot.slane %v7179_v32, 2  ;;  %v8348_v56 = vld [vmem:[%s7980_s30 + $0xe0] sm:$0xff]  ;;  %v6254_v60 = vrot.slane %v7190_v20, 1  ;;  %v6516_v21 = vrot.slane %v8333_v9, 1 }
  0x3d   : > { %7505 = vmatpush3.msra.mxu0 %v7986_v5  ;;  %7506 = vmatprep.mubr.msk.f32.mxu0 %vm264_vm0, %v8115_v59  ;;  %v8328_v55 = vsel %vm258_vm1, %v4905_v28, %v5448_v10  ;;  %v5713_v10 = vrot.slane %v7165_v29, 1  ;;  %v8354_v41 = vsel %vm258_vm1, %v5710_v19, %v5711_v11 }
  0x3e   : > { %7514 = vmatprep.subr.mxu0 %v8042_v34  ;;  %7512 = vmatmul.mubr.msk.f32.vlgmr.msra.gmra.mxu1 %vm264_vm0, %v8084_v47  ;;  %8838 = vst [vmem:[#allocation14_spill] sm:$0xff] %v8328_v55  ;;  %v5800_v55 = vrot.slane %v7165_v29, 2  ;;  %8840 = vst [vmem:[#allocation16_spill] sm:$0xff] %v8354_v41  ;;  %v7204_v29 = vld [vmem:[%s7980_s30 + $0xe8] sm:$0x3]  ;;  %v8379_v41 = vsel %vm425_vm2, %v4992_v15, %v6079_v52  ;;  %v6604_v52 = vrot.slane %v8348_v56, 2 }
  0x3f   : > { %7520 = vmatpush3.msra.mxu1 %v8092_v48  ;;  %7521 = vmatprep.mubr.msk.f32.mxu1 %vm264_vm0, %v8168_v22  ;;  %v8357_v16 = vsel %vm258_vm1, %v5711_v11, %v5713_v10  ;;  %v6603_v10 = vrot.slane %v8333_v9, 2  ;;  %v6519_v15 = vrot.slane %v7204_v29, 1 }
  0x40   : > { %7507 = vmatmul.mubr.msk.f32.vlgmr.msra.gmra.mxu0 %vm264_vm0, %v8155_v17  ;;  %7529 = vmatprep.subr.mxu1 %v7964_v2  ;;  %v5915_v17 = vrot.slane %v7179_v32, 1  ;;  %8841 = vst [vmem:[#allocation17_spill] sm:$0xff] %v8357_v16  ;;  %v8365_v32 = vsel %vm425_vm2, %v5797_v6, %v5798_v0  ;;  %v6995_v16 = vld [vmem:[%s7980_s30 + $0x58] sm:$0x3]  ;;  %v6341_v6 = vrot.slane %v7190_v20, 2 }
  0x41   : > { %7515 = vmatpush3.msra.mxu0 %v8042_v34  ;;  %7516 = vmatprep.mubr.msk.f32.mxu0 %vm264_vm0, %v8159_v18 }
  0x42   : > { %7524 = vmatprep.subr.mxu0 %v7959_v1  ;;  %7522 = vmatmul.mubr.msk.f32.vlgmr.msra.gmra.mxu1 %vm264_vm0, %v8204_v44  ;;  %v8368_v44 = vsel %vm425_vm2, %v5798_v0, %v5800_v55  ;;  %v8371_v19 = vsel %vm258_vm1, %v4905_v28, %v5915_v17  ;;  %v6517_v55 = vrot.slane %v8348_v56, 1  ;;  %v8842_v28 = vrot.slane %v8123_v63, 1  ;;  %v8393_v17 = vld [vmem:[%s7980_s30 + $0x60] sm:$0xff] }
  0x43   : > { %7530 = vmatpush3.msra.mxu1 %v7964_v2  ;;  %7531 = vmatprep.mubr.msk.f32.mxu1 %vm264_vm0, %v8016_v24  ;;  %v8382_v24 = vsel %vm258_vm1, %v5711_v11, %v6254_v60  ;;  %v6606_v60 = vrot.slane %v7204_v29, 2  ;;  %v8400_v20 = vsel %vm425_vm2, %v5798_v0, %v6341_v6  ;;  %v8409_v11 = vsel %vm425_vm2, %v6603_v10, %v6604_v52  ;;  %v7009_v0 = vld [vmem:[%s7980_s30 + $0x70] sm:$0x3] }
  0x44   : > { %7517 = vmatmul.mubr.msk.f32.vlgmr.msra.gmra.mxu0 %vm264_vm0, %v8172_v23  ;;  %7539 = vmatprep.subr.mxu1 %v7977_v4  ;;  %v1886_v23 = vsel %vm258_vm1, %v8045_v35, %v8842_v28  ;;  %v2311_v35 = vrot.slane %v6995_v16, 2  ;;  %v8412_v29 = vsel %vm258_vm1, %v6517_v55, %v6519_v15  ;;  %v8843_v10 = vrot.slane %v8123_v63, 2  ;;  %v7023_v63 = vld [vmem:[%s7980_s30 + $0x58] sm:$0x3] }
  0x45   : > { %7525 = vmatpush3.msra.mxu0 %v7959_v1  ;;  %7526 = vmatprep.mubr.msk.f32.mxu0 %vm264_vm0, %v8066_v40  ;;  %v8403_v40 = vsel %vm258_vm1, %v6516_v21, %v6517_v55  ;;  %v2486_v21 = vrot.slane %v8393_v17, 1  ;;  %v2224_v55 = vrot.slane %v6995_v16, 1  ;;  %v2691_v15 = vrot.slane %v7023_v63, 1 }
  0x46   : > { %7534 = vmatprep.subr.mxu0 %v7970_v3  ;;  %7532 = vmatmul.mubr.msk.f32.vlgmr.msra.gmra.mxu1 %vm264_vm0, %v8019_v25  ;;  %v8415_v25 = vsel %vm425_vm2, %v6604_v52, %v6606_v60  ;;  %v2050_v6 = vsel %vm425_vm2, %v8078_v45, %v8843_v10  ;;  %v2312_v28 = vsel %vm425_vm2, %v8119_v61, %v2311_v35  ;;  %v2576_v60 = vrot.slane %v7009_v0, 2 }
  0x47   : > { %7540 = vmatpush3.msra.mxu1 %v7977_v4  ;;  %7541 = vmatprep.mubr.msk.f32.mxu1 %vm264_vm0, %v8081_v46  ;;  %v8440_v45 = vsel %vm258_vm1, %v2486_v21, %v8175_v26  ;;  %v2225_v16 = vsel %vm258_vm1, %v8106_v57, %v2224_v55  ;;  %v2692_v21 = vsel %vm258_vm1, %v8106_v57, %v2691_v15  ;;  %v2855_v10 = vrot.slane %v7023_v63, 2 }
  0x48   : > { %7527 = vmatmul.mubr.msk.f32.vlgmr.msra.gmra.mxu0 %vm264_vm0, %v1886_v23  ;;  %7549 = vmatprep.subr.mxu1 %v7986_v5  ;;  %v2573_v23 = vrot.slane %v8393_v17, 2 }
  0x49   : > { %7535 = vmatpush3.msra.mxu0 %v7970_v3  ;;  %7536 = vmatprep.mubr.msk.f32.mxu0 %vm264_vm0, %v8115_v59  ;;  %v2489_v59 = vrot.slane %v7009_v0, 1  ;;  %v7034_v0 = vld [vmem:[%s7980_s30 + $0x70] sm:$0x3]  ;;  %v2856_v57 = vsel %vm425_vm2, %v8119_v61, %v2855_v10 }
  0x4a   : > { %7544 = vmatprep.subr.mxu0 %v8026_v27  ;;  %7542 = vmatmul.mubr.msk.f32.vlgmr.msra.gmra.mxu1 %vm264_vm0, %v8084_v47  ;;  %v8465_v35 = vsel %vm425_vm2, %v2573_v23, %v8190_v38 }
  0x4b   : > { %7550 = vmatpush3.msra.mxu1 %v7986_v5  ;;  %7551 = vmatprep.mubr.msk.f32.mxu1 %vm264_vm0, %v8168_v22  ;;  %v2490_v52 = vsel %vm258_vm1, %v8175_v26, %v2489_v59 }
  0x4c   : > { %7537 = vmatmul.mubr.msk.f32.vlgmr.msra.gmra.mxu0 %vm264_vm0, %v2050_v6  ;;  %7559 = vmatprep.subr.mxu1 %v8042_v34  ;;  %v2577_v6 = vsel %vm425_vm2, %v8190_v38, %v2576_v60 }
  0x4d   : > { %7545 = vmatpush3.msra.mxu0 %v8026_v27  ;;  %7546 = vmatprep.mubr.msk.f32.mxu0 %vm264_vm0, %v8159_v18 }
  0x4e   : > { %7554 = vmatprep.subr.mxu0 %v8058_v37  ;;  %7552 = vmatmul.mubr.msk.f32.vlgmr.msra.gmra.mxu1 %vm264_vm0, %v2312_v28 }
  0x4f   : > { %7560 = vmatpush3.msra.mxu1 %v8042_v34  ;;  %7561 = vmatprep.mubr.msk.f32.mxu1 %vm264_vm0, %v8440_v45 }
  0x50   : > { %7547 = vmatmul.mubr.msk.f32.vlgmr.msra.gmra.mxu0 %vm264_vm0, %v2225_v16  ;;  %7569 = vmatprep.subr.mxu1 %v7959_v1 }
  0x51   : > { %7555 = vmatpush3.msra.mxu0 %v8058_v37  ;;  %7556 = vmatprep.mubr.msk.f32.mxu0 %vm264_vm0, %v8393_v17 }
  0x52   : > { %7564 = vmatprep.subr.mxu0 %v8092_v48  ;;  %7562 = vmatmul.mubr.msk.f32.vlgmr.msra.gmra.mxu1 %vm264_vm0, %v2490_v52 }
  0x53   : > { %7570 = vmatpush3.msra.mxu1 %v7959_v1  ;;  %7571 = vmatprep.mubr.msk.f32.mxu1 %vm264_vm0, %v8159_v18  ;;  %v3030_v18 = vrot.slane %v7034_v0, 1 }
  0x54   : > { %7557 = vmatmul.mubr.msk.f32.vlgmr.msra.gmra.mxu0 %vm264_vm0, %v8132_v7  ;;  %7579 = vmatprep.subr.mxu1 %v7970_v3 }
  0x55   : > { %7565 = vmatpush3.msra.mxu0 %v8092_v48  ;;  %7566 = vmatprep.mubr.msk.f32.mxu0 %vm264_vm0, %v8465_v35  ;;  %v3031_v61 = vsel %vm258_vm1, %v8175_v26, %v3030_v18 }
  0x56   : > { %7574 = vmatprep.subr.mxu0 %v7964_v2  ;;  %7572 = vmatmul.mubr.msk.f32.vlgmr.msra.gmra.mxu1 %vm264_vm0, %v2692_v21 }
  0x57   : > { %7580 = vmatpush3.msra.mxu1 %v7970_v3  ;;  %7581 = vmatprep.mubr.msk.f32.mxu1 %vm264_vm0, %v8168_v22  ;;  %v3379_v22 = vrot.slane %v8109_v58, 2 }
  0x58   : > { %7567 = vmatmul.mubr.msk.f32.vlgmr.msra.gmra.mxu0 %vm264_vm0, %v2577_v6  ;;  %7589 = vmatprep.subr.mxu1 %v8026_v27 }
  0x59   : > { %7575 = vmatpush3.msra.mxu0 %v7964_v2  ;;  %7576 = vmatprep.mubr.msk.f32.mxu0 %vm264_vm0, %v8081_v46  ;;  %v3117_v46 = vrot.slane %v7034_v0, 2 }
  0x5a   : > { %7584 = vmatprep.subr.mxu0 %v7977_v4  ;;  %7582 = vmatmul.mubr.msk.f32.vlgmr.msra.gmra.mxu1 %vm264_vm0, %v2856_v57 }
  0x5b   : > { %7590 = vmatpush3.msra.mxu1 %v8026_v27  ;;  %7591 = vmatprep.mubr.msk.f32.mxu1 %vm264_vm0, %v8440_v45  ;;  %v3118_v26 = vsel %vm425_vm2, %v8190_v38, %v3117_v46  ;;  %v8846_v38 = vld [vmem:[#allocation6_spill] sm:$0xff] }
  0x5c   : > { %7577 = vmatmul.mubr.msk.f32.vlgmr.msra.gmra.mxu0 %vm264_vm0, %v8084_v47  ;;  %7599 = vmatprep.subr.mxu1 %v8058_v37  ;;  %v3381_v47 = vsel %vm425_vm2, %v3379_v22, %v8182_v30  ;;  %v8845_v30 = vld [vmem:[#allocation4_spill] sm:$0xff] }
  0x5d   : > { %7585 = vmatpush3.msra.mxu0 %v7977_v4  ;;  %7586 = vmatprep.mubr.msk.f32.mxu0 %vm264_vm0, %v8393_v17 }
  0x5e   : > { %7594 = vmatprep.subr.mxu0 %v7986_v5  ;;  %7592 = vmatmul.mubr.msk.f32.vlgmr.msra.gmra.mxu1 %vm264_vm0, %v3031_v61 }
  0x5f   : > { %7600 = vmatpush3.msra.mxu1 %v8058_v37  ;;  %7601 = vmatprep.mubr.msk.f32.mxu1 %vm264_vm0, %v8109_v58 }
  0x60   : > { %7587 = vmatmul.mubr.msk.f32.vlgmr.msra.gmra.mxu0 %vm264_vm0, %v8132_v7  ;;  %7609 = vmatprep.subr.mxu1 %v8092_v48 }
  0x61   : > { %7595 = vmatpush3.msra.mxu0 %v7986_v5  ;;  %7596 = vmatprep.mubr.msk.f32.mxu0 %vm264_vm0, %v8465_v35 }
  0x62   : > { %7604 = vmatprep.subr.mxu0 %v8042_v34  ;;  %7602 = vmatmul.mubr.msk.f32.vlgmr.msra.gmra.mxu1 %vm264_vm0, %v8135_v8 }
  0x63   : > { %7610 = vmatpush3.msra.mxu1 %v8092_v48  ;;  %7611 = vmatprep.mubr.msk.f32.mxu1 %vm264_vm0, %v3381_v47 }
  0x64   : > { %7597 = vmatmul.mubr.msk.f32.vlgmr.msra.gmra.mxu0 %vm264_vm0, %v3118_v26  ;;  %7619 = vmatprep.subr.mxu1 %v7964_v2 }
  0x65   : > { %7605 = vmatpush3.msra.mxu0 %v8042_v34  ;;  %7606 = vmatprep.mubr.msk.f32.mxu0 %vm264_vm0, %v8193_v39 }
  0x66   : > { %7614 = vmatprep.subr.mxu0 %v7959_v1  ;;  %7612 = vmatmul.mubr.msk.f32.vlgmr.msra.gmra.mxu1 %vm264_vm0, %v8211_v50  ;;  %v8851_v50 = vld [vmem:[#allocation10_spill] sm:$0xff] }
  0x67   : > { %7620 = vmatpush3.msra.mxu1 %v7964_v2  ;;  %7621 = vmatprep.mubr.msk.f32.mxu1 %vm264_vm0, %v8393_v17 }
  0x68   : > { %7607 = vmatmul.mubr.msk.f32.vlgmr.msra.gmra.mxu0 %vm264_vm0, %v8207_v49  ;;  %7629 = vmatprep.subr.mxu1 %v7977_v4  ;;  %v8850_v49 = vld [vmem:[#allocation9_spill] sm:$0xff] }
  0x69   : > { %7615 = vmatpush3.msra.mxu0 %v7959_v1  ;;  %7616 = vmatprep.mubr.msk.f32.mxu0 %vm264_vm0, %v8440_v45 }
  0x6a   : > { %7624 = vmatprep.subr.mxu0 %v7970_v3  ;;  %7622 = vmatmul.mubr.msk.f32.vlgmr.msra.gmra.mxu1 %vm264_vm0, %v8132_v7  ;;  %v8844_v7 = vld [vmem:[#allocation5_spill] sm:$0xff] }
  0x6b   : > { %7630 = vmatpush3.msra.mxu1 %v7977_v4  ;;  %7631 = vmatprep.mubr.msk.f32.mxu1 %vm264_vm0, %v8109_v58 }
  0x6c   : > { %7617 = vmatmul.mubr.msk.f32.vlgmr.msra.gmra.mxu0 %vm264_vm0, %v8218_v13  ;;  %7639 = vmatprep.subr.mxu1 %v7986_v5  ;;  %v8858_v13 = vld [vmem:[#allocation17_spill] sm:$0xff] }
  0x6d   : > { %7625 = vmatpush3.msra.mxu0 %v7970_v3  ;;  %7626 = vmatprep.mubr.msk.f32.mxu0 %vm264_vm0, %v8465_v35 }
  0x6e   : > { %7634 = vmatprep.subr.mxu0 %v8026_v27  ;;  %7632 = vmatmul.mubr.msk.f32.vlgmr.msra.gmra.mxu1 %vm264_vm0, %v8135_v8 }
  0x6f   : > { %7640 = vmatpush3.msra.mxu1 %v7986_v5  ;;  %7641 = vmatprep.mubr.msk.f32.mxu1 %vm264_vm0, %v3381_v47 }
  0x70   : > { %7627 = vmatmul.mubr.msk.f32.vlgmr.msra.gmra.mxu0 %vm264_vm0, %v8222_v53  ;;  %7649 = vmatprep.subr.mxu1 %v8042_v34  ;;  %v7194_v53 = vld [vmem:[%s8812_s1 + $0x20] sm:$0xff] }
  0x71   : > { %7635 = vmatpush3.msra.mxu0 %v8026_v27  ;;  %7636 = vmatprep.mubr.msk.f32.mxu0 %vm264_vm0, %v8193_v39 }
  0x72   : > { %7644 = vmatprep.subr.mxu0 %v8058_v37  ;;  %7642 = vmatmul.mubr.msk.f32.vlgmr.msra.gmra.mxu1 %vm264_vm0, %v8237_v62  ;;  %v7197_v62 = vld [vmem:[%s8812_s1 + $0x28] sm:$0xff] }
  0x73   : > { %7650 = vmatpush3.msra.mxu1 %v8042_v34  ;;  %7651 = vmatprep.mubr.msk.f32.mxu1 %vm264_vm0, %v8252_v31 }
  0x74   : > { %7637 = vmatmul.mubr.msk.f32.vlgmr.msra.gmra.mxu0 %vm264_vm0, %v8225_v54  ;;  %7659 = vmatprep.subr.mxu1 %v7959_v1  ;;  %v7191_v54 = vld [vmem:[%s8812_s1 + $0x18] sm:$0xff] }
  0x75   : > { %7645 = vmatpush3.msra.mxu0 %v8058_v37  ;;  %7646 = vmatprep.mubr.msk.f32.mxu0 %vm264_vm0, %v8185_v36 }
  0x76   : > { %7654 = vmatprep.subr.mxu0 %v8092_v48  ;;  %7652 = vmatmul.mubr.msk.f32.vlgmr.msra.gmra.mxu1 %vm264_vm0, %v8255_v14  ;;  %v7208_v14 = vld [vmem:[%s8812_s1 + $0x38] sm:$0xff] }
  0x77   : > { %7660 = vmatpush3.msra.mxu1 %v7959_v1  ;;  %7661 = vmatprep.mubr.msk.f32.mxu1 %vm264_vm0, %v8193_v39  ;;  %v8848_v39 = vld [vmem:[#allocation2_spill] sm:$0xff] }
  0x78   : > { %7647 = vmatmul.mubr.msk.f32.vlgmr.msra.gmra.mxu0 %vm264_vm0, %v8196_v42  ;;  %7669 = vmatprep.subr.mxu1 %v7970_v3 }
  0x79   : > { %7655 = vmatpush3.msra.mxu0 %v8092_v48  ;;  %7656 = vmatprep.mubr.msk.f32.mxu0 %vm264_vm0, %v8264_v43 }
  0x7a   : > { %7664 = vmatprep.subr.mxu0 %v7964_v2  ;;  %7662 = vmatmul.mubr.msk.f32.vlgmr.msra.gmra.mxu1 %vm264_vm0, %v8844_v7 }
  0x7b   : > { %7670 = vmatpush3.msra.mxu1 %v7970_v3  ;;  %7671 = vmatprep.mubr.msk.f32.mxu1 %vm264_vm0, %v3381_v47 }
  0x7c   : > { %7657 = vmatmul.mubr.msk.f32.vlgmr.msra.gmra.mxu0 %vm264_vm0, %v8845_v30  ;;  %7679 = vmatprep.subr.mxu1 %v8026_v27 }
  0x7d   : > { %7665 = vmatpush3.msra.mxu0 %v7964_v2  ;;  %7666 = vmatprep.mubr.msk.f32.mxu0 %vm264_vm0, %v8109_v58  ;;  %v8847_v58 = vld [vmem:[#allocation7_spill] sm:$0xff] }
  0x7e   : > { %7674 = vmatprep.subr.mxu0 %v7977_v4  ;;  %7672 = vmatmul.mubr.msk.f32.vlgmr.msra.gmra.mxu1 %vm264_vm0, %v8846_v38 }
  0x7f   : > { %7680 = vmatpush3.msra.mxu1 %v8026_v27  ;;  %7681 = vmatprep.mubr.msk.f32.mxu1 %vm264_vm0, %v8252_v31 }
  0x80   : > { %7667 = vmatmul.mubr.msk.f32.vlgmr.msra.gmra.mxu0 %vm264_vm0, %v8135_v8  ;;  %7689 = vmatprep.subr.mxu1 %v8058_v37  ;;  %v8849_v8 = vld [vmem:[#allocation3_spill] sm:$0xff] }
  0x81   : > { %7675 = vmatpush3.msra.mxu0 %v7977_v4  ;;  %7676 = vmatprep.mubr.msk.f32.mxu0 %vm264_vm0, %v8185_v36 }
  0x82   : > { %7684 = vmatprep.subr.mxu0 %v7986_v5  ;;  %7682 = vmatmul.mubr.msk.f32.vlgmr.msra.gmra.mxu1 %vm264_vm0, %v8847_v58 }
  0x83   : > { %7690 = vmatpush3.msra.mxu1 %v8058_v37  ;;  %7691 = vmatprep.mubr.msk.f32.mxu1 %vm264_vm0, %v8848_v39 }
  0x84   : > { %7677 = vmatmul.mubr.msk.f32.vlgmr.msra.gmra.mxu0 %vm264_vm0, %v8196_v42  ;;  %7699 = vmatprep.subr.mxu1 %v8092_v48 }
  0x85   : > { %7685 = vmatpush3.msra.mxu0 %v7986_v5  ;;  %7686 = vmatprep.mubr.msk.f32.mxu0 %vm264_vm0, %v8264_v43 }
  0x86   : > { %7694 = vmatprep.subr.mxu0 %v8042_v34  ;;  %7692 = vmatmul.mubr.msk.f32.vlgmr.msra.gmra.mxu1 %vm264_vm0, %v8849_v8 }
  0x87   : > { %7700 = vmatpush3.msra.mxu1 %v8092_v48  ;;  %7701 = vmatprep.mubr.msk.f32.mxu1 %vm264_vm0, %v8309_v51 }
  0x88   : > { %7687 = vmatmul.mubr.msk.f32.vlgmr.msra.gmra.mxu0 %vm264_vm0, %v8850_v49  ;;  %7709 = vmatprep.subr.mxu1 %v7964_v2 }
  0x89   : > { %7695 = vmatpush3.msra.mxu0 %v8042_v34  ;;  %7696 = vmatprep.mubr.msk.f32.mxu0 %vm264_vm0, %v8851_v50 }
  0x8a   : > { %7704 = vmatprep.subr.mxu0 %v7959_v1  ;;  %7702 = vmatmul.mubr.msk.f32.vlgmr.msra.gmra.mxu1 %vm264_vm0, %v8315_v33 }
  0x8b   : > { %7710 = vmatpush3.msra.mxu1 %v7964_v2  ;;  %7711 = vmatprep.mubr.msk.f32.mxu1 %vm264_vm0, %v8185_v36  ;;  %v8852_v2 = vld [vmem:[#allocation12_spill] sm:$0xff]  ;;  %v8856_v36 = vld [vmem:[#allocation14_spill] sm:$0xff] }
  0x8c   : > { %7697 = vmatmul.mubr.msk.f32.vlgmr.msra.gmra.mxu0 %vm264_vm0, %v8312_v12  ;;  %7719 = vmatprep.subr.mxu1 %v7977_v4 }
  0x8d   : > { %7705 = vmatpush3.msra.mxu0 %v7959_v1  ;;  %7706 = vmatprep.mubr.msk.f32.mxu0 %vm264_vm0, %v8252_v31  ;;  %v8853_v1 = vld [vmem:[#allocation13_spill] sm:$0xff]  ;;  %v7211_v31 = vld [vmem:[%s8812_s1 + $0x40] sm:$0xff] }
  0x8e   : > { %7714 = vmatprep.subr.mxu0 %v7970_v3  ;;  %7712 = vmatmul.mubr.msk.f32.vlgmr.msra.gmra.mxu1 %vm264_vm0, %v8196_v42  ;;  %v7185_v42 = vld [vmem:[%s8812_s1 + $0x10] sm:$0xff] }
  0x8f   : > { %7720 = vmatpush3.msra.mxu1 %v7977_v4  ;;  %7721 = vmatprep.mubr.msk.f32.mxu1 %vm264_vm0, %v8848_v39  ;;  %v8854_v4 = vld [vmem:[#allocation15_spill] sm:$0xff] }
  0x90   : > { %7707 = vmatmul.mubr.msk.f32.vlgmr.msra.gmra.mxu0 %vm264_vm0, %v8852_v2  ;;  %7729 = vmatprep.subr.mxu1 %v7986_v5 }
  0x91   : > { %7715 = vmatpush3.msra.mxu0 %v7970_v3  ;;  %7716 = vmatprep.mubr.msk.f32.mxu0 %vm264_vm0, %v8264_v43  ;;  %v7180_v3 = vld [vmem:[%s8812_s1 + $0x8] sm:$0xff] }
  0x92   : > { %7724 = vmatprep.subr.mxu0 %v8026_v27  ;;  %7722 = vmatmul.mubr.msk.f32.vlgmr.msra.gmra.mxu1 %vm264_vm0, %v8849_v8 }
  0x93   : > { %7730 = vmatpush3.msra.mxu1 %v7986_v5  ;;  %7731 = vmatprep.mubr.msk.f32.mxu1 %vm264_vm0, %v8309_v51  ;;  %v8855_v5 = vld [vmem:[#allocation16_spill] sm:$0xff] }
  0x94   : > { %7717 = vmatmul.mubr.msk.f32.vlgmr.msra.gmra.mxu0 %vm264_vm0, %v8853_v1  ;;  %7739 = vmatprep.subr.mxu1 %v8042_v34 }
  0x95   : > { %7725 = vmatpush3.msra.mxu0 %v8026_v27  ;;  %7726 = vmatprep.mubr.msk.f32.mxu0 %vm264_vm0, %v8851_v50  ;;  %v8857_v27 = vld [vmem:[#allocation8_spill] sm:$0xff] }
  0x96   : > { %7734 = vmatprep.subr.mxu0 %v8058_v37  ;;  %7732 = vmatmul.mubr.msk.f32.vlgmr.msra.gmra.mxu1 %vm264_vm0, %v8854_v4 }
  0x97   : > { %7740 = vmatpush3.msra.mxu1 %v8042_v34  ;;  %7741 = vmatprep.mubr.msk.f32.mxu1 %vm264_vm0, %v8855_v5  ;;  %v5907_v34 = vld [vmem:[%s8812_s1] sm:$0xff] }
  0x98   : > { %7727 = vmatmul.mubr.msk.f32.vlgmr.msra.gmra.mxu0 %vm264_vm0, %v8856_v36  ;;  %7749 = vmatprep.subr.mxu1 %v7180_v3 }
  0x99   : > { %7735 = vmatpush3.msra.mxu0 %v8058_v37  ;;  %7736 = vmatprep.mubr.msk.f32.mxu0 %vm264_vm0, %v8857_v27  ;;  %v8859_v37 = vld [vmem:[#allocation11_spill] sm:$0xff] }
  0x9a   : > { %7744 = vmatprep.subr.mxu0 %v8092_v48  ;;  %7742 = vmatmul.mubr.msk.f32.vlgmr.msra.gmra.mxu1 %vm264_vm0, %v8858_v13 }
  0x9b   : > { %7750 = vmatpush3.msra.mxu1 %v7180_v3  ;;  %7751 = vmatprep.mubr.msk.f32.mxu1 %vm264_vm0, %v8851_v50 }
  0x9c   : > { %7737 = vmatmul.mubr.msk.f32.vlgmr.msra.gmra.mxu0 %vm264_vm0, %v8859_v37  ;;  %7759 = vmatprep.subr.mxu1 %v7185_v42 }
  0x9d   : > { %7745 = vmatpush3.msra.mxu0 %v8092_v48  ;;  %7746 = vmatprep.mubr.msk.f32.mxu0 %vm264_vm0, %v8365_v32  ;;  %v7205_v48 = vld [vmem:[%s8812_s1 + $0x30] sm:$0xff] }
  0x9e   : > { %7754 = vmatprep.subr.mxu0 %v5907_v34  ;;  %7752 = vmatmul.mubr.msk.f32.vlgmr.msra.gmra.mxu1 %vm264_vm0, %v8371_v19 }
  0x9f   : > { %7760 = vmatpush3.msra.mxu1 %v7185_v42  ;;  %7761 = vmatprep.mubr.msk.f32.mxu1 %vm264_vm0, %v8309_v51 }
  0xa0   : > { %7747 = vmatmul.mubr.msk.f32.vlgmr.msra.gmra.mxu0 %vm264_vm0, %v8368_v44  ;;  %7769 = vmatprep.subr.mxu1 %v7194_v53 }
  0xa1   : > { %7755 = vmatpush3.msra.mxu0 %v5907_v34  ;;  %7756 = vmatprep.mubr.msk.f32.mxu0 %vm264_vm0, %v8848_v39 }
  0xa2   : > { %7764 = vmatprep.subr.mxu0 %v7191_v54  ;;  %7762 = vmatmul.mubr.msk.f32.vlgmr.msra.gmra.mxu1 %vm264_vm0, %v8379_v41 }
  0xa3   : > { %7770 = vmatpush3.msra.mxu1 %v7194_v53  ;;  %7771 = vmatprep.mubr.msk.f32.mxu1 %vm264_vm0, %v8855_v5 }
  0xa4   : > { %7757 = vmatmul.mubr.msk.f32.vlgmr.msra.gmra.mxu0 %vm264_vm0, %v8849_v8  ;;  %7779 = vmatprep.subr.mxu1 %v7205_v48 }
  0xa5   : > { %7765 = vmatpush3.msra.mxu0 %v7191_v54  ;;  %7766 = vmatprep.mubr.msk.f32.mxu0 %vm264_vm0, %v8857_v27 }
  0xa6   : > { %7774 = vmatprep.subr.mxu0 %v7197_v62  ;;  %7772 = vmatmul.mubr.msk.f32.vlgmr.msra.gmra.mxu1 %vm264_vm0, %v8382_v24 }
  0xa7   : > { %7780 = vmatpush3.msra.mxu1 %v7205_v48  ;;  %7781 = vmatprep.mubr.msk.f32.mxu1 %vm264_vm0, %v8333_v9 }
  0xa8   : > { %7767 = vmatmul.mubr.msk.f32.vlgmr.msra.gmra.mxu0 %vm264_vm0, %v8859_v37  ;;  %7789 = vmatprep.subr.mxu1 %v7211_v31 }
  0xa9   : > { %7775 = vmatpush3.msra.mxu0 %v7197_v62  ;;  %7776 = vmatprep.mubr.msk.f32.mxu0 %vm264_vm0, %v8365_v32 }
  0xaa   : > { %7784 = vmatprep.subr.mxu0 %v7208_v14  ;;  %7782 = vmatmul.mubr.msk.f32.vlgmr.msra.gmra.mxu1 %vm264_vm0, %v8348_v56 }
  0xab   : > { %7790 = vmatpush3.msra.mxu1 %v7211_v31  ;;  %7791 = vmatprep.mubr.msk.f32.mxu1 %vm264_vm0, %v8409_v11 }
  0xac   : > { %7777 = vmatmul.mubr.msk.f32.vlgmr.msra.gmra.mxu0 %vm264_vm0, %v8400_v20 }
  0xad   : > { %7785 = vmatpush3.msra.mxu0 %v7208_v14  ;;  %7786 = vmatprep.mubr.msk.f32.mxu0 %vm264_vm0, %v8403_v40 }
  0xae   : > { %7792 = vmatmul.mubr.msk.f32.vlgmr.msra.gmra.mxu1 %vm264_vm0, %v8415_v25 }
  0xb0   : > { %7787 = vmatmul.mubr.msk.f32.vlgmr.msra.gmra.mxu0 %vm264_vm0, %v8412_v29 }
  0xe1   : > { %v7443_v43 = vpop.f32.mrf.mxu1 }
  0xe3   : > { %v414_v51 = vpop.f32.mrf.mxu1 }
  0xe4   : > { %v7438_v56 = vpop.f32.mrf.mxu0 }
  0xe5   : > { %v420_v9 = vadd.f32 %v7443_v43, %v7438_v56 }
  0xe6   : > { %v335_v12 = vpop.f32.mrf.mxu0  ;;  %v7453_v33 = vpop.f32.mrf.mxu1 }
  0xe7   : > { %v415_v44 = vadd.f32 %v414_v51, %v335_v12 }
  0xe8   : > { %v7448_v41 = vpop.f32.mrf.mxu0  ;;  %v592_v32 = vpop.f32.mrf.mxu1 }
  0xe9   : > { %v511_v19 = vadd.f32 %v7448_v41, %v420_v9 }
  0xea   : > { %v501_v24 = vpop.f32.mrf.mxu0  ;;  %v7463_v17 = vpop.f32.mrf.mxu1 }
  0xeb   : > { %v602_v20 = vadd.f32 %v7453_v33, %v511_v19  ;;  %v510_v40 = vadd.f32 %v501_v24, %v415_v44 }
  0xec   : > { %v7458_v11 = vpop.f32.mrf.mxu0  ;;  %v769_v55 = vpop.f32.mrf.mxu1 }
  0xed   : > { %v601_v25 = vadd.f32 %v592_v32, %v510_v40  ;;  %v691_v28 = vadd.f32 %v7458_v11, %v602_v20 }
  0xee   : > { %v681_v59 = vpop.f32.mrf.mxu0  ;;  %v7473_v29 = vpop.f32.mrf.mxu1 }
  0xef   : > { %v779_v45 = vadd.f32 %v7463_v17, %v691_v28  ;;  %v690_v63 = vadd.f32 %v681_v59, %v601_v25 }
  0xf0   : > { %v7468_v16 = vpop.f32.mrf.mxu0  ;;  %v949_v23 = vpop.f32.mrf.mxu1 }
  0xf1   : > { %v778_v52 = vadd.f32 %v769_v55, %v690_v63  ;;  %v870_v15 = vadd.f32 %v7468_v16, %v779_v45 }
  0xf2   : > { %v860_v60 = vpop.f32.mrf.mxu0  ;;  %v7483_v35 = vpop.f32.mrf.mxu1 }
  0xf3   : > { %v959_v21 = vadd.f32 %v7473_v29, %v870_v15  ;;  %v869_v10 = vadd.f32 %v860_v60, %v778_v52 }
  0xf4   : > { %v7478_v0 = vpop.f32.mrf.mxu0  ;;  %v1151_v6 = vpop.f32.mrf.mxu1 }
  0xf5   : > { %v958_v57 = vadd.f32 %v949_v23, %v869_v10  ;;  %v1047_v18 = vadd.f32 %v7478_v0, %v959_v21 }
  0xf6   : > { %v1037_v61 = vpop.f32.mrf.mxu0  ;;  %v7493_v22 = vpop.f32.mrf.mxu1 }
  0xf7   : > { %1049 = vst [vmem:[%s7951_s13 + $0x8] sm:$0xff] %v1047_v18  ;;  %v1046_v46 = vadd.f32 %v1037_v61, %v958_v57  ;;  %v1059_v7 = vmul.f32 %v1047_v18, %v1047_v18 }
  0xf8   : > { %v7488_v47 = vpop.f32.mrf.mxu0  ;;  %v1315_v26 = vpop.f32.mrf.mxu1 }
  0xf9   : > { %1048 = vst [vmem:[%s7951_s13] sm:$0xff] %v1046_v46  ;;  %v1050_v30 = vadd.f32 %v1047_v18, %v1046_v46  ;;  %v1058_v38 = vmul.f32 %v1046_v46, %v1046_v46  ;;  %v1236_v58 = vadd.f32 %v7488_v47, %v7483_v35 }
  0xfa   : > { %v1230_v39 = vpop.f32.mrf.mxu0  ;;  %v7503_v8 = vpop.f32.mrf.mxu1 }
  0xfb   : > { %v1060_v49 = vadd.f32 %v1059_v7, %v1058_v38  ;;  %v1325_v50 = vadd.f32 %v7493_v22, %v1236_v58  ;;  %v1231_v2 = vadd.f32 %v1230_v39, %v1151_v6  ;;  %v1051_v48 = vrot.slane %v1050_v30, 4 }
  0xfc   : > { %v7498_v1 = vpop.f32.mrf.mxu0  ;;  %v1490_v3 = vpop.f32.mrf.mxu1 }
  0xfd   : > { %v1324_v4 = vadd.f32 %v1315_v26, %v1231_v2  ;;  %v1412_v5 = vadd.f32 %v7498_v1, %v1325_v50  ;;  %v1061_v51 = vrot.slane %v1060_v49, 4  ;;  %v1052_v41 = vadd.f32 %v1051_v48, %v1050_v30 }
  0xfe   : > { %v1402_v36 = vpop.f32.mrf.mxu0  ;;  %v7513_v27 = vpop.f32.mrf.mxu1 }
  0xff   : > { %v1500_v42 = vadd.f32 %v7503_v8, %v1412_v5  ;;  %v1411_v13 = vadd.f32 %v1402_v36, %v1324_v4  ;;  %v1062_v17 = vadd.f32 %v1061_v51, %v1060_v49  ;;  %v1053_v55 = vrot.slane %v1052_v41, 2 }
 0x100   : > { %v7508_v34 = vpop.f32.mrf.mxu0  ;;  %v1667_v37 = vpop.f32.mrf.mxu1 }
 0x101   : > { %v1499_v53 = vadd.f32 %v1490_v3, %v1411_v13  ;;  %v1587_v54 = vadd.f32 %v7508_v34, %v1500_v42  ;;  %v1063_v16 = vrot.slane %v1062_v17, 2  ;;  %v1054_v10 = vadd.f32 %v1053_v55, %v1052_v41 }
 0x102   : > { %v1577_v62 = vpop.f32.mrf.mxu0  ;;  %v7523_v31 = vpop.f32.mrf.mxu1 }
 0x103   : > { %v1677_v14 = vadd.f32 %v7513_v27, %v1587_v54  ;;  %v1586_v43 = vadd.f32 %v1577_v62, %v1499_v53  ;;  %v1064_v46 = vadd.f32 %v1063_v16, %v1062_v17  ;;  %v1055_v39 = vrot.slane %v1054_v10, 1 }
 0x104   : > { %v7518_v56 = vpop.f32.mrf.mxu0  ;;  %v1842_v12 = vpop.f32.mrf.mxu1 }
 0x105   : > { %v1676_v33 = vadd.f32 %v1667_v37, %v1586_v43  ;;  %v1765_v9 = vadd.f32 %v7518_v56, %v1677_v14  ;;  %v1065_v4 = vrot.slane %v1064_v46, 1  ;;  %v1056_v37 = vadd.f32 %v1055_v39, %v1054_v10 }
 0x106   : > { %v1755_v32 = vpop.f32.mrf.mxu0  ;;  %v7533_v44 = vpop.f32.mrf.mxu1 }
 0x107   : > { %v1852_v19 = vadd.f32 %v7523_v31, %v1765_v9  ;;  %v1764_v24 = vadd.f32 %v1755_v32, %v1676_v33  ;;  %v1066_v43 = vadd.f32 %v1065_v4, %v1064_v46 }
 0x108   : > { %v7528_v20 = vpop.f32.mrf.mxu0  ;;  %v2036_v40 = vpop.f32.mrf.mxu1 }
 0x109   : > { %6981 = vst [vmem:[%s7951_s13 + $0x18] sm:$0xff] %v1852_v19  ;;  %v1851_v11 = vadd.f32 %v1842_v12, %v1764_v24  ;;  %v1865_v59 = vmul.f32 %v1852_v19, %v1852_v19  ;;  %v2042_v63 = vadd.f32 %v7533_v44, %v7528_v20 }
 0x10a   : > { %v1957_v25 = vpop.f32.mrf.mxu0  ;;  %v7543_v28 = vpop.f32.mrf.mxu1 }
 0x10b   : > { %6980 = vst [vmem:[%s7951_s13 + $0x10] sm:$0xff] %v1851_v11  ;;  %v1856_v29 = vadd.f32 %v1852_v19, %v1851_v11  ;;  %v1864_v45 = vmul.f32 %v1851_v11, %v1851_v11  ;;  %v2037_v35 = vadd.f32 %v2036_v40, %v1957_v25 }
 0x10c   : > { %v7538_v23 = vpop.f32.mrf.mxu0  ;;  %v2208_v52 = vpop.f32.mrf.mxu1 }
 0x10d   : > { %v1857_v15 = vrot.slane %v1856_v29, 4  ;;  %v1866_v60 = vadd.f32 %v1865_v59, %v1864_v45  ;;  %v2131_v21 = vadd.f32 %v7538_v23, %v2042_v63 }
 0x10e   : > { %v2121_v0 = vpop.f32.mrf.mxu0  ;;  %v7553_v6 = vpop.f32.mrf.mxu1 }
 0x10f   : > { %v1858_v57 = vadd.f32 %v1857_v15, %v1856_v29  ;;  %v1867_v18 = vrot.slane %v1866_v60, 4  ;;  %v2218_v61 = vadd.f32 %v7543_v28, %v2131_v21  ;;  %v2130_v22 = vadd.f32 %v2121_v0, %v2037_v35 }
 0x110   : > { %v7548_v47 = vpop.f32.mrf.mxu0  ;;  %v2383_v26 = vpop.f32.mrf.mxu1 }
 0x111   : > { %v1859_v7 = vrot.slane %v1858_v57, 2  ;;  %v1868_v30 = vadd.f32 %v1867_v18, %v1866_v60  ;;  %v2217_v38 = vadd.f32 %v2208_v52, %v2130_v22  ;;  %v2306_v58 = vadd.f32 %v7548_v47, %v2218_v61 }
 0x112   : > { %v2296_v8 = vpop.f32.mrf.mxu0  ;;  %v7563_v49 = vpop.f32.mrf.mxu1 }
 0x113   : > { %v1860_v50 = vadd.f32 %v1859_v7, %v1858_v57  ;;  %v1869_v2 = vrot.slane %v1868_v30, 2  ;;  %v2393_v1 = vadd.f32 %v7553_v6, %v2306_v58  ;;  %v2305_v3 = vadd.f32 %v2296_v8, %v2217_v38 }
 0x114   : > { %v7558_v5 = vpop.f32.mrf.mxu0  ;;  %v2561_v36 = vpop.f32.mrf.mxu1 }
 0x115   : > { %v1861_v27 = vrot.slane %v1860_v50, 1  ;;  %v1870_v42 = vadd.f32 %v1869_v2, %v1868_v30  ;;  %v2392_v13 = vadd.f32 %v2383_v26, %v2305_v3  ;;  %v2483_v34 = vadd.f32 %v7558_v5, %v2393_v1 }
 0x116   : > { %v2473_v53 = vpop.f32.mrf.mxu0  ;;  %v7573_v54 = vpop.f32.mrf.mxu1 }
 0x117   : > { %v1862_v48 = vadd.f32 %v1861_v27, %v1860_v50  ;;  %v1871_v62 = vrot.slane %v1870_v42, 1  ;;  %v2571_v31 = vadd.f32 %v7563_v49, %v2483_v34  ;;  %v2482_v14 = vadd.f32 %v2473_v53, %v2392_v13 }
 0x118   : > { %v7568_v51 = vpop.f32.mrf.mxu0  ;;  %v2763_v56 = vpop.f32.mrf.mxu1 }
 0x119   : > { %v1863_v12 = vadd.f32 %v1862_v48, %v1056_v37  ;;  %v1872_v33 = vadd.f32 %v1871_v62, %v1870_v42  ;;  %v2570_v9 = vadd.f32 %v2561_v36, %v2482_v14  ;;  %v2658_v41 = vadd.f32 %v7568_v51, %v2571_v31 }
 0x11a   : > { %v2648_v32 = vpop.f32.mrf.mxu0  ;;  %v7583_v44 = vpop.f32.mrf.mxu1 }
 0x11b   : > { %v1873_v19 = vadd.f32 %v1872_v33, %v1066_v43  ;;  %7020 = vst [vmem:[%s7951_s13 + $0x28] sm:$0xff] %v2658_v41  ;;  %v2657_v24 = vadd.f32 %v2648_v32, %v2570_v9  ;;  %v2671_v40 = vmul.f32 %v2658_v41, %v2658_v41 }
 0x11c   : > { %v7578_v17 = vpop.f32.mrf.mxu0  ;;  %v2927_v20 = vpop.f32.mrf.mxu1 }
 0x11d   : > { %7019 = vst [vmem:[%s7951_s13 + $0x20] sm:$0xff] %v2657_v24  ;;  %v2662_v11 = vadd.f32 %v2658_v41, %v2657_v24  ;;  %v2670_v55 = vmul.f32 %v2657_v24, %v2657_v24  ;;  %v2848_v25 = vadd.f32 %v7578_v17, %v7573_v54 }
 0x11e   : > { %v2842_v28 = vpop.f32.mrf.mxu0  ;;  %v7593_v59 = vpop.f32.mrf.mxu1 }
 0x11f   : > { %v2663_v29 = vrot.slane %v2662_v11, 4  ;;  %v2672_v45 = vadd.f32 %v2671_v40, %v2670_v55  ;;  %v2937_v63 = vadd.f32 %v7583_v44, %v2848_v25  ;;  %v2843_v16 = vadd.f32 %v2842_v28, %v2763_v56 }
 0x120   : > { %v7588_v23 = vpop.f32.mrf.mxu0  ;;  %v3102_v52 = vpop.f32.mrf.mxu1 }
 0x121   : > { %v2664_v15 = vadd.f32 %v2663_v29, %v2662_v11  ;;  %v2673_v60 = vrot.slane %v2672_v45, 4  ;;  %v2936_v35 = vadd.f32 %v2927_v20, %v2843_v16  ;;  %v3024_v21 = vadd.f32 %v7588_v23, %v2937_v63 }
 0x122   : > { %v3014_v10 = vpop.f32.mrf.mxu0  ;;  %v7603_v0 = vpop.f32.mrf.mxu1 }
 0x123   : > { %v2665_v6 = vrot.slane %v2664_v15, 2  ;;  %v2674_v57 = vadd.f32 %v2673_v60, %v2672_v45  ;;  %v3112_v18 = vadd.f32 %v7593_v59, %v3024_v21  ;;  %v3023_v61 = vadd.f32 %v3014_v10, %v2936_v35 }
 0x124   : > { %v7598_v22 = vpop.f32.mrf.mxu0  ;;  %v3279_v46 = vpop.f32.mrf.mxu1 }
 0x125   : > { %v2666_v47 = vadd.f32 %v2665_v6, %v2664_v15  ;;  %v2675_v26 = vrot.slane %v2674_v57, 2  ;;  %v3111_v7 = vadd.f32 %v3102_v52, %v3023_v61  ;;  %v3199_v30 = vadd.f32 %v7598_v22, %v3112_v18 }
 0x126   : > { %v3189_v38 = vpop.f32.mrf.mxu0  ;;  %v7613_v58 = vpop.f32.mrf.mxu1 }
 0x127   : > { %v2667_v39 = vrot.slane %v2666_v47, 1  ;;  %v2676_v8 = vadd.f32 %v2675_v26, %v2674_v57  ;;  %v3289_v49 = vadd.f32 %v7603_v0, %v3199_v30  ;;  %v3198_v50 = vadd.f32 %v3189_v38, %v3111_v7 }
 0x128   : > { %v7608_v2 = vpop.f32.mrf.mxu0  ;;  %v3454_v1 = vpop.f32.mrf.mxu1 }
 0x129   : > { %v2668_v3 = vadd.f32 %v2667_v39, %v2666_v47  ;;  %v2677_v4 = vrot.slane %v2676_v8, 1  ;;  %v3288_v5 = vadd.f32 %v3279_v46, %v3198_v50  ;;  %v3377_v36 = vadd.f32 %v7608_v2, %v3289_v49 }
 0x12a   : > { %v3367_v27 = vpop.f32.mrf.mxu0  ;;  %v7623_v42 = vpop.f32.mrf.mxu1 }
 0x12b   : > { %v2669_v13 = vadd.f32 %v2668_v3, %v1863_v12  ;;  %v2678_v34 = vadd.f32 %v2677_v4, %v2676_v8  ;;  %v3464_v37 = vadd.f32 %v7613_v58, %v3377_v36  ;;  %v3376_v53 = vadd.f32 %v3367_v27, %v3288_v5 }
 0x12c   : > { %v7618_v54 = vpop.f32.mrf.mxu0  ;;  %v3648_v48 = vpop.f32.mrf.mxu1 }
 0x12d   : > { %v2679_v62 = vadd.f32 %v2678_v34, %v1873_v19  ;;  %7059 = vst [vmem:[%s7951_s13 + $0x38] sm:$0xff] %v3464_v37  ;;  %v3463_v31 = vadd.f32 %v3454_v1, %v3376_v53  ;;  %v3477_v51 = vmul.f32 %v3464_v37, %v3464_v37  ;;  %v3654_v9 = vadd.f32 %v7623_v42, %v7618_v54 }
 0x12e   : > { %v3569_v14 = vpop.f32.mrf.mxu0  ;;  %v7633_v43 = vpop.f32.mrf.mxu1 }
 0x12f   : > { %7058 = vst [vmem:[%s7951_s13 + $0x30] sm:$0xff] %v3463_v31  ;;  %v3468_v56 = vadd.f32 %v3464_v37, %v3463_v31  ;;  %v3476_v33 = vmul.f32 %v3463_v31, %v3463_v31  ;;  %v3649_v12 = vadd.f32 %v3648_v48, %v3569_v14 }
 0x130   : > { %v7628_v41 = vpop.f32.mrf.mxu0  ;;  %v3820_v32 = vpop.f32.mrf.mxu1 }
 0x131   : > { %v3469_v44 = vrot.slane %v3468_v56, 4  ;;  %v3478_v24 = vadd.f32 %v3477_v51, %v3476_v33  ;;  %v3743_v17 = vadd.f32 %v7628_v41, %v3654_v9 }
 0x132   : > { %v3733_v20 = vpop.f32.mrf.mxu0  ;;  %v7643_v40 = vpop.f32.mrf.mxu1 }
 0x133   : > { %v3470_v11 = vadd.f32 %v3469_v44, %v3468_v56  ;;  %v3479_v55 = vrot.slane %v3478_v24, 4  ;;  %v3830_v19 = vadd.f32 %v7633_v43, %v3743_v17  ;;  %v3742_v25 = vadd.f32 %v3733_v20, %v3649_v12 }
 0x134   : > { %v7638_v28 = vpop.f32.mrf.mxu0  ;;  %v3995_v59 = vpop.f32.mrf.mxu1 }
 0x135   : > { %v3471_v29 = vrot.slane %v3470_v11, 2  ;;  %v3480_v45 = vadd.f32 %v3479_v55, %v3478_v24  ;;  %v3829_v63 = vadd.f32 %v3820_v32, %v3742_v25  ;;  %v3918_v16 = vadd.f32 %v7638_v28, %v3830_v19 }
 0x136   : > { %v3908_v23 = vpop.f32.mrf.mxu0  ;;  %v7653_v52 = vpop.f32.mrf.mxu1 }
 0x137   : > { %v3472_v15 = vadd.f32 %v3471_v29, %v3470_v11  ;;  %v3481_v60 = vrot.slane %v3480_v45, 2  ;;  %v4005_v35 = vadd.f32 %v7643_v40, %v3918_v16  ;;  %v3917_v21 = vadd.f32 %v3908_v23, %v3829_v63 }
 0x138   : > { %v7648_v10 = vpop.f32.mrf.mxu0  ;;  %v4173_v0 = vpop.f32.mrf.mxu1 }
 0x139   : > { %v3473_v6 = vrot.slane %v3472_v15, 1  ;;  %v3482_v57 = vadd.f32 %v3481_v60, %v3480_v45  ;;  %v4004_v18 = vadd.f32 %v3995_v59, %v3917_v21  ;;  %v4095_v61 = vadd.f32 %v7648_v10, %v4005_v35 }
 0x13a   : > { %v4085_v22 = vpop.f32.mrf.mxu0  ;;  %v7663_v46 = vpop.f32.mrf.mxu1 }
 0x13b   : > { %v3474_v47 = vadd.f32 %v3473_v6, %v3472_v15  ;;  %v3483_v26 = vrot.slane %v3482_v57, 1  ;;  %v4183_v7 = vadd.f32 %v7653_v52, %v4095_v61  ;;  %v4094_v30 = vadd.f32 %v4085_v22, %v4004_v18 }
 0x13c   : > { %v7658_v38 = vpop.f32.mrf.mxu0  ;;  %v4375_v58 = vpop.f32.mrf.mxu1 }
 0x13d   : > { %v8766_v39 = vadd.f32 %v3474_v47, %v2669_v13  ;;  %v3484_v8 = vadd.f32 %v3483_v26, %v3482_v57  ;;  %v4182_v49 = vadd.f32 %v4173_v0, %v4094_v30  ;;  %v8768_v50 = vadd.f32 %v7658_v38, %v4183_v7 }
 0x13e   : > { %v4260_v2 = vpop.f32.mrf.mxu0  ;;  %v7673_v1 = vpop.f32.mrf.mxu1 }
 0x13f   : > { %v8770_v3 = vadd.f32 %v3484_v8, %v2679_v62  ;;  %7098 = vst [vmem:[%s7951_s13 + $0x48] sm:$0xff] %v8768_v50  ;;  %v8774_v4 = vadd.f32 %v4260_v2, %v4182_v49 }
 0x140   : > { %v7668_v5 = vpop.f32.mrf.mxu0  ;;  %v4539_v36 = vpop.f32.mrf.mxu1 }
 0x141   : > { %7097 = vst [vmem:[%s7951_s13 + $0x40] sm:$0xff] %v8774_v4  ;;  %v4460_v27 = vadd.f32 %v7668_v5, %v7663_v46 }
 0x142   : > { %v4454_v42 = vpop.f32.mrf.mxu0  ;;  %v7683_v13 = vpop.f32.mrf.mxu1 }
 0x143   : > { %v4549_v34 = vadd.f32 %v7673_v1, %v4460_v27  ;;  %v4455_v37 = vadd.f32 %v4454_v42, %v4375_v58 }
 0x144   : > { %v7678_v53 = vpop.f32.mrf.mxu0  ;;  %v4714_v54 = vpop.f32.mrf.mxu1 }
 0x145   : > { %v4548_v48 = vadd.f32 %v4539_v36, %v4455_v37  ;;  %v4636_v31 = vadd.f32 %v7678_v53, %v4549_v34  ;;  %v4282_v36 = vmul.f32 %v8774_v4, %v8774_v4  ;;  %v4283_v37 = vmul.f32 %v8768_v50, %v8768_v50 }
 0x146   : > { %v4626_v14 = vpop.f32.mrf.mxu0  ;;  %v7693_v62 = vpop.f32.mrf.mxu1  ;;  %v4274_v53 = vadd.f32 %v8768_v50, %v8774_v4 }
 0x147   : > { %v4724_v43 = vadd.f32 %v7683_v13, %v4636_v31  ;;  %v4635_v51 = vadd.f32 %v4626_v14, %v4548_v48 }
 0x148   : > { %v7688_v56 = vpop.f32.mrf.mxu0  ;;  %v4891_v33 = vpop.f32.mrf.mxu1 }
 0x149   : > { %v4723_v9 = vadd.f32 %v4714_v54, %v4635_v51  ;;  %v4811_v41 = vadd.f32 %v7688_v56, %v4724_v43 }
 0x14a   : > { %v4801_v32 = vpop.f32.mrf.mxu0  ;;  %v7703_v44 = vpop.f32.mrf.mxu1 }
 0x14b   : > { %v4901_v24 = vadd.f32 %v7693_v62, %v4811_v41  ;;  %v4810_v12 = vadd.f32 %v4801_v32, %v4723_v9  ;;  %v4284_v62 = vadd.f32 %v4283_v37, %v4282_v36  ;;  %v4275_v32 = vrot.slane %v4274_v53, 4 }
 0x14c   : > { %v7698_v17 = vpop.f32.mrf.mxu0  ;;  %v5066_v20 = vpop.f32.mrf.mxu1 }
 0x14d   : > { %v4900_v40 = vadd.f32 %v4891_v33, %v4810_v12  ;;  %v4989_v11 = vadd.f32 %v7698_v17, %v4901_v24 }
 0x14e   : > { %v4979_v55 = vpop.f32.mrf.mxu0  ;;  %v7713_v19 = vpop.f32.mrf.mxu1 }
 0x14f   : > { %v5076_v25 = vadd.f32 %v7703_v44, %v4989_v11  ;;  %v4988_v28 = vadd.f32 %v4979_v55, %v4900_v40  ;;  %v4285_v40 = vrot.slane %v4284_v62, 4 }
 0x150   : > { %v7708_v59 = vpop.f32.mrf.mxu0  ;;  %v5260_v29 = vpop.f32.mrf.mxu1 }
 0x151   : > { %7137 = vst [vmem:[%s7951_s13 + $0x58] sm:$0xff] %v5076_v25  ;;  %v5075_v45 = vadd.f32 %v5066_v20, %v4988_v28  ;;  %v5266_v23 = vadd.f32 %v7713_v19, %v7708_v59  ;;  %v5089_v43 = vmul.f32 %v5076_v25, %v5076_v25 }
 0x152   : > { %v5181_v63 = vpop.f32.mrf.mxu0  ;;  %v7723_v16 = vpop.f32.mrf.mxu1 }
 0x153   : > { %7136 = vst [vmem:[%s7951_s13 + $0x50] sm:$0xff] %v5075_v45  ;;  %v5261_v60 = vadd.f32 %v5260_v29, %v5181_v63  ;;  %v5088_v54 = vmul.f32 %v5075_v45, %v5075_v45  ;;  %v5080_v33 = vadd.f32 %v5076_v25, %v5075_v45  ;;  %v4276_v63 = vadd.f32 %v4275_v32, %v4274_v53 }
 0x154   : > { %v7718_v52 = vpop.f32.mrf.mxu0  ;;  %v5432_v15 = vpop.f32.mrf.mxu1 }
 0x155   : > { %v5355_v35 = vadd.f32 %v7718_v52, %v5266_v23  ;;  %v5090_v44 = vadd.f32 %v5089_v43, %v5088_v54  ;;  %v5081_v19 = vrot.slane %v5080_v33, 4 }
 0x156   : > { %v5345_v21 = vpop.f32.mrf.mxu0  ;;  %v7733_v10 = vpop.f32.mrf.mxu1 }
 0x157   : > { %v5442_v0 = vadd.f32 %v7723_v16, %v5355_v35  ;;  %v5354_v6 = vadd.f32 %v5345_v21, %v5261_v60  ;;  %v5091_v25 = vrot.slane %v5090_v44, 4  ;;  %v4286_v60 = vadd.f32 %v4285_v40, %v4284_v62 }
 0x158   : > { %v7728_v57 = vpop.f32.mrf.mxu0  ;;  %v5607_v18 = vpop.f32.mrf.mxu1 }
 0x159   : > { %v5441_v61 = vadd.f32 %v5432_v15, %v5354_v6  ;;  %v5530_v22 = vadd.f32 %v7728_v57, %v5442_v0 }
 0x15a   : > { %v5520_v46 = vpop.f32.mrf.mxu0  ;;  %v7743_v47 = vpop.f32.mrf.mxu1 }
 0x15b   : > { %v5617_v26 = vadd.f32 %v7733_v10, %v5530_v22  ;;  %v5529_v7 = vadd.f32 %v5520_v46, %v5441_v61  ;;  %v5082_v10 = vadd.f32 %v5081_v19, %v5080_v33  ;;  %v5092_v61 = vadd.f32 %v5091_v25, %v5090_v44 }
 0x15c   : > { %v7738_v30 = vpop.f32.mrf.mxu0  ;;  %v5785_v38 = vpop.f32.mrf.mxu1 }
 0x15d   : > { %v5616_v58 = vadd.f32 %v5607_v18, %v5529_v7  ;;  %v5707_v8 = vadd.f32 %v7738_v30, %v5617_v26  ;;  %v4277_v18 = vrot.slane %v4276_v63, 2  ;;  %v4287_v7 = vrot.slane %v4286_v60, 2 }
 0x15e   : > { %v5697_v49 = vpop.f32.mrf.mxu0  ;;  %v7753_v2 = vpop.f32.mrf.mxu1 }
 0x15f   : > { %v5795_v1 = vadd.f32 %v7743_v47, %v5707_v8  ;;  %v5706_v5 = vadd.f32 %v5697_v49, %v5616_v58  ;;  %v5083_v58 = vrot.slane %v5082_v10, 2 }
 0x160   : > { %v7748_v27 = vpop.f32.mrf.mxu0  ;;  %v5987_v42 = vpop.f32.mrf.mxu1 }
 0x161   : > { %v5794_v13 = vadd.f32 %v5785_v38, %v5706_v5  ;;  %v5882_v34 = vadd.f32 %v7748_v27, %v5795_v1  ;;  %v4278_v1 = vadd.f32 %v4277_v18, %v4276_v63  ;;  %v5093_v5 = vrot.slane %v5092_v61, 2  ;;  %v6713_v18 = vld [vmem:[%s7946_s10] sm:$0x1] }
 0x162   : > { %v5872_v48 = vpop.f32.mrf.mxu0  ;;  %v7763_v31 = vpop.f32.mrf.mxu1  ;;  %v5084_v53 = vadd.f32 %v5083_v58, %v5082_v10 }
 0x163   : > { %7176 = vst [vmem:[%s7951_s13 + $0x68] sm:$0xff] %v5882_v34  ;;  %v5881_v14 = vadd.f32 %v5872_v48, %v5794_v13  ;;  %v5895_v17 = vmul.f32 %v5882_v34, %v5882_v34 }
 0x164   : > { %v7758_v51 = vpop.f32.mrf.mxu0  ;;  %v6151_v56 = vpop.f32.mrf.mxu1 }
 0x165   : > { %7175 = vst [vmem:[%s7951_s13 + $0x60] sm:$0xff] %v5881_v14  ;;  %v5894_v9 = vmul.f32 %v5881_v14, %v5881_v14  ;;  %v6072_v41 = vadd.f32 %v7758_v51, %v7753_v2  ;;  %v5886_v20 = vadd.f32 %v5882_v34, %v5881_v14  ;;  %v4288_v34 = vadd.f32 %v4287_v7, %v4286_v60 }
 0x166   : > { %v6066_v24 = vpop.f32.mrf.mxu0  ;;  %v7773_v12 = vpop.f32.mrf.mxu1  ;;  %v5094_v14 = vadd.f32 %v5093_v5, %v5092_v61 }
 0x167   : > { %v6161_v50 = vadd.f32 %v7763_v31, %v6072_v41  ;;  %v6067_v4 = vadd.f32 %v6066_v24, %v5987_v42  ;;  %v5896_v28 = vadd.f32 %v5895_v17, %v5894_v9  ;;  %v5887_v23 = vrot.slane %v5886_v20, 4 }
 0x168   : > { %v7768_v11 = vpop.f32.mrf.mxu0  ;;  %v6326_v55 = vpop.f32.mrf.mxu1  ;;  %v4279_v31 = vrot.slane %v4278_v1, 1  ;;  %v4289_v33 = vrot.slane %v4288_v34, 1  ;;  %v5085_v9 = vrot.slane %v5084_v53, 1 }
 0x169   : > { %v6160_v59 = vadd.f32 %v6151_v56, %v6067_v4  ;;  %v6248_v29 = vadd.f32 %v7768_v11, %v6161_v50  ;;  %v5897_v0 = vrot.slane %v5896_v28, 4  ;;  %v5888_v46 = vadd.f32 %v5887_v23, %v5886_v20 }
 0x16a   : > { %v6238_v45 = vpop.f32.mrf.mxu0  ;;  %v7783_v16 = vpop.f32.mrf.mxu1  ;;  %v4280_v24 = vadd.f32 %v4279_v31, %v4278_v1  ;;  %v4290_v4 = vadd.f32 %v4289_v33, %v4288_v34  ;;  %v5086_v40 = vadd.f32 %v5085_v9, %v5084_v53 }
 0x16b   : > { %v6336_v52 = vadd.f32 %v7773_v12, %v6248_v29  ;;  %v6247_v15 = vadd.f32 %v6238_v45, %v6160_v59  ;;  %v5898_v8 = vadd.f32 %v5897_v0, %v5896_v28  ;;  %v5889_v27 = vrot.slane %v5888_v46, 2  ;;  %v6710_v0 = vld [vmem:[%s7938_s28] sm:$0x1] }
 0x16c   : > { %v7778_v35 = vpop.f32.mrf.mxu0  ;;  %v6503_v21 = vpop.f32.mrf.mxu1  ;;  %v5095_v12 = vrot.slane %v5094_v14, 1  ;;  %v4281_v28 = vadd.f32 %v4280_v24, %v8766_v39  ;;  %v4291_v45 = vadd.f32 %v4290_v4, %v8770_v3 }
 0x16d   : > { %v6335_v6 = vadd.f32 %v6326_v55, %v6247_v15  ;;  %v6423_v57 = vadd.f32 %v7778_v35, %v6336_v52  ;;  %v5899_v54 = vrot.slane %v5898_v8, 2  ;;  %v5890_v62 = vadd.f32 %v5889_v27, %v5888_v46 }
 0x16e   : > { %v6413_v22 = vpop.f32.mrf.mxu0  ;;  %v7793_v38 = vpop.f32.mrf.mxu1  ;;  %v5096_v59 = vadd.f32 %v5095_v12, %v5094_v14 }
 0x16f   : > { %v6513_v47 = vadd.f32 %v7783_v16, %v6423_v57  ;;  %v6422_v26 = vadd.f32 %v6413_v22, %v6335_v6  ;;  %v5900_v41 = vadd.f32 %v5899_v54, %v5898_v8  ;;  %v5891_v17 = vrot.slane %v5890_v62, 1 }
 0x170   : > { %v7788_v30 = vpop.f32.mrf.mxu0  ;;  %v6678_v37 = vpop.f32.mrf.mxu1  ;;  %v5087_v16 = vadd.f32 %v5086_v40, %v4281_v28  ;;  %v5097_v60 = vadd.f32 %v5096_v59, %v4291_v45 }
 0x171   : > { %v6512_v49 = vadd.f32 %v6503_v21, %v6422_v26  ;;  %v6601_v2 = vadd.f32 %v7788_v30, %v6513_v47  ;;  %v5901_v11 = vrot.slane %v5900_v41, 1  ;;  %v5892_v29 = vadd.f32 %v5891_v17, %v5890_v62 }
 0x172   : > { %v6591_v36 = vpop.f32.mrf.mxu0 }
 0x173   : > { %v6688_v42 = vadd.f32 %v7793_v38, %v6601_v2  ;;  %v6600_v13 = vadd.f32 %v6591_v36, %v6512_v49  ;;  %v5902_v23 = vadd.f32 %v5901_v11, %v5900_v41  ;;  %v5893_v35 = vadd.f32 %v5892_v29, %v5087_v16 }
 0x175   : > { %7215 = vst [vmem:[%s7951_s13 + $0x78] sm:$0xff] %v6688_v42  ;;  %v6687_v48 = vadd.f32 %v6678_v37, %v6600_v13  ;;  %v6701_v43 = vmul.f32 %v6688_v42, %v6688_v42  ;;  %v5903_v6 = vadd.f32 %v5902_v23, %v5097_v60 }
 0x177   : > { %7214 = vst [vmem:[%s7951_s13 + $0x70] sm:$0xff] %v6687_v48  ;;  %v6692_v51 = vadd.f32 %v6688_v42, %v6687_v48  ;;  %v6700_v56 = vmul.f32 %v6687_v48, %v6687_v48 }
 0x179   : > { %v6693_v32 = vrot.slane %v6692_v51, 4  ;;  %v6702_v44 = vadd.f32 %v6701_v43, %v6700_v56 }
 0x17b   : > { %v6694_v20 = vadd.f32 %v6693_v32, %v6692_v51  ;;  %v6703_v50 = vrot.slane %v6702_v44, 4 }
 0x17d   : > { %v6695_v55 = vrot.slane %v6694_v20, 2  ;;  %v6704_v19 = vadd.f32 %v6703_v50, %v6702_v44 }
 0x17f   : > { %v6696_v63 = vadd.f32 %v6695_v55, %v6694_v20  ;;  %v6705_v25 = vrot.slane %v6704_v19, 2 }
 0x181   : > { %v6697_v52 = vrot.slane %v6696_v63, 1  ;;  %v6706_v15 = vadd.f32 %v6705_v25, %v6704_v19 }
 0x183   : > { %v6698_v21 = vadd.f32 %v6697_v52, %v6696_v63  ;;  %v6707_v10 = vrot.slane %v6706_v15, 1 }
 0x185   : > { %v6699_v39 = vadd.f32 %v6698_v21, %v5893_v35  ;;  %v6708_v57 = vadd.f32 %v6707_v10, %v6706_v15 }
 0x187   : > { %v6709_v61 = vadd.f32 %v6708_v57, %v5903_v6  ;;  %v6711_v22 = vadd.f32 %v6710_v0, %v6699_v39 }
 0x189   : > { %6712 = vst [vmem:[%s7938_s28] sm:$0x1] %v6711_v22  ;;  %v6714_v46 = vadd.f32 %v6713_v18, %v6709_v61 }
 0x18b   : > { %6715 = vst [vmem:[%s7946_s10] sm:$0x1] %v6714_v46 }
 0x18c PF: > { %s15_s19 = sadd.s32 1, %s7874_s19   ;;  %s8860_s15 = smov %s7866_s17 }
 0x18d   : > { %p12_p8 = scmp.ge.s32.totalorder %s15_s19, 6   ;;  %s8861_s16 = smov %s7870_s18 }
 0x18e   : > { %s8862_s17 = smov %s8865_s20  ;;  %s8863_s18 = smov %s8869_s21 }
 0x18f   :  { %14 = sbr.rel (!%p12_p8) target bundleno = 3 (0x3), region = 111 }

</bundles_post_ra>
